<compile_context>
chip_gen: v6e
topology: v6e:2x2x1
jax: 0.10.0
libtpu: 0.0.40
codegen_flags: <defaults>
</compile_context>

<pallas_src>
import functools

import jax
import jax.numpy as jnp
from jax import lax
from jax.experimental import pallas as pl
from jax.experimental.pallas import tpu as pltpu
import numpy as np

_LANE = 128


def _round_up(x, m):
    return ((x + m - 1) // m) * m


def _pick_t_blk(seq_len, pref=16):
    """Largest timestep block that divides S and keeps blocks (8,128)-legal."""
    if seq_len <= pref:
        return seq_len
    for t in range(min(pref, seq_len), 0, -1):
        if seq_len % t == 0 and t % 8 == 0:
            return t
    return seq_len  # fall back to the whole sequence in one block


# ---------------------------------------------------------------------------
# Pallas kernels
# ---------------------------------------------------------------------------
def _proj0_kernel(x_ref, win_ref, bin_ref, wih_ref, b_ref, gx_ref):
    """Fused in_ Linear + layer-0 input-to-gates projection.

    x block : (B, T_BLK, I)        batch-first (as produced by the caller)
    gx block: (T_BLK, B, 4*Hp)     time-major, so the recurrence reads gx[t]
                                   as a contiguous (B, 4*Hp) tile.
    """
    xb = x_ref[...]
    bsz, tblk, in_dim = xb.shape
    x2d = xb.reshape(bsz * tblk, in_dim)
    w_in = win_ref[...]
    x2 = jnp.dot(x2d.astype(w_in.dtype), w_in,
                 preferred_element_type=jnp.float32) + bin_ref[...]
    w_ih = wih_ref[...]
    g = jnp.dot(x2.astype(w_ih.dtype), w_ih,
                preferred_element_type=jnp.float32) + b_ref[...]
    # Fold the batch-first -> time-major transpose into this (parallel) kernel.
    gx_ref[...] = jnp.transpose(g.reshape(bsz, tblk, -1), (1, 0, 2))


def _proj_kernel(x_ref, wih_ref, b_ref, gx_ref):
    """Input-to-gates projection for layers >= 1 (input = previous layer's y)."""
    xb = x_ref[...]
    bsz, tblk, in_dim = xb.shape
    x2d = xb.reshape(bsz * tblk, in_dim)
    w_ih = wih_ref[...]
    g = jnp.dot(x2d.astype(w_ih.dtype), w_ih,
                preferred_element_type=jnp.float32) + b_ref[...]
    gx_ref[...] = jnp.transpose(g.reshape(bsz, tblk, -1), (1, 0, 2))


def _lstm_rec_kernel(gx_ref, whh_ref, h0_ref, c0_ref,
                     y_ref, hn_ref, cn_ref, h_scr, c_scr, y_scr):
    """Serial LSTM recurrence over T_BLK timesteps per grid step.

    gx block: (T_BLK, B, 4*Hp) precomputed input gates (x@W_ih + b)
    y block : (B, T_BLK, Hp)   batch-first output
    """
    @pl.when(pl.program_id(0) == 0)
    def _():
        h_scr[...] = h0_ref[...]
        c_scr[...] = c0_ref[...]

    t_blk = y_scr.shape[0]
    hp = h_scr.shape[1]

    def step(tt, carry):
        h = h_scr[...]
        c = c_scr[...]
        gates = jnp.dot(h.astype(whh_ref.dtype), whh_ref[...],
                        preferred_element_type=jnp.float32) + gx_ref[tt]
        # Hp is a multiple of 128 -> each slice is whole 128-lane groups.
        i = jax.nn.sigmoid(gates[:, 0 * hp:1 * hp])
        f = jax.nn.sigmoid(gates[:, 1 * hp:2 * hp])
        g = jnp.tanh(gates[:, 2 * hp:3 * hp])
        o = jax.nn.sigmoid(gates[:, 3 * hp:4 * hp])
        c_new = f * c + i * g
        h_new = o * jnp.tanh(c_new)
        h_scr[...] = h_new
        c_scr[...] = c_new
        y_scr[tt] = h_new
        return carry

    lax.fori_loop(0, t_blk, step, 0, unroll=True)

    # Written every grid step (no predicated cold path); time axis is
    # "arbitrary" so the resident output block keeps the last step's value.
    hn_ref[...] = h_scr[...]
    cn_ref[...] = c_scr[...]
    # Fold the time-major -> batch-first transpose into the block write.
    y_ref[...] = jnp.transpose(y_scr[...], (1, 0, 2))


# ---------------------------------------------------------------------------
# pallas_call wrappers
# ---------------------------------------------------------------------------
def _proj0(x, win_t, b_in, wih_t, b, t_blk):
    bsz, seq, in_dim = x.shape
    mid = win_t.shape[1]
    four_hp = wih_t.shape[1]
    return pl.pallas_call(
        _proj0_kernel,
        out_shape=jax.ShapeDtypeStruct((seq, bsz, four_hp), jnp.float32),
        grid_spec=pltpu.PrefetchScalarGridSpec(
            num_scalar_prefetch=0,
            grid=(seq // t_blk,),
            in_specs=[
                pl.BlockSpec((bsz, t_blk, in_dim), lambda t: (0, t, 0)),
                pl.BlockSpec((in_dim, mid), lambda t: (0, 0)),
                pl.BlockSpec((1, mid), lambda t: (0, 0)),
                pl.BlockSpec((mid, four_hp), lambda t: (0, 0)),
                pl.BlockSpec((1, four_hp), lambda t: (0, 0)),
            ],
            out_specs=pl.BlockSpec((t_blk, bsz, four_hp), lambda t: (t, 0, 0)),
        ),
        compiler_params=pltpu.CompilerParams(
            dimension_semantics=("parallel",)),
    )(x, win_t, b_in, wih_t, b)


def _proj(x, wih_t, b, t_blk):
    bsz, seq, in_dim = x.shape
    four_hp = wih_t.shape[1]
    return pl.pallas_call(
        _proj_kernel,
        out_shape=jax.ShapeDtypeStruct((seq, bsz, four_hp), jnp.float32),
        grid_spec=pltpu.PrefetchScalarGridSpec(
            num_scalar_prefetch=0,
            grid=(seq // t_blk,),
            in_specs=[
                pl.BlockSpec((bsz, t_blk, in_dim), lambda t: (0, t, 0)),
                pl.BlockSpec((in_dim, four_hp), lambda t: (0, 0)),
                pl.BlockSpec((1, four_hp), lambda t: (0, 0)),
            ],
            out_specs=pl.BlockSpec((t_blk, bsz, four_hp), lambda t: (t, 0, 0)),
        ),
        compiler_params=pltpu.CompilerParams(
            dimension_semantics=("parallel",)),
    )(x, wih_t, b)


def _lstm_rec(gx, whh_t, h0, c0, t_blk):
    seq, bsz, four_hp = gx.shape
    hp = h0.shape[1]
    out_shapes = (
        jax.ShapeDtypeStruct((bsz, seq, hp), jnp.float32),   # y (batch-first)
        jax.ShapeDtypeStruct((bsz, hp), jnp.float32),        # h_n
        jax.ShapeDtypeStruct((bsz, hp), jnp.float32),        # c_n
    )
    return pl.pallas_call(
        _lstm_rec_kernel,
        out_shape=out_shapes,
        grid_spec=pltpu.PrefetchScalarGridSpec(
            num_scalar_prefetch=0,
            grid=(seq // t_blk,),
            in_specs=[
                pl.BlockSpec((t_blk, bsz, four_hp), lambda t: (t, 0, 0)),
                pl.BlockSpec((hp, four_hp), lambda t: (0, 0)),
                pl.BlockSpec((bsz, hp), lambda t: (0, 0)),
                pl.BlockSpec((bsz, hp), lambda t: (0, 0)),
            ],
            out_specs=(
                pl.BlockSpec((bsz, t_blk, hp), lambda t: (0, t, 0)),
                pl.BlockSpec((bsz, hp), lambda t: (0, 0)),
                pl.BlockSpec((bsz, hp), lambda t: (0, 0)),
            ),
            scratch_shapes=[
                pltpu.VMEM((bsz, hp), jnp.float32),          # h carry (f32)
                pltpu.VMEM((bsz, hp), jnp.float32),          # c carry (f32)
                pltpu.VMEM((t_blk, bsz, hp), jnp.float32),   # per-block y
            ],
        ),
        compiler_params=pltpu.CompilerParams(
            dimension_semantics=("arbitrary",)),   # time recurrence is serial
    )(gx, whh_t, h0, c0)


# ---------------------------------------------------------------------------
# Parameters (torch-shaped) and kernel-layout preparation
# ---------------------------------------------------------------------------
def init_encoder_lstm_params(key, input_size, hidden_size, num_layers,
                             batch_size, n=3):
    """Deterministic synthetic parameters mirroring the torch module
    (weights stored pre-transposed for row-major x @ W)."""
    keys = jax.random.split(key, 2 + 4 * num_layers + 2)
    kidx = 0

    def nxt():
        nonlocal kidx
        k = keys[kidx]
        kidx += 1
        return k

    scale = 0.2
    params = {
        # nn.Linear(input_size, n*input_size)
        "w_in_t": scale * jax.random.normal(
            nxt(), (input_size, n * input_size), jnp.float32),
        "b_in": scale * jax.random.normal(
            nxt(), (1, n * input_size), jnp.float32),
    }
    layers = []
    in_dim = n * input_size
    for _ in range(num_layers):
        wih_t = scale * jax.random.normal(
            nxt(), (in_dim, 4 * hidden_size), jnp.float32)       # W_ih^T
        whh_t = scale * jax.random.normal(
            nxt(), (hidden_size, 4 * hidden_size), jnp.float32)  # W_hh^T
        b_ih = scale * jax.random.normal(nxt(), (4 * hidden_size,), jnp.float32)
        b_hh = scale * jax.random.normal(nxt(), (4 * hidden_size,), jnp.float32)
        layers.append({"wih_t": wih_t, "whh_t": whh_t,
                       "b": (b_ih + b_hh).reshape(1, 4 * hidden_size)})
        in_dim = hidden_size
    params["layers"] = layers

    # init_hidden_state(): torch.rand(num_layers, batch, hidden) -> U[0,1)
    params["h0"] = jax.random.uniform(
        nxt(), (num_layers, batch_size, hidden_size), jnp.float32)
    params["c0"] = jax.random.uniform(
        nxt(), (num_layers, batch_size, hidden_size), jnp.float32)
    return params


def _pad_gate_cols(w, h, hp):
    """Zero-pad each of the 4 gate column-blocks from h to hp columns."""
    rows = w.shape[0]
    w4 = w.reshape(rows, 4, h)
    w4 = jnp.pad(w4, ((0, 0), (0, 0), (0, hp - h)))
    return w4.reshape(rows, 4 * hp)


def prepare_kernel_params(raw, hidden_size, weight_dtype=jnp.float32):
    """Pad the hidden dim to a multiple of 128 lanes (mathematically inert:
    padded weights/bias/state are zero) and optionally cast matmul weights
    (e.g. jnp.bfloat16 on v6e/v7x).  Biases and h/c state stay float32."""
    h = hidden_size
    hp = _round_up(h, _LANE)
    pad_last = ((0, 0), (0, 0), (0, hp - h))
    kp = {
        "w_in_t": raw["w_in_t"].astype(weight_dtype),
        "b_in": raw["b_in"].astype(jnp.float32),
        "h0": jnp.pad(raw["h0"], pad_last),
        "c0": jnp.pad(raw["c0"], pad_last),
        "layers": [],
    }
    for li, lyr in enumerate(raw["layers"]):
        wih = _pad_gate_cols(lyr["wih_t"], h, hp)
        if li > 0:  # input of layers >= 1 is the (padded) previous layer's y
            wih = jnp.pad(wih, ((0, hp - h), (0, 0)))
        whh = jnp.pad(_pad_gate_cols(lyr["whh_t"], h, hp),
                      ((0, hp - h), (0, 0)))
        kp["layers"].append({
            "wih_t": wih.astype(weight_dtype),
            "whh_t": whh.astype(weight_dtype),
            "b": _pad_gate_cols(lyr["b"], h, hp).astype(jnp.float32),
        })
    return kp


@functools.partial(jax.jit, static_argnames=("hidden_size",))
def encoder_lstm_forward(x, kparams, hidden_size):
    """x: (batch, seq, input_size) -> (output (B,S,H), (h_n, c_n) each (L,B,H))."""
    bsz, seq, _ = x.shape
    del bsz
    t_blk = _pick_t_blk(seq)

    h_list, c_list = [], []
    y = None
    for li, lyr in enumerate(kparams["layers"]):
        if li == 0:
            gx = _proj0(x, kparams["w_in_t"], kparams["b_in"],
                        lyr["wih_t"], lyr["b"], t_blk)
        else:
            gx = _proj(y, lyr["wih_t"], lyr["b"], t_blk)
        y, h_n, c_n = _lstm_rec(gx, lyr["whh_t"],
                                kparams["h0"][li], kparams["c0"][li], t_blk)
        h_list.append(h_n)
        c_list.append(c_n)

    output = y[:, :, :hidden_size]
    h_n = jnp.stack(h_list, axis=0)[:, :, :hidden_size]
    c_n = jnp.stack(c_list, axis=0)[:, :, :hidden_size]
    return output, (h_n, c_n)


# ---------------------------------------------------------------------------
# Pure-JAX reference (unpadded, unfused -- PyTorch semantics) for correctness
# ---------------------------------------------------------------------------
def _reference_forward(x, params):
    b, s, i = x.shape
    x2 = x.reshape(b * s, i) @ params["w_in_t"] + params["b_in"]
    layer_in = x2.reshape(b, s, -1)
    h_list, c_list = [], []
    for li, lyr in enumerate(params["layers"]):
        hd = lyr["whh_t"].shape[0]
        h = params["h0"][li]
        c = params["c0"][li]
        ys = []
        for t in range(s):
            gates = layer_in[:, t, :] @ lyr["wih_t"] + h @ lyr["whh_t"] + lyr["b"]
            i_g = jax.nn.sigmoid(gates[:, 0 * hd:1 * hd])
            f_g = jax.nn.sigmoid(gates[:, 1 * hd:2 * hd])
            g_g = jnp.tanh(gates[:, 2 * hd:3 * hd])
            o_g = jax.nn.sigmoid(gates[:, 3 * hd:4 * hd])
            c = f_g * c + i_g * g_g
            h = o_g * jnp.tanh(c)
            ys.append(h)
        layer_in = jnp.stack(ys, axis=1)
        h_list.append(h)
        c_list.append(c)
    return layer_in, (jnp.stack(h_list), jnp.stack(c_list))


# ---------------------------------------------------------------------------
if __name__ == "__main__":
    input_size = 4
    hidden_size = 32
    num_layers = 2
    batch_size = 2
    seq_len = 8
    n = 3

    key = jax.random.PRNGKey(0)
    k_param, k_x = jax.random.split(key)
    raw_params = init_encoder_lstm_params(
        k_param, input_size, hidden_size, num_layers, batch_size, n=n)
    # weight_dtype=jnp.bfloat16 is the recommended setting on v6e/v7x for
    # large hidden sizes; f32 here to compare bit-close against the reference.
    kparams = prepare_kernel_params(raw_params, hidden_size,
                                    weight_dtype=jnp.float32)
    x = jax.random.normal(k_x, (batch_size, seq_len, input_size), jnp.float32)

    out, (h_n, c_n) = encoder_lstm_forward(x, kparams, hidden_size=hidden_size)
    jax.block_until_ready((out, h_n, c_n))

    ref_out, (ref_h, ref_c) = _reference_forward(x, raw_params)
    np.testing.assert_allclose(np.asarray(out), np.asarray(ref_out),
                               rtol=1e-4, atol=1e-5)
    np.testing.assert_allclose(np.asarray(h_n), np.asarray(ref_h),
                               rtol=1e-4, atol=1e-5)
    np.testing.assert_allclose(np.asarray(c_n), np.asarray(ref_c),
                               rtol=1e-4, atol=1e-5)

    assert out.shape == (batch_size, seq_len, hidden_size)
    assert h_n.shape == (num_layers, batch_size, hidden_size)
    assert c_n.shape == (num_layers, batch_size, hidden_size)
    print("KERNEL_OK")
</pallas_src>

<mosaic_0001>
module attributes {stable_mosaic.version = 11 : i64} {
  func.func @_lstm_rec_kernel(%arg0: i32, %arg1: memref<8x2x512xf32, #tpu.memory_space<vmem>>, %arg2: memref<128x512xf32, #tpu.memory_space<vmem>>, %arg3: memref<2x128xf32, #tpu.memory_space<vmem>>, %arg4: memref<2x128xf32, #tpu.memory_space<vmem>>, %arg5: memref<2x8x128xf32, #tpu.memory_space<vmem>>, %arg6: memref<2x128xf32, #tpu.memory_space<vmem>>, %arg7: memref<2x128xf32, #tpu.memory_space<vmem>>, %arg8: memref<2x128xf32, #tpu.memory_space<vmem>>, %arg9: memref<2x128xf32, #tpu.memory_space<vmem>>, %arg10: memref<8x2x128xf32, #tpu.memory_space<vmem>>) attributes {dimension_semantics = [#tpu.dimension_semantics<arbitrary>], iteration_bounds = array<i64: 1>, scalar_prefetch = 0 : i64, scratch_operands = 3 : i64, tpu.core_type = #tpu.core_type<tc>, window_params = [{transform_indices = @transform_0, window_bounds = array<i64: 8, 2, 512>}, {pipeline_mode = #tpu.pipeline_mode<synchronous>, transform_indices = @transform_1, window_bounds = array<i64: 128, 512>}, {pipeline_mode = #tpu.pipeline_mode<synchronous>, transform_indices = @transform_2, window_bounds = array<i64: 2, 128>}, {pipeline_mode = #tpu.pipeline_mode<synchronous>, transform_indices = @transform_3, window_bounds = array<i64: 2, 128>}, {transform_indices = @transform_4, window_bounds = array<i64: 2, 8, 128>}, {pipeline_mode = #tpu.pipeline_mode<synchronous>, transform_indices = @transform_5, window_bounds = array<i64: 2, 128>}, {pipeline_mode = #tpu.pipeline_mode<synchronous>, transform_indices = @transform_6, window_bounds = array<i64: 2, 128>}]} {
    %c0_i32 = arith.constant 0 : i32
    %0 = arith.cmpi eq, %arg0, %c0_i32 : i32
    %1 = arith.extui %0 : i1 to i32
    %c0_i32_0 = arith.constant 0 : i32
    %2 = arith.cmpi ne, %1, %c0_i32_0 : i32
    scf.if %2 {
      %c0_158 = arith.constant 0 : index
      %c0_159 = arith.constant 0 : index
      %322 = vector.load %arg3[%c0_158, %c0_159] : memref<2x128xf32, #tpu.memory_space<vmem>>, vector<2x128xf32>
      %c0_160 = arith.constant 0 : index
      %c0_161 = arith.constant 0 : index
      %323 = vector.load %arg8[%c0_160, %c0_161] : memref<2x128xf32, #tpu.memory_space<vmem>>, vector<2x128xf32>
      tpu.vector_store %arg8[%c0_160, %c0_161], %322 {strides = array<i32>} : memref<2x128xf32, #tpu.memory_space<vmem>>, vector<2x128xf32>,
      %c0_162 = arith.constant 0 : index
      %c0_163 = arith.constant 0 : index
      %324 = vector.load %arg4[%c0_162, %c0_163] : memref<2x128xf32, #tpu.memory_space<vmem>>, vector<2x128xf32>
      %c0_164 = arith.constant 0 : index
      %c0_165 = arith.constant 0 : index
      %325 = vector.load %arg9[%c0_164, %c0_165] : memref<2x128xf32, #tpu.memory_space<vmem>>, vector<2x128xf32>
      tpu.vector_store %arg9[%c0_164, %c0_165], %324 {strides = array<i32>} : memref<2x128xf32, #tpu.memory_space<vmem>>, vector<2x128xf32>,
    } else {
    }
    %c0_i32_1 = arith.constant 0 : i32
    %c0 = arith.constant 0 : index
    %c0_2 = arith.constant 0 : index
    %3 = vector.load %arg8[%c0, %c0_2] : memref<2x128xf32, #tpu.memory_space<vmem>>, vector<2x128xf32>
    %c0_3 = arith.constant 0 : index
    %c0_4 = arith.constant 0 : index
    %4 = vector.load %arg9[%c0_3, %c0_4] : memref<2x128xf32, #tpu.memory_space<vmem>>, vector<2x128xf32>
    %c0_5 = arith.constant 0 : index
    %c0_6 = arith.constant 0 : index
    %5 = vector.load %arg2[%c0_5, %c0_6] : memref<128x512xf32, #tpu.memory_space<vmem>>, vector<128x512xf32>
    %cst = arith.constant dense<0.000000e+00> : vector<2x512xf32>
    %6 = tpu.matmul %3, %5, %cst {dimension_numbers = #tpu.dot_dimension_numbers<[1], [0], [0], [1], [0, 0, 1, 1], [], []>} : vector<2x128xf32>, vector<128x512xf32>, vector<2x512xf32> -> vector<2x512xf32>
    %7 = arith.index_cast %c0_i32_1 : i32 to index
    %c0_7 = arith.constant 0 : index
    %c0_8 = arith.constant 0 : index
    %8 = vector.load %arg1[%7, %c0_7, %c0_8] : memref<8x2x512xf32, #tpu.memory_space<vmem>>, vector<1x2x512xf32>
    %9 = vector.shape_cast %8 : vector<1x2x512xf32> to vector<2x512xf32>
    %10 = arith.addf %6, %9 : vector<2x512xf32>
    %11 = vector.extract_strided_slice %10 {offsets = [0, 0], sizes = [2, 128], strides = [1, 1]} : vector<2x512xf32> to vector<2x128xf32>
    %12 = arith.negf %11 : vector<2x128xf32>
    %13 = math.exp %12 : vector<2x128xf32>
    %cst_9 = arith.constant 1.000000e+00 : f32
    %14 = vector.broadcast %cst_9 : f32 to vector<2x128xf32>
    %15 = arith.addf %14, %13 : vector<2x128xf32>
    %16 = arith.divf %14, %15 : vector<2x128xf32>
    %17 = vector.extract_strided_slice %10 {offsets = [0, 128], sizes = [2, 128], strides = [1, 1]} : vector<2x512xf32> to vector<2x128xf32>
    %18 = arith.negf %17 : vector<2x128xf32>
    %19 = math.exp %18 : vector<2x128xf32>
    %cst_10 = arith.constant 1.000000e+00 : f32
    %20 = vector.broadcast %cst_10 : f32 to vector<2x128xf32>
    %21 = arith.addf %20, %19 : vector<2x128xf32>
    %22 = arith.divf %20, %21 : vector<2x128xf32>
    %23 = vector.extract_strided_slice %10 {offsets = [0, 256], sizes = [2, 128], strides = [1, 1]} : vector<2x512xf32> to vector<2x128xf32>
    %24 = math.tanh %23 : vector<2x128xf32>
    %25 = vector.extract_strided_slice %10 {offsets = [0, 384], sizes = [2, 128], strides = [1, 1]} : vector<2x512xf32> to vector<2x128xf32>
    %26 = arith.negf %25 : vector<2x128xf32>
    %27 = math.exp %26 : vector<2x128xf32>
    %cst_11 = arith.constant 1.000000e+00 : f32
    %28 = vector.broadcast %cst_11 : f32 to vector<2x128xf32>
    %29 = arith.addf %28, %27 : vector<2x128xf32>
    %30 = arith.divf %28, %29 : vector<2x128xf32>
    %31 = arith.mulf %22, %4 : vector<2x128xf32>
    %32 = arith.mulf %16, %24 : vector<2x128xf32>
    %33 = arith.addf %31, %32 : vector<2x128xf32>
    %34 = math.tanh %33 : vector<2x128xf32>
    %35 = arith.mulf %30, %34 : vector<2x128xf32>
    %c0_12 = arith.constant 0 : index
    %c0_13 = arith.constant 0 : index
    %36 = vector.load %arg8[%c0_12, %c0_13] : memref<2x128xf32, #tpu.memory_space<vmem>>, vector<2x128xf32>
    tpu.vector_store %arg8[%c0_12, %c0_13], %35 {strides = array<i32>} : memref<2x128xf32, #tpu.memory_space<vmem>>, vector<2x128xf32>,
    %c0_14 = arith.constant 0 : index
    %c0_15 = arith.constant 0 : index
    %37 = vector.load %arg9[%c0_14, %c0_15] : memref<2x128xf32, #tpu.memory_space<vmem>>, vector<2x128xf32>
    tpu.vector_store %arg9[%c0_14, %c0_15], %33 {strides = array<i32>} : memref<2x128xf32, #tpu.memory_space<vmem>>, vector<2x128xf32>,
    %38 = arith.index_cast %c0_i32_1 : i32 to index
    %c0_16 = arith.constant 0 : index
    %c0_17 = arith.constant 0 : index
    %39 = vector.load %arg10[%38, %c0_16, %c0_17] : memref<8x2x128xf32, #tpu.memory_space<vmem>>, vector<1x2x128xf32>
    %40 = vector.shape_cast %39 : vector<1x2x128xf32> to vector<2x128xf32>
    %41 = vector.shape_cast %35 : vector<2x128xf32> to vector<1x2x128xf32>
    tpu.vector_store %arg10[%38, %c0_16, %c0_17], %41 {strides = array<i32>} : memref<8x2x128xf32, #tpu.memory_space<vmem>>, vector<1x2x128xf32>,
    %c1_i32 = arith.constant 1 : i32
    %c0_18 = arith.constant 0 : index
    %c0_19 = arith.constant 0 : index
    %42 = vector.load %arg8[%c0_18, %c0_19] : memref<2x128xf32, #tpu.memory_space<vmem>>, vector<2x128xf32>
    %c0_20 = arith.constant 0 : index
    %c0_21 = arith.constant 0 : index
    %43 = vector.load %arg9[%c0_20, %c0_21] : memref<2x128xf32, #tpu.memory_space<vmem>>, vector<2x128xf32>
    %c0_22 = arith.constant 0 : index
    %c0_23 = arith.constant 0 : index
    %44 = vector.load %arg2[%c0_22, %c0_23] : memref<128x512xf32, #tpu.memory_space<vmem>>, vector<128x512xf32>
    %cst_24 = arith.constant dense<0.000000e+00> : vector<2x512xf32>
    %45 = tpu.matmul %42, %44, %cst_24 {dimension_numbers = #tpu.dot_dimension_numbers<[1], [0], [0], [1], [0, 0, 1, 1], [], []>} : vector<2x128xf32>, vector<128x512xf32>, vector<2x512xf32> -> vector<2x512xf32>
    %46 = arith.index_cast %c1_i32 : i32 to index
    %c0_25 = arith.constant 0 : index
    %c0_26 = arith.constant 0 : index
    %47 = vector.load %arg1[%46, %c0_25, %c0_26] : memref<8x2x512xf32, #tpu.memory_space<vmem>>, vector<1x2x512xf32>
    %48 = vector.shape_cast %47 : vector<1x2x512xf32> to vector<2x512xf32>
    %49 = arith.addf %45, %48 : vector<2x512xf32>
    %50 = vector.extract_strided_slice %49 {offsets = [0, 0], sizes = [2, 128], strides = [1, 1]} : vector<2x512xf32> to vector<2x128xf32>
    %51 = arith.negf %50 : vector<2x128xf32>
    %52 = math.exp %51 : vector<2x128xf32>
    %cst_27 = arith.constant 1.000000e+00 : f32
    %53 = vector.broadcast %cst_27 : f32 to vector<2x128xf32>
    %54 = arith.addf %53, %52 : vector<2x128xf32>
    %55 = arith.divf %53, %54 : vector<2x128xf32>
    %56 = vector.extract_strided_slice %49 {offsets = [0, 128], sizes = [2, 128], strides = [1, 1]} : vector<2x512xf32> to vector<2x128xf32>
    %57 = arith.negf %56 : vector<2x128xf32>
    %58 = math.exp %57 : vector<2x128xf32>
    %cst_28 = arith.constant 1.000000e+00 : f32
    %59 = vector.broadcast %cst_28 : f32 to vector<2x128xf32>
    %60 = arith.addf %59, %58 : vector<2x128xf32>
    %61 = arith.divf %59, %60 : vector<2x128xf32>
    %62 = vector.extract_strided_slice %49 {offsets = [0, 256], sizes = [2, 128], strides = [1, 1]} : vector<2x512xf32> to vector<2x128xf32>
    %63 = math.tanh %62 : vector<2x128xf32>
    %64 = vector.extract_strided_slice %49 {offsets = [0, 384], sizes = [2, 128], strides = [1, 1]} : vector<2x512xf32> to vector<2x128xf32>
    %65 = arith.negf %64 : vector<2x128xf32>
    %66 = math.exp %65 : vector<2x128xf32>
    %cst_29 = arith.constant 1.000000e+00 : f32
    %67 = vector.broadcast %cst_29 : f32 to vector<2x128xf32>
    %68 = arith.addf %67, %66 : vector<2x128xf32>
    %69 = arith.divf %67, %68 : vector<2x128xf32>
    %70 = arith.mulf %61, %43 : vector<2x128xf32>
    %71 = arith.mulf %55, %63 : vector<2x128xf32>
    %72 = arith.addf %70, %71 : vector<2x128xf32>
    %73 = math.tanh %72 : vector<2x128xf32>
    %74 = arith.mulf %69, %73 : vector<2x128xf32>
    %c0_30 = arith.constant 0 : index
    %c0_31 = arith.constant 0 : index
    %75 = vector.load %arg8[%c0_30, %c0_31] : memref<2x128xf32, #tpu.memory_space<vmem>>, vector<2x128xf32>
    tpu.vector_store %arg8[%c0_30, %c0_31], %74 {strides = array<i32>} : memref<2x128xf32, #tpu.memory_space<vmem>>, vector<2x128xf32>,
    %c0_32 = arith.constant 0 : index
    %c0_33 = arith.constant 0 : index
    %76 = vector.load %arg9[%c0_32, %c0_33] : memref<2x128xf32, #tpu.memory_space<vmem>>, vector<2x128xf32>
    tpu.vector_store %arg9[%c0_32, %c0_33], %72 {strides = array<i32>} : memref<2x128xf32, #tpu.memory_space<vmem>>, vector<2x128xf32>,
    %77 = arith.index_cast %c1_i32 : i32 to index
    %c0_34 = arith.constant 0 : index
    %c0_35 = arith.constant 0 : index
    %78 = vector.load %arg10[%77, %c0_34, %c0_35] : memref<8x2x128xf32, #tpu.memory_space<vmem>>, vector<1x2x128xf32>
    %79 = vector.shape_cast %78 : vector<1x2x128xf32> to vector<2x128xf32>
    %80 = vector.shape_cast %74 : vector<2x128xf32> to vector<1x2x128xf32>
    tpu.vector_store %arg10[%77, %c0_34, %c0_35], %80 {strides = array<i32>} : memref<8x2x128xf32, #tpu.memory_space<vmem>>, vector<1x2x128xf32>,
    %c2_i32 = arith.constant 2 : i32
    %c0_36 = arith.constant 0 : index
    %c0_37 = arith.constant 0 : index
    %81 = vector.load %arg8[%c0_36, %c0_37] : memref<2x128xf32, #tpu.memory_space<vmem>>, vector<2x128xf32>
    %c0_38 = arith.constant 0 : index
    %c0_39 = arith.constant 0 : index
    %82 = vector.load %arg9[%c0_38, %c0_39] : memref<2x128xf32, #tpu.memory_space<vmem>>, vector<2x128xf32>
    %c0_40 = arith.constant 0 : index
    %c0_41 = arith.constant 0 : index
    %83 = vector.load %arg2[%c0_40, %c0_41] : memref<128x512xf32, #tpu.memory_space<vmem>>, vector<128x512xf32>
    %cst_42 = arith.constant dense<0.000000e+00> : vector<2x512xf32>
    %84 = tpu.matmul %81, %83, %cst_42 {dimension_numbers = #tpu.dot_dimension_numbers<[1], [0], [0], [1], [0, 0, 1, 1], [], []>} : vector<2x128xf32>, vector<128x512xf32>, vector<2x512xf32> -> vector<2x512xf32>
    %85 = arith.index_cast %c2_i32 : i32 to index
    %c0_43 = arith.constant 0 : index
    %c0_44 = arith.constant 0 : index
    %86 = vector.load %arg1[%85, %c0_43, %c0_44] : memref<8x2x512xf32, #tpu.memory_space<vmem>>, vector<1x2x512xf32>
    %87 = vector.shape_cast %86 : vector<1x2x512xf32> to vector<2x512xf32>
    %88 = arith.addf %84, %87 : vector<2x512xf32>
    %89 = vector.extract_strided_slice %88 {offsets = [0, 0], sizes = [2, 128], strides = [1, 1]} : vector<2x512xf32> to vector<2x128xf32>
    %90 = arith.negf %89 : vector<2x128xf32>
    %91 = math.exp %90 : vector<2x128xf32>
    %cst_45 = arith.constant 1.000000e+00 : f32
    %92 = vector.broadcast %cst_45 : f32 to vector<2x128xf32>
    %93 = arith.addf %92, %91 : vector<2x128xf32>
    %94 = arith.divf %92, %93 : vector<2x128xf32>
    %95 = vector.extract_strided_slice %88 {offsets = [0, 128], sizes = [2, 128], strides = [1, 1]} : vector<2x512xf32> to vector<2x128xf32>
    %96 = arith.negf %95 : vector<2x128xf32>
    %97 = math.exp %96 : vector<2x128xf32>
    %cst_46 = arith.constant 1.000000e+00 : f32
    %98 = vector.broadcast %cst_46 : f32 to vector<2x128xf32>
    %99 = arith.addf %98, %97 : vector<2x128xf32>
    %100 = arith.divf %98, %99 : vector<2x128xf32>
    %101 = vector.extract_strided_slice %88 {offsets = [0, 256], sizes = [2, 128], strides = [1, 1]} : vector<2x512xf32> to vector<2x128xf32>
    %102 = math.tanh %101 : vector<2x128xf32>
    %103 = vector.extract_strided_slice %88 {offsets = [0, 384], sizes = [2, 128], strides = [1, 1]} : vector<2x512xf32> to vector<2x128xf32>
    %104 = arith.negf %103 : vector<2x128xf32>
    %105 = math.exp %104 : vector<2x128xf32>
    %cst_47 = arith.constant 1.000000e+00 : f32
    %106 = vector.broadcast %cst_47 : f32 to vector<2x128xf32>
    %107 = arith.addf %106, %105 : vector<2x128xf32>
    %108 = arith.divf %106, %107 : vector<2x128xf32>
    %109 = arith.mulf %100, %82 : vector<2x128xf32>
    %110 = arith.mulf %94, %102 : vector<2x128xf32>
    %111 = arith.addf %109, %110 : vector<2x128xf32>
    %112 = math.tanh %111 : vector<2x128xf32>
    %113 = arith.mulf %108, %112 : vector<2x128xf32>
    %c0_48 = arith.constant 0 : index
    %c0_49 = arith.constant 0 : index
    %114 = vector.load %arg8[%c0_48, %c0_49] : memref<2x128xf32, #tpu.memory_space<vmem>>, vector<2x128xf32>
    tpu.vector_store %arg8[%c0_48, %c0_49], %113 {strides = array<i32>} : memref<2x128xf32, #tpu.memory_space<vmem>>, vector<2x128xf32>,
    %c0_50 = arith.constant 0 : index
    %c0_51 = arith.constant 0 : index
    %115 = vector.load %arg9[%c0_50, %c0_51] : memref<2x128xf32, #tpu.memory_space<vmem>>, vector<2x128xf32>
    tpu.vector_store %arg9[%c0_50, %c0_51], %111 {strides = array<i32>} : memref<2x128xf32, #tpu.memory_space<vmem>>, vector<2x128xf32>,
    %116 = arith.index_cast %c2_i32 : i32 to index
    %c0_52 = arith.constant 0 : index
    %c0_53 = arith.constant 0 : index
    %117 = vector.load %arg10[%116, %c0_52, %c0_53] : memref<8x2x128xf32, #tpu.memory_space<vmem>>, vector<1x2x128xf32>
    %118 = vector.shape_cast %117 : vector<1x2x128xf32> to vector<2x128xf32>
    %119 = vector.shape_cast %113 : vector<2x128xf32> to vector<1x2x128xf32>
    tpu.vector_store %arg10[%116, %c0_52, %c0_53], %119 {strides = array<i32>} : memref<8x2x128xf32, #tpu.memory_space<vmem>>, vector<1x2x128xf32>,
    %c3_i32 = arith.constant 3 : i32
    %c0_54 = arith.constant 0 : index
    %c0_55 = arith.constant 0 : index
    %120 = vector.load %arg8[%c0_54, %c0_55] : memref<2x128xf32, #tpu.memory_space<vmem>>, vector<2x128xf32>
    %c0_56 = arith.constant 0 : index
    %c0_57 = arith.constant 0 : index
    %121 = vector.load %arg9[%c0_56, %c0_57] : memref<2x128xf32, #tpu.memory_space<vmem>>, vector<2x128xf32>
    %c0_58 = arith.constant 0 : index
    %c0_59 = arith.constant 0 : index
    %122 = vector.load %arg2[%c0_58, %c0_59] : memref<128x512xf32, #tpu.memory_space<vmem>>, vector<128x512xf32>
    %cst_60 = arith.constant dense<0.000000e+00> : vector<2x512xf32>
    %123 = tpu.matmul %120, %122, %cst_60 {dimension_numbers = #tpu.dot_dimension_numbers<[1], [0], [0], [1], [0, 0, 1, 1], [], []>} : vector<2x128xf32>, vector<128x512xf32>, vector<2x512xf32> -> vector<2x512xf32>
    %124 = arith.index_cast %c3_i32 : i32 to index
    %c0_61 = arith.constant 0 : index
    %c0_62 = arith.constant 0 : index
    %125 = vector.load %arg1[%124, %c0_61, %c0_62] : memref<8x2x512xf32, #tpu.memory_space<vmem>>, vector<1x2x512xf32>
    %126 = vector.shape_cast %125 : vector<1x2x512xf32> to vector<2x512xf32>
    %127 = arith.addf %123, %126 : vector<2x512xf32>
    %128 = vector.extract_strided_slice %127 {offsets = [0, 0], sizes = [2, 128], strides = [1, 1]} : vector<2x512xf32> to vector<2x128xf32>
    %129 = arith.negf %128 : vector<2x128xf32>
    %130 = math.exp %129 : vector<2x128xf32>
    %cst_63 = arith.constant 1.000000e+00 : f32
    %131 = vector.broadcast %cst_63 : f32 to vector<2x128xf32>
    %132 = arith.addf %131, %130 : vector<2x128xf32>
    %133 = arith.divf %131, %132 : vector<2x128xf32>
    %134 = vector.extract_strided_slice %127 {offsets = [0, 128], sizes = [2, 128], strides = [1, 1]} : vector<2x512xf32> to vector<2x128xf32>
    %135 = arith.negf %134 : vector<2x128xf32>
    %136 = math.exp %135 : vector<2x128xf32>
    %cst_64 = arith.constant 1.000000e+00 : f32
    %137 = vector.broadcast %cst_64 : f32 to vector<2x128xf32>
    %138 = arith.addf %137, %136 : vector<2x128xf32>
    %139 = arith.divf %137, %138 : vector<2x128xf32>
    %140 = vector.extract_strided_slice %127 {offsets = [0, 256], sizes = [2, 128], strides = [1, 1]} : vector<2x512xf32> to vector<2x128xf32>
    %141 = math.tanh %140 : vector<2x128xf32>
    %142 = vector.extract_strided_slice %127 {offsets = [0, 384], sizes = [2, 128], strides = [1, 1]} : vector<2x512xf32> to vector<2x128xf32>
    %143 = arith.negf %142 : vector<2x128xf32>
    %144 = math.exp %143 : vector<2x128xf32>
    %cst_65 = arith.constant 1.000000e+00 : f32
    %145 = vector.broadcast %cst_65 : f32 to vector<2x128xf32>
    %146 = arith.addf %145, %144 : vector<2x128xf32>
    %147 = arith.divf %145, %146 : vector<2x128xf32>
    %148 = arith.mulf %139, %121 : vector<2x128xf32>
    %149 = arith.mulf %133, %141 : vector<2x128xf32>
    %150 = arith.addf %148, %149 : vector<2x128xf32>
    %151 = math.tanh %150 : vector<2x128xf32>
    %152 = arith.mulf %147, %151 : vector<2x128xf32>
    %c0_66 = arith.constant 0 : index
    %c0_67 = arith.constant 0 : index
    %153 = vector.load %arg8[%c0_66, %c0_67] : memref<2x128xf32, #tpu.memory_space<vmem>>, vector<2x128xf32>
    tpu.vector_store %arg8[%c0_66, %c0_67], %152 {strides = array<i32>} : memref<2x128xf32, #tpu.memory_space<vmem>>, vector<2x128xf32>,
    %c0_68 = arith.constant 0 : index
    %c0_69 = arith.constant 0 : index
    %154 = vector.load %arg9[%c0_68, %c0_69] : memref<2x128xf32, #tpu.memory_space<vmem>>, vector<2x128xf32>
    tpu.vector_store %arg9[%c0_68, %c0_69], %150 {strides = array<i32>} : memref<2x128xf32, #tpu.memory_space<vmem>>, vector<2x128xf32>,
    %155 = arith.index_cast %c3_i32 : i32 to index
    %c0_70 = arith.constant 0 : index
    %c0_71 = arith.constant 0 : index
    %156 = vector.load %arg10[%155, %c0_70, %c0_71] : memref<8x2x128xf32, #tpu.memory_space<vmem>>, vector<1x2x128xf32>
    %157 = vector.shape_cast %156 : vector<1x2x128xf32> to vector<2x128xf32>
    %158 = vector.shape_cast %152 : vector<2x128xf32> to vector<1x2x128xf32>
    tpu.vector_store %arg10[%155, %c0_70, %c0_71], %158 {strides = array<i32>} : memref<8x2x128xf32, #tpu.memory_space<vmem>>, vector<1x2x128xf32>,
    %c4_i32 = arith.constant 4 : i32
    %c0_72 = arith.constant 0 : index
    %c0_73 = arith.constant 0 : index
    %159 = vector.load %arg8[%c0_72, %c0_73] : memref<2x128xf32, #tpu.memory_space<vmem>>, vector<2x128xf32>
    %c0_74 = arith.constant 0 : index
    %c0_75 = arith.constant 0 : index
    %160 = vector.load %arg9[%c0_74, %c0_75] : memref<2x128xf32, #tpu.memory_space<vmem>>, vector<2x128xf32>
    %c0_76 = arith.constant 0 : index
    %c0_77 = arith.constant 0 : index
    %161 = vector.load %arg2[%c0_76, %c0_77] : memref<128x512xf32, #tpu.memory_space<vmem>>, vector<128x512xf32>
    %cst_78 = arith.constant dense<0.000000e+00> : vector<2x512xf32>
    %162 = tpu.matmul %159, %161, %cst_78 {dimension_numbers = #tpu.dot_dimension_numbers<[1], [0], [0], [1], [0, 0, 1, 1], [], []>} : vector<2x128xf32>, vector<128x512xf32>, vector<2x512xf32> -> vector<2x512xf32>
    %163 = arith.index_cast %c4_i32 : i32 to index
    %c0_79 = arith.constant 0 : index
    %c0_80 = arith.constant 0 : index
    %164 = vector.load %arg1[%163, %c0_79, %c0_80] : memref<8x2x512xf32, #tpu.memory_space<vmem>>, vector<1x2x512xf32>
    %165 = vector.shape_cast %164 : vector<1x2x512xf32> to vector<2x512xf32>
    %166 = arith.addf %162, %165 : vector<2x512xf32>
    %167 = vector.extract_strided_slice %166 {offsets = [0, 0], sizes = [2, 128], strides = [1, 1]} : vector<2x512xf32> to vector<2x128xf32>
    %168 = arith.negf %167 : vector<2x128xf32>
    %169 = math.exp %168 : vector<2x128xf32>
    %cst_81 = arith.constant 1.000000e+00 : f32
    %170 = vector.broadcast %cst_81 : f32 to vector<2x128xf32>
    %171 = arith.addf %170, %169 : vector<2x128xf32>
    %172 = arith.divf %170, %171 : vector<2x128xf32>
    %173 = vector.extract_strided_slice %166 {offsets = [0, 128], sizes = [2, 128], strides = [1, 1]} : vector<2x512xf32> to vector<2x128xf32>
    %174 = arith.negf %173 : vector<2x128xf32>
    %175 = math.exp %174 : vector<2x128xf32>
    %cst_82 = arith.constant 1.000000e+00 : f32
    %176 = vector.broadcast %cst_82 : f32 to vector<2x128xf32>
    %177 = arith.addf %176, %175 : vector<2x128xf32>
    %178 = arith.divf %176, %177 : vector<2x128xf32>
    %179 = vector.extract_strided_slice %166 {offsets = [0, 256], sizes = [2, 128], strides = [1, 1]} : vector<2x512xf32> to vector<2x128xf32>
    %180 = math.tanh %179 : vector<2x128xf32>
    %181 = vector.extract_strided_slice %166 {offsets = [0, 384], sizes = [2, 128], strides = [1, 1]} : vector<2x512xf32> to vector<2x128xf32>
    %182 = arith.negf %181 : vector<2x128xf32>
    %183 = math.exp %182 : vector<2x128xf32>
    %cst_83 = arith.constant 1.000000e+00 : f32
    %184 = vector.broadcast %cst_83 : f32 to vector<2x128xf32>
    %185 = arith.addf %184, %183 : vector<2x128xf32>
    %186 = arith.divf %184, %185 : vector<2x128xf32>
    %187 = arith.mulf %178, %160 : vector<2x128xf32>
    %188 = arith.mulf %172, %180 : vector<2x128xf32>
    %189 = arith.addf %187, %188 : vector<2x128xf32>
    %190 = math.tanh %189 : vector<2x128xf32>
    %191 = arith.mulf %186, %190 : vector<2x128xf32>
    %c0_84 = arith.constant 0 : index
    %c0_85 = arith.constant 0 : index
    %192 = vector.load %arg8[%c0_84, %c0_85] : memref<2x128xf32, #tpu.memory_space<vmem>>, vector<2x128xf32>
    tpu.vector_store %arg8[%c0_84, %c0_85], %191 {strides = array<i32>} : memref<2x128xf32, #tpu.memory_space<vmem>>, vector<2x128xf32>,
    %c0_86 = arith.constant 0 : index
    %c0_87 = arith.constant 0 : index
    %193 = vector.load %arg9[%c0_86, %c0_87] : memref<2x128xf32, #tpu.memory_space<vmem>>, vector<2x128xf32>
    tpu.vector_store %arg9[%c0_86, %c0_87], %189 {strides = array<i32>} : memref<2x128xf32, #tpu.memory_space<vmem>>, vector<2x128xf32>,
    %194 = arith.index_cast %c4_i32 : i32 to index
    %c0_88 = arith.constant 0 : index
    %c0_89 = arith.constant 0 : index
    %195 = vector.load %arg10[%194, %c0_88, %c0_89] : memref<8x2x128xf32, #tpu.memory_space<vmem>>, vector<1x2x128xf32>
    %196 = vector.shape_cast %195 : vector<1x2x128xf32> to vector<2x128xf32>
    %197 = vector.shape_cast %191 : vector<2x128xf32> to vector<1x2x128xf32>
    tpu.vector_store %arg10[%194, %c0_88, %c0_89], %197 {strides = array<i32>} : memref<8x2x128xf32, #tpu.memory_space<vmem>>, vector<1x2x128xf32>,
    %c5_i32 = arith.constant 5 : i32
    %c0_90 = arith.constant 0 : index
    %c0_91 = arith.constant 0 : index
    %198 = vector.load %arg8[%c0_90, %c0_91] : memref<2x128xf32, #tpu.memory_space<vmem>>, vector<2x128xf32>
    %c0_92 = arith.constant 0 : index
    %c0_93 = arith.constant 0 : index
    %199 = vector.load %arg9[%c0_92, %c0_93] : memref<2x128xf32, #tpu.memory_space<vmem>>, vector<2x128xf32>
    %c0_94 = arith.constant 0 : index
    %c0_95 = arith.constant 0 : index
    %200 = vector.load %arg2[%c0_94, %c0_95] : memref<128x512xf32, #tpu.memory_space<vmem>>, vector<128x512xf32>
    %cst_96 = arith.constant dense<0.000000e+00> : vector<2x512xf32>
    %201 = tpu.matmul %198, %200, %cst_96 {dimension_numbers = #tpu.dot_dimension_numbers<[1], [0], [0], [1], [0, 0, 1, 1], [], []>} : vector<2x128xf32>, vector<128x512xf32>, vector<2x512xf32> -> vector<2x512xf32>
    %202 = arith.index_cast %c5_i32 : i32 to index
    %c0_97 = arith.constant 0 : index
    %c0_98 = arith.constant 0 : index
    %203 = vector.load %arg1[%202, %c0_97, %c0_98] : memref<8x2x512xf32, #tpu.memory_space<vmem>>, vector<1x2x512xf32>
    %204 = vector.shape_cast %203 : vector<1x2x512xf32> to vector<2x512xf32>
    %205 = arith.addf %201, %204 : vector<2x512xf32>
    %206 = vector.extract_strided_slice %205 {offsets = [0, 0], sizes = [2, 128], strides = [1, 1]} : vector<2x512xf32> to vector<2x128xf32>
    %207 = arith.negf %206 : vector<2x128xf32>
    %208 = math.exp %207 : vector<2x128xf32>
    %cst_99 = arith.constant 1.000000e+00 : f32
    %209 = vector.broadcast %cst_99 : f32 to vector<2x128xf32>
    %210 = arith.addf %209, %208 : vector<2x128xf32>
    %211 = arith.divf %209, %210 : vector<2x128xf32>
    %212 = vector.extract_strided_slice %205 {offsets = [0, 128], sizes = [2, 128], strides = [1, 1]} : vector<2x512xf32> to vector<2x128xf32>
    %213 = arith.negf %212 : vector<2x128xf32>
    %214 = math.exp %213 : vector<2x128xf32>
    %cst_100 = arith.constant 1.000000e+00 : f32
    %215 = vector.broadcast %cst_100 : f32 to vector<2x128xf32>
    %216 = arith.addf %215, %214 : vector<2x128xf32>
    %217 = arith.divf %215, %216 : vector<2x128xf32>
    %218 = vector.extract_strided_slice %205 {offsets = [0, 256], sizes = [2, 128], strides = [1, 1]} : vector<2x512xf32> to vector<2x128xf32>
    %219 = math.tanh %218 : vector<2x128xf32>
    %220 = vector.extract_strided_slice %205 {offsets = [0, 384], sizes = [2, 128], strides = [1, 1]} : vector<2x512xf32> to vector<2x128xf32>
    %221 = arith.negf %220 : vector<2x128xf32>
    %222 = math.exp %221 : vector<2x128xf32>
    %cst_101 = arith.constant 1.000000e+00 : f32
    %223 = vector.broadcast %cst_101 : f32 to vector<2x128xf32>
    %224 = arith.addf %223, %222 : vector<2x128xf32>
    %225 = arith.divf %223, %224 : vector<2x128xf32>
    %226 = arith.mulf %217, %199 : vector<2x128xf32>
    %227 = arith.mulf %211, %219 : vector<2x128xf32>
    %228 = arith.addf %226, %227 : vector<2x128xf32>
    %229 = math.tanh %228 : vector<2x128xf32>
    %230 = arith.mulf %225, %229 : vector<2x128xf32>
    %c0_102 = arith.constant 0 : index
    %c0_103 = arith.constant 0 : index
    %231 = vector.load %arg8[%c0_102, %c0_103] : memref<2x128xf32, #tpu.memory_space<vmem>>, vector<2x128xf32>
    tpu.vector_store %arg8[%c0_102, %c0_103], %230 {strides = array<i32>} : memref<2x128xf32, #tpu.memory_space<vmem>>, vector<2x128xf32>,
    %c0_104 = arith.constant 0 : index
    %c0_105 = arith.constant 0 : index
    %232 = vector.load %arg9[%c0_104, %c0_105] : memref<2x128xf32, #tpu.memory_space<vmem>>, vector<2x128xf32>
    tpu.vector_store %arg9[%c0_104, %c0_105], %228 {strides = array<i32>} : memref<2x128xf32, #tpu.memory_space<vmem>>, vector<2x128xf32>,
    %233 = arith.index_cast %c5_i32 : i32 to index
    %c0_106 = arith.constant 0 : index
    %c0_107 = arith.constant 0 : index
    %234 = vector.load %arg10[%233, %c0_106, %c0_107] : memref<8x2x128xf32, #tpu.memory_space<vmem>>, vector<1x2x128xf32>
    %235 = vector.shape_cast %234 : vector<1x2x128xf32> to vector<2x128xf32>
    %236 = vector.shape_cast %230 : vector<2x128xf32> to vector<1x2x128xf32>
    tpu.vector_store %arg10[%233, %c0_106, %c0_107], %236 {strides = array<i32>} : memref<8x2x128xf32, #tpu.memory_space<vmem>>, vector<1x2x128xf32>,
    %c6_i32 = arith.constant 6 : i32
    %c0_108 = arith.constant 0 : index
    %c0_109 = arith.constant 0 : index
    %237 = vector.load %arg8[%c0_108, %c0_109] : memref<2x128xf32, #tpu.memory_space<vmem>>, vector<2x128xf32>
    %c0_110 = arith.constant 0 : index
    %c0_111 = arith.constant 0 : index
    %238 = vector.load %arg9[%c0_110, %c0_111] : memref<2x128xf32, #tpu.memory_space<vmem>>, vector<2x128xf32>
    %c0_112 = arith.constant 0 : index
    %c0_113 = arith.constant 0 : index
    %239 = vector.load %arg2[%c0_112, %c0_113] : memref<128x512xf32, #tpu.memory_space<vmem>>, vector<128x512xf32>
    %cst_114 = arith.constant dense<0.000000e+00> : vector<2x512xf32>
    %240 = tpu.matmul %237, %239, %cst_114 {dimension_numbers = #tpu.dot_dimension_numbers<[1], [0], [0], [1], [0, 0, 1, 1], [], []>} : vector<2x128xf32>, vector<128x512xf32>, vector<2x512xf32> -> vector<2x512xf32>
    %241 = arith.index_cast %c6_i32 : i32 to index
    %c0_115 = arith.constant 0 : index
    %c0_116 = arith.constant 0 : index
    %242 = vector.load %arg1[%241, %c0_115, %c0_116] : memref<8x2x512xf32, #tpu.memory_space<vmem>>, vector<1x2x512xf32>
    %243 = vector.shape_cast %242 : vector<1x2x512xf32> to vector<2x512xf32>
    %244 = arith.addf %240, %243 : vector<2x512xf32>
    %245 = vector.extract_strided_slice %244 {offsets = [0, 0], sizes = [2, 128], strides = [1, 1]} : vector<2x512xf32> to vector<2x128xf32>
    %246 = arith.negf %245 : vector<2x128xf32>
    %247 = math.exp %246 : vector<2x128xf32>
    %cst_117 = arith.constant 1.000000e+00 : f32
    %248 = vector.broadcast %cst_117 : f32 to vector<2x128xf32>
    %249 = arith.addf %248, %247 : vector<2x128xf32>
    %250 = arith.divf %248, %249 : vector<2x128xf32>
    %251 = vector.extract_strided_slice %244 {offsets = [0, 128], sizes = [2, 128], strides = [1, 1]} : vector<2x512xf32> to vector<2x128xf32>
    %252 = arith.negf %251 : vector<2x128xf32>
    %253 = math.exp %252 : vector<2x128xf32>
    %cst_118 = arith.constant 1.000000e+00 : f32
    %254 = vector.broadcast %cst_118 : f32 to vector<2x128xf32>
    %255 = arith.addf %254, %253 : vector<2x128xf32>
    %256 = arith.divf %254, %255 : vector<2x128xf32>
    %257 = vector.extract_strided_slice %244 {offsets = [0, 256], sizes = [2, 128], strides = [1, 1]} : vector<2x512xf32> to vector<2x128xf32>
    %258 = math.tanh %257 : vector<2x128xf32>
    %259 = vector.extract_strided_slice %244 {offsets = [0, 384], sizes = [2, 128], strides = [1, 1]} : vector<2x512xf32> to vector<2x128xf32>
    %260 = arith.negf %259 : vector<2x128xf32>
    %261 = math.exp %260 : vector<2x128xf32>
    %cst_119 = arith.constant 1.000000e+00 : f32
    %262 = vector.broadcast %cst_119 : f32 to vector<2x128xf32>
    %263 = arith.addf %262, %261 : vector<2x128xf32>
    %264 = arith.divf %262, %263 : vector<2x128xf32>
    %265 = arith.mulf %256, %238 : vector<2x128xf32>
    %266 = arith.mulf %250, %258 : vector<2x128xf32>
    %267 = arith.addf %265, %266 : vector<2x128xf32>
    %268 = math.tanh %267 : vector<2x128xf32>
    %269 = arith.mulf %264, %268 : vector<2x128xf32>
    %c0_120 = arith.constant 0 : index
    %c0_121 = arith.constant 0 : index
    %270 = vector.load %arg8[%c0_120, %c0_121] : memref<2x128xf32, #tpu.memory_space<vmem>>, vector<2x128xf32>
    tpu.vector_store %arg8[%c0_120, %c0_121], %269 {strides = array<i32>} : memref<2x128xf32, #tpu.memory_space<vmem>>, vector<2x128xf32>,
    %c0_122 = arith.constant 0 : index
    %c0_123 = arith.constant 0 : index
    %271 = vector.load %arg9[%c0_122, %c0_123] : memref<2x128xf32, #tpu.memory_space<vmem>>, vector<2x128xf32>
    tpu.vector_store %arg9[%c0_122, %c0_123], %267 {strides = array<i32>} : memref<2x128xf32, #tpu.memory_space<vmem>>, vector<2x128xf32>,
    %272 = arith.index_cast %c6_i32 : i32 to index
    %c0_124 = arith.constant 0 : index
    %c0_125 = arith.constant 0 : index
    %273 = vector.load %arg10[%272, %c0_124, %c0_125] : memref<8x2x128xf32, #tpu.memory_space<vmem>>, vector<1x2x128xf32>
    %274 = vector.shape_cast %273 : vector<1x2x128xf32> to vector<2x128xf32>
    %275 = vector.shape_cast %269 : vector<2x128xf32> to vector<1x2x128xf32>
    tpu.vector_store %arg10[%272, %c0_124, %c0_125], %275 {strides = array<i32>} : memref<8x2x128xf32, #tpu.memory_space<vmem>>, vector<1x2x128xf32>,
    %c7_i32 = arith.constant 7 : i32
    %c0_126 = arith.constant 0 : index
    %c0_127 = arith.constant 0 : index
    %276 = vector.load %arg8[%c0_126, %c0_127] : memref<2x128xf32, #tpu.memory_space<vmem>>, vector<2x128xf32>
    %c0_128 = arith.constant 0 : index
    %c0_129 = arith.constant 0 : index
    %277 = vector.load %arg9[%c0_128, %c0_129] : memref<2x128xf32, #tpu.memory_space<vmem>>, vector<2x128xf32>
    %c0_130 = arith.constant 0 : index
    %c0_131 = arith.constant 0 : index
    %278 = vector.load %arg2[%c0_130, %c0_131] : memref<128x512xf32, #tpu.memory_space<vmem>>, vector<128x512xf32>
    %cst_132 = arith.constant dense<0.000000e+00> : vector<2x512xf32>
    %279 = tpu.matmul %276, %278, %cst_132 {dimension_numbers = #tpu.dot_dimension_numbers<[1], [0], [0], [1], [0, 0, 1, 1], [], []>} : vector<2x128xf32>, vector<128x512xf32>, vector<2x512xf32> -> vector<2x512xf32>
    %280 = arith.index_cast %c7_i32 : i32 to index
    %c0_133 = arith.constant 0 : index
    %c0_134 = arith.constant 0 : index
    %281 = vector.load %arg1[%280, %c0_133, %c0_134] : memref<8x2x512xf32, #tpu.memory_space<vmem>>, vector<1x2x512xf32>
    %282 = vector.shape_cast %281 : vector<1x2x512xf32> to vector<2x512xf32>
    %283 = arith.addf %279, %282 : vector<2x512xf32>
    %284 = vector.extract_strided_slice %283 {offsets = [0, 0], sizes = [2, 128], strides = [1, 1]} : vector<2x512xf32> to vector<2x128xf32>
    %285 = arith.negf %284 : vector<2x128xf32>
    %286 = math.exp %285 : vector<2x128xf32>
    %cst_135 = arith.constant 1.000000e+00 : f32
    %287 = vector.broadcast %cst_135 : f32 to vector<2x128xf32>
    %288 = arith.addf %287, %286 : vector<2x128xf32>
    %289 = arith.divf %287, %288 : vector<2x128xf32>
    %290 = vector.extract_strided_slice %283 {offsets = [0, 128], sizes = [2, 128], strides = [1, 1]} : vector<2x512xf32> to vector<2x128xf32>
    %291 = arith.negf %290 : vector<2x128xf32>
    %292 = math.exp %291 : vector<2x128xf32>
    %cst_136 = arith.constant 1.000000e+00 : f32
    %293 = vector.broadcast %cst_136 : f32 to vector<2x128xf32>
    %294 = arith.addf %293, %292 : vector<2x128xf32>
    %295 = arith.divf %293, %294 : vector<2x128xf32>
    %296 = vector.extract_strided_slice %283 {offsets = [0, 256], sizes = [2, 128], strides = [1, 1]} : vector<2x512xf32> to vector<2x128xf32>
    %297 = math.tanh %296 : vector<2x128xf32>
    %298 = vector.extract_strided_slice %283 {offsets = [0, 384], sizes = [2, 128], strides = [1, 1]} : vector<2x512xf32> to vector<2x128xf32>
    %299 = arith.negf %298 : vector<2x128xf32>
    %300 = math.exp %299 : vector<2x128xf32>
    %cst_137 = arith.constant 1.000000e+00 : f32
    %301 = vector.broadcast %cst_137 : f32 to vector<2x128xf32>
    %302 = arith.addf %301, %300 : vector<2x128xf32>
    %303 = arith.divf %301, %302 : vector<2x128xf32>
    %304 = arith.mulf %295, %277 : vector<2x128xf32>
    %305 = arith.mulf %289, %297 : vector<2x128xf32>
    %306 = arith.addf %304, %305 : vector<2x128xf32>
    %307 = math.tanh %306 : vector<2x128xf32>
    %308 = arith.mulf %303, %307 : vector<2x128xf32>
    %c0_138 = arith.constant 0 : index
    %c0_139 = arith.constant 0 : index
    %309 = vector.load %arg8[%c0_138, %c0_139] : memref<2x128xf32, #tpu.memory_space<vmem>>, vector<2x128xf32>
    tpu.vector_store %arg8[%c0_138, %c0_139], %308 {strides = array<i32>} : memref<2x128xf32, #tpu.memory_space<vmem>>, vector<2x128xf32>,
    %c0_140 = arith.constant 0 : index
    %c0_141 = arith.constant 0 : index
    %310 = vector.load %arg9[%c0_140, %c0_141] : memref<2x128xf32, #tpu.memory_space<vmem>>, vector<2x128xf32>
    tpu.vector_store %arg9[%c0_140, %c0_141], %306 {strides = array<i32>} : memref<2x128xf32, #tpu.memory_space<vmem>>, vector<2x128xf32>,
    %311 = arith.index_cast %c7_i32 : i32 to index
    %c0_142 = arith.constant 0 : index
    %c0_143 = arith.constant 0 : index
    %312 = vector.load %arg10[%311, %c0_142, %c0_143] : memref<8x2x128xf32, #tpu.memory_space<vmem>>, vector<1x2x128xf32>
    %313 = vector.shape_cast %312 : vector<1x2x128xf32> to vector<2x128xf32>
    %314 = vector.shape_cast %308 : vector<2x128xf32> to vector<1x2x128xf32>
    tpu.vector_store %arg10[%311, %c0_142, %c0_143], %314 {strides = array<i32>} : memref<8x2x128xf32, #tpu.memory_space<vmem>>, vector<1x2x128xf32>,
    %c8_i32 = arith.constant 8 : i32
    %c0_144 = arith.constant 0 : index
    %c0_145 = arith.constant 0 : index
    %315 = vector.load %arg8[%c0_144, %c0_145] : memref<2x128xf32, #tpu.memory_space<vmem>>, vector<2x128xf32>
    %c0_146 = arith.constant 0 : index
    %c0_147 = arith.constant 0 : index
    %316 = vector.load %arg6[%c0_146, %c0_147] : memref<2x128xf32, #tpu.memory_space<vmem>>, vector<2x128xf32>
    tpu.vector_store %arg6[%c0_146, %c0_147], %315 {strides = array<i32>} : memref<2x128xf32, #tpu.memory_space<vmem>>, vector<2x128xf32>,
    %c0_148 = arith.constant 0 : index
    %c0_149 = arith.constant 0 : index
    %317 = vector.load %arg9[%c0_148, %c0_149] : memref<2x128xf32, #tpu.memory_space<vmem>>, vector<2x128xf32>
    %c0_150 = arith.constant 0 : index
    %c0_151 = arith.constant 0 : index
    %318 = vector.load %arg7[%c0_150, %c0_151] : memref<2x128xf32, #tpu.memory_space<vmem>>, vector<2x128xf32>
    tpu.vector_store %arg7[%c0_150, %c0_151], %317 {strides = array<i32>} : memref<2x128xf32, #tpu.memory_space<vmem>>, vector<2x128xf32>,
    %c0_152 = arith.constant 0 : index
    %c0_153 = arith.constant 0 : index
    %c0_154 = arith.constant 0 : index
    %319 = vector.load %arg10[%c0_152, %c0_153, %c0_154] : memref<8x2x128xf32, #tpu.memory_space<vmem>>, vector<8x2x128xf32>
    %320 = tpu.transpose %319, [1, 0, 2] : vector<8x2x128xf32> -> vector<2x8x128xf32>
    %c0_155 = arith.constant 0 : index
    %c0_156 = arith.constant 0 : index
    %c0_157 = arith.constant 0 : index
    %321 = vector.load %arg5[%c0_155, %c0_156, %c0_157] : memref<2x8x128xf32, #tpu.memory_space<vmem>>, vector<2x8x128xf32>
    tpu.vector_store %arg5[%c0_155, %c0_156, %c0_157], %320 {strides = array<i32>} : memref<2x8x128xf32, #tpu.memory_space<vmem>>, vector<2x8x128xf32>,
    return
  }
  func.func @transform_0(%arg0: i32) -> (i32, i32, i32) {
    %c0_i32 = arith.constant 0 : i32
    %c0_i32_0 = arith.constant 0 : i32
    %c0_i32_1 = arith.constant 0 : i32
    return %arg0, %c0_i32, %c0_i32_0 : i32, i32, i32
  }
  func.func @transform_1(%arg0: i32) -> (i32, i32) {
    %c0_i32 = arith.constant 0 : i32
    %c0_i32_0 = arith.constant 0 : i32
    %c0_i32_1 = arith.constant 0 : i32
    return %c0_i32, %c0_i32_0 : i32, i32
  }
  func.func @transform_2(%arg0: i32) -> (i32, i32) {
    %c0_i32 = arith.constant 0 : i32
    %c0_i32_0 = arith.constant 0 : i32
    %c0_i32_1 = arith.constant 0 : i32
    return %c0_i32, %c0_i32_0 : i32, i32
  }
  func.func @transform_3(%arg0: i32) -> (i32, i32) {
    %c0_i32 = arith.constant 0 : i32
    %c0_i32_0 = arith.constant 0 : i32
    %c0_i32_1 = arith.constant 0 : i32
    return %c0_i32, %c0_i32_0 : i32, i32
  }
  func.func @transform_4(%arg0: i32) -> (i32, i32, i32) {
    %c0_i32 = arith.constant 0 : i32
    %c0_i32_0 = arith.constant 0 : i32
    %c0_i32_1 = arith.constant 0 : i32
    return %c0_i32, %arg0, %c0_i32_0 : i32, i32, i32
  }
  func.func @transform_5(%arg0: i32) -> (i32, i32) {
    %c0_i32 = arith.constant 0 : i32
    %c0_i32_0 = arith.constant 0 : i32
    %c0_i32_1 = arith.constant 0 : i32
    return %c0_i32, %c0_i32_0 : i32, i32
  }
  func.func @transform_6(%arg0: i32) -> (i32, i32) {
    %c0_i32 = arith.constant 0 : i32
    %c0_i32_0 = arith.constant 0 : i32
    %c0_i32_1 = arith.constant 0 : i32
    return %c0_i32, %c0_i32_0 : i32, i32
  }
}

module attributes {stable_mosaic.version = 11 : i64} {
  func.func @_proj0_kernel(%arg0: i32, %arg1: memref<2x8x4xf32, #tpu.memory_space<vmem>>, %arg2: memref<4x12xf32, #tpu.memory_space<vmem>>, %arg3: memref<1x12xf32, #tpu.memory_space<vmem>>, %arg4: memref<12x512xf32, #tpu.memory_space<vmem>>, %arg5: memref<1x512xf32, #tpu.memory_space<vmem>>, %arg6: memref<8x2x512xf32, #tpu.memory_space<vmem>>) attributes {dimension_semantics = [#tpu.dimension_semantics<parallel>], iteration_bounds = array<i64: 1>, scalar_prefetch = 0 : i64, scratch_operands = 0 : i64, tpu.core_type = #tpu.core_type<tc>, window_params = [{transform_indices = @transform_0, window_bounds = array<i64: 2, 8, 4>}, {pipeline_mode = #tpu.pipeline_mode<synchronous>, transform_indices = @transform_1, window_bounds = array<i64: 4, 12>}, {pipeline_mode = #tpu.pipeline_mode<synchronous>, transform_indices = @transform_2, window_bounds = array<i64: 1, 12>}, {pipeline_mode = #tpu.pipeline_mode<synchronous>, transform_indices = @transform_3, window_bounds = array<i64: 12, 512>}, {pipeline_mode = #tpu.pipeline_mode<synchronous>, transform_indices = @transform_4, window_bounds = array<i64: 1, 512>}, {transform_indices = @transform_5, window_bounds = array<i64: 8, 2, 512>}]} {
    %c0 = arith.constant 0 : index
    %c0_0 = arith.constant 0 : index
    %c0_1 = arith.constant 0 : index
    %0 = vector.load %arg1[%c0, %c0_0, %c0_1] : memref<2x8x4xf32, #tpu.memory_space<vmem>>, vector<2x8x4xf32>
    %1 = vector.shape_cast %0 : vector<2x8x4xf32> to vector<16x4xf32>
    %c0_2 = arith.constant 0 : index
    %c0_3 = arith.constant 0 : index
    %2 = vector.load %arg2[%c0_2, %c0_3] : memref<4x12xf32, #tpu.memory_space<vmem>>, vector<4x12xf32>
    %cst = arith.constant dense<0.000000e+00> : vector<16x12xf32>
    %3 = tpu.matmul %1, %2, %cst {dimension_numbers = #tpu.dot_dimension_numbers<[1], [0], [0], [1], [0, 0, 1, 1], [], []>} : vector<16x4xf32>, vector<4x12xf32>, vector<16x12xf32> -> vector<16x12xf32>
    %c0_4 = arith.constant 0 : index
    %c0_5 = arith.constant 0 : index
    %4 = vector.load %arg3[%c0_4, %c0_5] : memref<1x12xf32, #tpu.memory_space<vmem>>, vector<1x12xf32>
    %5 = vector.broadcast %4 : vector<1x12xf32> to vector<16x12xf32>
    %6 = arith.addf %3, %5 : vector<16x12xf32>
    %c0_6 = arith.constant 0 : index
    %c0_7 = arith.constant 0 : index
    %7 = vector.load %arg4[%c0_6, %c0_7] : memref<12x512xf32, #tpu.memory_space<vmem>>, vector<12x512xf32>
    %cst_8 = arith.constant dense<0.000000e+00> : vector<16x512xf32>
    %8 = tpu.matmul %6, %7, %cst_8 {dimension_numbers = #tpu.dot_dimension_numbers<[1], [0], [0], [1], [0, 0, 1, 1], [], []>} : vector<16x12xf32>, vector<12x512xf32>, vector<16x512xf32> -> vector<16x512xf32>
    %c0_9 = arith.constant 0 : index
    %c0_10 = arith.constant 0 : index
    %9 = vector.load %arg5[%c0_9, %c0_10] : memref<1x512xf32, #tpu.memory_space<vmem>>, vector<1x512xf32>
    %10 = vector.broadcast %9 : vector<1x512xf32> to vector<16x512xf32>
    %11 = arith.addf %8, %10 : vector<16x512xf32>
    %12 = vector.shape_cast %11 : vector<16x512xf32> to vector<2x8x512xf32>
    %13 = tpu.transpose %12, [1, 0, 2] : vector<2x8x512xf32> -> vector<8x2x512xf32>
    %c0_11 = arith.constant 0 : index
    %c0_12 = arith.constant 0 : index
    %c0_13 = arith.constant 0 : index
    %14 = vector.load %arg6[%c0_11, %c0_12, %c0_13] : memref<8x2x512xf32, #tpu.memory_space<vmem>>, vector<8x2x512xf32>
    tpu.vector_store %arg6[%c0_11, %c0_12, %c0_13], %13 {strides = array<i32>} : memref<8x2x512xf32, #tpu.memory_space<vmem>>, vector<8x2x512xf32>,
    return
  }
  func.func @transform_0(%arg0: i32) -> (i32, i32, i32) {
    %c0_i32 = arith.constant 0 : i32
    %c0_i32_0 = arith.constant 0 : i32
    %c0_i32_1 = arith.constant 0 : i32
    return %c0_i32, %arg0, %c0_i32_0 : i32, i32, i32
  }
  func.func @transform_1(%arg0: i32) -> (i32, i32) {
    %c0_i32 = arith.constant 0 : i32
    %c0_i32_0 = arith.constant 0 : i32
    %c0_i32_1 = arith.constant 0 : i32
    return %c0_i32, %c0_i32_0 : i32, i32
  }
  func.func @transform_2(%arg0: i32) -> (i32, i32) {
    %c0_i32 = arith.constant 0 : i32
    %c0_i32_0 = arith.constant 0 : i32
    %c0_i32_1 = arith.constant 0 : i32
    return %c0_i32, %c0_i32_0 : i32, i32
  }
  func.func @transform_3(%arg0: i32) -> (i32, i32) {
    %c0_i32 = arith.constant 0 : i32
    %c0_i32_0 = arith.constant 0 : i32
    %c0_i32_1 = arith.constant 0 : i32
    return %c0_i32, %c0_i32_0 : i32, i32
  }
  func.func @transform_4(%arg0: i32) -> (i32, i32) {
    %c0_i32 = arith.constant 0 : i32
    %c0_i32_0 = arith.constant 0 : i32
    %c0_i32_1 = arith.constant 0 : i32
    return %c0_i32, %c0_i32_0 : i32, i32
  }
  func.func @transform_5(%arg0: i32) -> (i32, i32, i32) {
    %c0_i32 = arith.constant 0 : i32
    %c0_i32_0 = arith.constant 0 : i32
    %c0_i32_1 = arith.constant 0 : i32
    return %arg0, %c0_i32, %c0_i32_0 : i32, i32, i32
  }
}

module attributes {stable_mosaic.version = 11 : i64} {
  func.func @_proj_kernel(%arg0: i32, %arg1: memref<2x8x128xf32, #tpu.memory_space<vmem>>, %arg2: memref<128x512xf32, #tpu.memory_space<vmem>>, %arg3: memref<1x512xf32, #tpu.memory_space<vmem>>, %arg4: memref<8x2x512xf32, #tpu.memory_space<vmem>>) attributes {dimension_semantics = [#tpu.dimension_semantics<parallel>], iteration_bounds = array<i64: 1>, scalar_prefetch = 0 : i64, scratch_operands = 0 : i64, tpu.core_type = #tpu.core_type<tc>, window_params = [{transform_indices = @transform_0, window_bounds = array<i64: 2, 8, 128>}, {pipeline_mode = #tpu.pipeline_mode<synchronous>, transform_indices = @transform_1, window_bounds = array<i64: 128, 512>}, {pipeline_mode = #tpu.pipeline_mode<synchronous>, transform_indices = @transform_2, window_bounds = array<i64: 1, 512>}, {transform_indices = @transform_3, window_bounds = array<i64: 8, 2, 512>}]} {
    %c0 = arith.constant 0 : index
    %c0_0 = arith.constant 0 : index
    %c0_1 = arith.constant 0 : index
    %0 = vector.load %arg1[%c0, %c0_0, %c0_1] : memref<2x8x128xf32, #tpu.memory_space<vmem>>, vector<2x8x128xf32>
    %1 = vector.shape_cast %0 : vector<2x8x128xf32> to vector<16x128xf32>
    %c0_2 = arith.constant 0 : index
    %c0_3 = arith.constant 0 : index
    %2 = vector.load %arg2[%c0_2, %c0_3] : memref<128x512xf32, #tpu.memory_space<vmem>>, vector<128x512xf32>
    %cst = arith.constant dense<0.000000e+00> : vector<16x512xf32>
    %3 = tpu.matmul %1, %2, %cst {dimension_numbers = #tpu.dot_dimension_numbers<[1], [0], [0], [1], [0, 0, 1, 1], [], []>} : vector<16x128xf32>, vector<128x512xf32>, vector<16x512xf32> -> vector<16x512xf32>
    %c0_4 = arith.constant 0 : index
    %c0_5 = arith.constant 0 : index
    %4 = vector.load %arg3[%c0_4, %c0_5] : memref<1x512xf32, #tpu.memory_space<vmem>>, vector<1x512xf32>
    %5 = vector.broadcast %4 : vector<1x512xf32> to vector<16x512xf32>
    %6 = arith.addf %3, %5 : vector<16x512xf32>
    %7 = vector.shape_cast %6 : vector<16x512xf32> to vector<2x8x512xf32>
    %8 = tpu.transpose %7, [1, 0, 2] : vector<2x8x512xf32> -> vector<8x2x512xf32>
    %c0_6 = arith.constant 0 : index
    %c0_7 = arith.constant 0 : index
    %c0_8 = arith.constant 0 : index
    %9 = vector.load %arg4[%c0_6, %c0_7, %c0_8] : memref<8x2x512xf32, #tpu.memory_space<vmem>>, vector<8x2x512xf32>
    tpu.vector_store %arg4[%c0_6, %c0_7, %c0_8], %8 {strides = array<i32>} : memref<8x2x512xf32, #tpu.memory_space<vmem>>, vector<8x2x512xf32>,
    return
  }
  func.func @transform_0(%arg0: i32) -> (i32, i32, i32) {
    %c0_i32 = arith.constant 0 : i32
    %c0_i32_0 = arith.constant 0 : i32
    %c0_i32_1 = arith.constant 0 : i32
    return %c0_i32, %arg0, %c0_i32_0 : i32, i32, i32
  }
  func.func @transform_1(%arg0: i32) -> (i32, i32) {
    %c0_i32 = arith.constant 0 : i32
    %c0_i32_0 = arith.constant 0 : i32
    %c0_i32_1 = arith.constant 0 : i32
    return %c0_i32, %c0_i32_0 : i32, i32
  }
  func.func @transform_2(%arg0: i32) -> (i32, i32) {
    %c0_i32 = arith.constant 0 : i32
    %c0_i32_0 = arith.constant 0 : i32
    %c0_i32_1 = arith.constant 0 : i32
    return %c0_i32, %c0_i32_0 : i32, i32
  }
  func.func @transform_3(%arg0: i32) -> (i32, i32, i32) {
    %c0_i32 = arith.constant 0 : i32
    %c0_i32_0 = arith.constant 0 : i32
    %c0_i32_1 = arith.constant 0 : i32
    return %arg0, %c0_i32, %c0_i32_0 : i32, i32, i32
  }
}

module attributes {stable_mosaic.version = 11 : i64} {
  func.func @_lstm_rec_kernel(%arg0: i32, %arg1: memref<8x2x512xf32, #tpu.memory_space<vmem>>, %arg2: memref<128x512xf32, #tpu.memory_space<vmem>>, %arg3: memref<2x128xf32, #tpu.memory_space<vmem>>, %arg4: memref<2x128xf32, #tpu.memory_space<vmem>>, %arg5: memref<2x8x128xf32, #tpu.memory_space<vmem>>, %arg6: memref<2x128xf32, #tpu.memory_space<vmem>>, %arg7: memref<2x128xf32, #tpu.memory_space<vmem>>, %arg8: memref<2x128xf32, #tpu.memory_space<vmem>>, %arg9: memref<2x128xf32, #tpu.memory_space<vmem>>, %arg10: memref<8x2x128xf32, #tpu.memory_space<vmem>>) attributes {dimension_semantics = [#tpu.dimension_semantics<arbitrary>], iteration_bounds = array<i64: 1>, scalar_prefetch = 0 : i64, scratch_operands = 3 : i64, tpu.core_type = #tpu.core_type<tc>, window_params = [{transform_indices = @transform_0, window_bounds = array<i64: 8, 2, 512>}, {pipeline_mode = #tpu.pipeline_mode<synchronous>, transform_indices = @transform_1, window_bounds = array<i64: 128, 512>}, {pipeline_mode = #tpu.pipeline_mode<synchronous>, transform_indices = @transform_2, window_bounds = array<i64: 2, 128>}, {pipeline_mode = #tpu.pipeline_mode<synchronous>, transform_indices = @transform_3, window_bounds = array<i64: 2, 128>}, {transform_indices = @transform_4, window_bounds = array<i64: 2, 8, 128>}, {pipeline_mode = #tpu.pipeline_mode<synchronous>, transform_indices = @transform_5, window_bounds = array<i64: 2, 128>}, {pipeline_mode = #tpu.pipeline_mode<synchronous>, transform_indices = @transform_6, window_bounds = array<i64: 2, 128>}]} {
    %c0_i32 = arith.constant 0 : i32
    %0 = arith.cmpi eq, %arg0, %c0_i32 : i32
    %1 = arith.extui %0 : i1 to i32
    %c0_i32_0 = arith.constant 0 : i32
    %2 = arith.cmpi ne, %1, %c0_i32_0 : i32
    scf.if %2 {
      %c0_158 = arith.constant 0 : index
      %c0_159 = arith.constant 0 : index
      %322 = vector.load %arg3[%c0_158, %c0_159] : memref<2x128xf32, #tpu.memory_space<vmem>>, vector<2x128xf32>
      %c0_160 = arith.constant 0 : index
      %c0_161 = arith.constant 0 : index
      %323 = vector.load %arg8[%c0_160, %c0_161] : memref<2x128xf32, #tpu.memory_space<vmem>>, vector<2x128xf32>
      tpu.vector_store %arg8[%c0_160, %c0_161], %322 {strides = array<i32>} : memref<2x128xf32, #tpu.memory_space<vmem>>, vector<2x128xf32>,
      %c0_162 = arith.constant 0 : index
      %c0_163 = arith.constant 0 : index
      %324 = vector.load %arg4[%c0_162, %c0_163] : memref<2x128xf32, #tpu.memory_space<vmem>>, vector<2x128xf32>
      %c0_164 = arith.constant 0 : index
      %c0_165 = arith.constant 0 : index
      %325 = vector.load %arg9[%c0_164, %c0_165] : memref<2x128xf32, #tpu.memory_space<vmem>>, vector<2x128xf32>
      tpu.vector_store %arg9[%c0_164, %c0_165], %324 {strides = array<i32>} : memref<2x128xf32, #tpu.memory_space<vmem>>, vector<2x128xf32>,
    } else {
    }
    %c0_i32_1 = arith.constant 0 : i32
    %c0 = arith.constant 0 : index
    %c0_2 = arith.constant 0 : index
    %3 = vector.load %arg8[%c0, %c0_2] : memref<2x128xf32, #tpu.memory_space<vmem>>, vector<2x128xf32>
    %c0_3 = arith.constant 0 : index
    %c0_4 = arith.constant 0 : index
    %4 = vector.load %arg9[%c0_3, %c0_4] : memref<2x128xf32, #tpu.memory_space<vmem>>, vector<2x128xf32>
    %c0_5 = arith.constant 0 : index
    %c0_6 = arith.constant 0 : index
    %5 = vector.load %arg2[%c0_5, %c0_6] : memref<128x512xf32, #tpu.memory_space<vmem>>, vector<128x512xf32>
    %cst = arith.constant dense<0.000000e+00> : vector<2x512xf32>
    %6 = tpu.matmul %3, %5, %cst {dimension_numbers = #tpu.dot_dimension_numbers<[1], [0], [0], [1], [0, 0, 1, 1], [], []>} : vector<2x128xf32>, vector<128x512xf32>, vector<2x512xf32> -> vector<2x512xf32>
    %7 = arith.index_cast %c0_i32_1 : i32 to index
    %c0_7 = arith.constant 0 : index
    %c0_8 = arith.constant 0 : index
    %8 = vector.load %arg1[%7, %c0_7, %c0_8] : memref<8x2x512xf32, #tpu.memory_space<vmem>>, vector<1x2x512xf32>
    %9 = vector.shape_cast %8 : vector<1x2x512xf32> to vector<2x512xf32>
    %10 = arith.addf %6, %9 : vector<2x512xf32>
    %11 = vector.extract_strided_slice %10 {offsets = [0, 0], sizes = [2, 128], strides = [1, 1]} : vector<2x512xf32> to vector<2x128xf32>
    %12 = arith.negf %11 : vector<2x128xf32>
    %13 = math.exp %12 : vector<2x128xf32>
    %cst_9 = arith.constant 1.000000e+00 : f32
    %14 = vector.broadcast %cst_9 : f32 to vector<2x128xf32>
    %15 = arith.addf %14, %13 : vector<2x128xf32>
    %16 = arith.divf %14, %15 : vector<2x128xf32>
    %17 = vector.extract_strided_slice %10 {offsets = [0, 128], sizes = [2, 128], strides = [1, 1]} : vector<2x512xf32> to vector<2x128xf32>
    %18 = arith.negf %17 : vector<2x128xf32>
    %19 = math.exp %18 : vector<2x128xf32>
    %cst_10 = arith.constant 1.000000e+00 : f32
    %20 = vector.broadcast %cst_10 : f32 to vector<2x128xf32>
    %21 = arith.addf %20, %19 : vector<2x128xf32>
    %22 = arith.divf %20, %21 : vector<2x128xf32>
    %23 = vector.extract_strided_slice %10 {offsets = [0, 256], sizes = [2, 128], strides = [1, 1]} : vector<2x512xf32> to vector<2x128xf32>
    %24 = math.tanh %23 : vector<2x128xf32>
    %25 = vector.extract_strided_slice %10 {offsets = [0, 384], sizes = [2, 128], strides = [1, 1]} : vector<2x512xf32> to vector<2x128xf32>
    %26 = arith.negf %25 : vector<2x128xf32>
    %27 = math.exp %26 : vector<2x128xf32>
    %cst_11 = arith.constant 1.000000e+00 : f32
    %28 = vector.broadcast %cst_11 : f32 to vector<2x128xf32>
    %29 = arith.addf %28, %27 : vector<2x128xf32>
    %30 = arith.divf %28, %29 : vector<2x128xf32>
    %31 = arith.mulf %22, %4 : vector<2x128xf32>
    %32 = arith.mulf %16, %24 : vector<2x128xf32>
    %33 = arith.addf %31, %32 : vector<2x128xf32>
    %34 = math.tanh %33 : vector<2x128xf32>
    %35 = arith.mulf %30, %34 : vector<2x128xf32>
    %c0_12 = arith.constant 0 : index
    %c0_13 = arith.constant 0 : index
    %36 = vector.load %arg8[%c0_12, %c0_13] : memref<2x128xf32, #tpu.memory_space<vmem>>, vector<2x128xf32>
    tpu.vector_store %arg8[%c0_12, %c0_13], %35 {strides = array<i32>} : memref<2x128xf32, #tpu.memory_space<vmem>>, vector<2x128xf32>,
    %c0_14 = arith.constant 0 : index
    %c0_15 = arith.constant 0 : index
    %37 = vector.load %arg9[%c0_14, %c0_15] : memref<2x128xf32, #tpu.memory_space<vmem>>, vector<2x128xf32>
    tpu.vector_store %arg9[%c0_14, %c0_15], %33 {strides = array<i32>} : memref<2x128xf32, #tpu.memory_space<vmem>>, vector<2x128xf32>,
    %38 = arith.index_cast %c0_i32_1 : i32 to index
    %c0_16 = arith.constant 0 : index
    %c0_17 = arith.constant 0 : index
    %39 = vector.load %arg10[%38, %c0_16, %c0_17] : memref<8x2x128xf32, #tpu.memory_space<vmem>>, vector<1x2x128xf32>
    %40 = vector.shape_cast %39 : vector<1x2x128xf32> to vector<2x128xf32>
    %41 = vector.shape_cast %35 : vector<2x128xf32> to vector<1x2x128xf32>
    tpu.vector_store %arg10[%38, %c0_16, %c0_17], %41 {strides = array<i32>} : memref<8x2x128xf32, #tpu.memory_space<vmem>>, vector<1x2x128xf32>,
    %c1_i32 = arith.constant 1 : i32
    %c0_18 = arith.constant 0 : index
    %c0_19 = arith.constant 0 : index
    %42 = vector.load %arg8[%c0_18, %c0_19] : memref<2x128xf32, #tpu.memory_space<vmem>>, vector<2x128xf32>
    %c0_20 = arith.constant 0 : index
    %c0_21 = arith.constant 0 : index
    %43 = vector.load %arg9[%c0_20, %c0_21] : memref<2x128xf32, #tpu.memory_space<vmem>>, vector<2x128xf32>
    %c0_22 = arith.constant 0 : index
    %c0_23 = arith.constant 0 : index
    %44 = vector.load %arg2[%c0_22, %c0_23] : memref<128x512xf32, #tpu.memory_space<vmem>>, vector<128x512xf32>
    %cst_24 = arith.constant dense<0.000000e+00> : vector<2x512xf32>
    %45 = tpu.matmul %42, %44, %cst_24 {dimension_numbers = #tpu.dot_dimension_numbers<[1], [0], [0], [1], [0, 0, 1, 1], [], []>} : vector<2x128xf32>, vector<128x512xf32>, vector<2x512xf32> -> vector<2x512xf32>
    %46 = arith.index_cast %c1_i32 : i32 to index
    %c0_25 = arith.constant 0 : index
    %c0_26 = arith.constant 0 : index
    %47 = vector.load %arg1[%46, %c0_25, %c0_26] : memref<8x2x512xf32, #tpu.memory_space<vmem>>, vector<1x2x512xf32>
    %48 = vector.shape_cast %47 : vector<1x2x512xf32> to vector<2x512xf32>
    %49 = arith.addf %45, %48 : vector<2x512xf32>
    %50 = vector.extract_strided_slice %49 {offsets = [0, 0], sizes = [2, 128], strides = [1, 1]} : vector<2x512xf32> to vector<2x128xf32>
    %51 = arith.negf %50 : vector<2x128xf32>
    %52 = math.exp %51 : vector<2x128xf32>
    %cst_27 = arith.constant 1.000000e+00 : f32
    %53 = vector.broadcast %cst_27 : f32 to vector<2x128xf32>
    %54 = arith.addf %53, %52 : vector<2x128xf32>
    %55 = arith.divf %53, %54 : vector<2x128xf32>
    %56 = vector.extract_strided_slice %49 {offsets = [0, 128], sizes = [2, 128], strides = [1, 1]} : vector<2x512xf32> to vector<2x128xf32>
    %57 = arith.negf %56 : vector<2x128xf32>
    %58 = math.exp %57 : vector<2x128xf32>
    %cst_28 = arith.constant 1.000000e+00 : f32
    %59 = vector.broadcast %cst_28 : f32 to vector<2x128xf32>
    %60 = arith.addf %59, %58 : vector<2x128xf32>
    %61 = arith.divf %59, %60 : vector<2x128xf32>
    %62 = vector.extract_strided_slice %49 {offsets = [0, 256], sizes = [2, 128], strides = [1, 1]} : vector<2x512xf32> to vector<2x128xf32>
    %63 = math.tanh %62 : vector<2x128xf32>
    %64 = vector.extract_strided_slice %49 {offsets = [0, 384], sizes = [2, 128], strides = [1, 1]} : vector<2x512xf32> to vector<2x128xf32>
    %65 = arith.negf %64 : vector<2x128xf32>
    %66 = math.exp %65 : vector<2x128xf32>
    %cst_29 = arith.constant 1.000000e+00 : f32
    %67 = vector.broadcast %cst_29 : f32 to vector<2x128xf32>
    %68 = arith.addf %67, %66 : vector<2x128xf32>
    %69 = arith.divf %67, %68 : vector<2x128xf32>
    %70 = arith.mulf %61, %43 : vector<2x128xf32>
    %71 = arith.mulf %55, %63 : vector<2x128xf32>
    %72 = arith.addf %70, %71 : vector<2x128xf32>
    %73 = math.tanh %72 : vector<2x128xf32>
    %74 = arith.mulf %69, %73 : vector<2x128xf32>
    %c0_30 = arith.constant 0 : index
    %c0_31 = arith.constant 0 : index
    %75 = vector.load %arg8[%c0_30, %c0_31] : memref<2x128xf32, #tpu.memory_space<vmem>>, vector<2x128xf32>
    tpu.vector_store %arg8[%c0_30, %c0_31], %74 {strides = array<i32>} : memref<2x128xf32, #tpu.memory_space<vmem>>, vector<2x128xf32>,
    %c0_32 = arith.constant 0 : index
    %c0_33 = arith.constant 0 : index
    %76 = vector.load %arg9[%c0_32, %c0_33] : memref<2x128xf32, #tpu.memory_space<vmem>>, vector<2x128xf32>
    tpu.vector_store %arg9[%c0_32, %c0_33], %72 {strides = array<i32>} : memref<2x128xf32, #tpu.memory_space<vmem>>, vector<2x128xf32>,
    %77 = arith.index_cast %c1_i32 : i32 to index
    %c0_34 = arith.constant 0 : index
    %c0_35 = arith.constant 0 : index
    %78 = vector.load %arg10[%77, %c0_34, %c0_35] : memref<8x2x128xf32, #tpu.memory_space<vmem>>, vector<1x2x128xf32>
    %79 = vector.shape_cast %78 : vector<1x2x128xf32> to vector<2x128xf32>
    %80 = vector.shape_cast %74 : vector<2x128xf32> to vector<1x2x128xf32>
    tpu.vector_store %arg10[%77, %c0_34, %c0_35], %80 {strides = array<i32>} : memref<8x2x128xf32, #tpu.memory_space<vmem>>, vector<1x2x128xf32>,
    %c2_i32 = arith.constant 2 : i32
    %c0_36 = arith.constant 0 : index
    %c0_37 = arith.constant 0 : index
    %81 = vector.load %arg8[%c0_36, %c0_37] : memref<2x128xf32, #tpu.memory_space<vmem>>, vector<2x128xf32>
    %c0_38 = arith.constant 0 : index
    %c0_39 = arith.constant 0 : index
    %82 = vector.load %arg9[%c0_38, %c0_39] : memref<2x128xf32, #tpu.memory_space<vmem>>, vector<2x128xf32>
    %c0_40 = arith.constant 0 : index
    %c0_41 = arith.constant 0 : index
    %83 = vector.load %arg2[%c0_40, %c0_41] : memref<128x512xf32, #tpu.memory_space<vmem>>, vector<128x512xf32>
    %cst_42 = arith.constant dense<0.000000e+00> : vector<2x512xf32>
    %84 = tpu.matmul %81, %83, %cst_42 {dimension_numbers = #tpu.dot_dimension_numbers<[1], [0], [0], [1], [0, 0, 1, 1], [], []>} : vector<2x128xf32>, vector<128x512xf32>, vector<2x512xf32> -> vector<2x512xf32>
    %85 = arith.index_cast %c2_i32 : i32 to index
    %c0_43 = arith.constant 0 : index
    %c0_44 = arith.constant 0 : index
    %86 = vector.load %arg1[%85, %c0_43, %c0_44] : memref<8x2x512xf32, #tpu.memory_space<vmem>>, vector<1x2x512xf32>
    %87 = vector.shape_cast %86 : vector<1x2x512xf32> to vector<2x512xf32>
    %88 = arith.addf %84, %87 : vector<2x512xf32>
    %89 = vector.extract_strided_slice %88 {offsets = [0, 0], sizes = [2, 128], strides = [1, 1]} : vector<2x512xf32> to vector<2x128xf32>
    %90 = arith.negf %89 : vector<2x128xf32>
    %91 = math.exp %90 : vector<2x128xf32>
    %cst_45 = arith.constant 1.000000e+00 : f32
    %92 = vector.broadcast %cst_45 : f32 to vector<2x128xf32>
    %93 = arith.addf %92, %91 : vector<2x128xf32>
    %94 = arith.divf %92, %93 : vector<2x128xf32>
    %95 = vector.extract_strided_slice %88 {offsets = [0, 128], sizes = [2, 128], strides = [1, 1]} : vector<2x512xf32> to vector<2x128xf32>
    %96 = arith.negf %95 : vector<2x128xf32>
    %97 = math.exp %96 : vector<2x128xf32>
    %cst_46 = arith.constant 1.000000e+00 : f32
    %98 = vector.broadcast %cst_46 : f32 to vector<2x128xf32>
    %99 = arith.addf %98, %97 : vector<2x128xf32>
    %100 = arith.divf %98, %99 : vector<2x128xf32>
    %101 = vector.extract_strided_slice %88 {offsets = [0, 256], sizes = [2, 128], strides = [1, 1]} : vector<2x512xf32> to vector<2x128xf32>
    %102 = math.tanh %101 : vector<2x128xf32>
    %103 = vector.extract_strided_slice %88 {offsets = [0, 384], sizes = [2, 128], strides = [1, 1]} : vector<2x512xf32> to vector<2x128xf32>
    %104 = arith.negf %103 : vector<2x128xf32>
    %105 = math.exp %104 : vector<2x128xf32>
    %cst_47 = arith.constant 1.000000e+00 : f32
    %106 = vector.broadcast %cst_47 : f32 to vector<2x128xf32>
    %107 = arith.addf %106, %105 : vector<2x128xf32>
    %108 = arith.divf %106, %107 : vector<2x128xf32>
    %109 = arith.mulf %100, %82 : vector<2x128xf32>
    %110 = arith.mulf %94, %102 : vector<2x128xf32>
    %111 = arith.addf %109, %110 : vector<2x128xf32>
    %112 = math.tanh %111 : vector<2x128xf32>
    %113 = arith.mulf %108, %112 : vector<2x128xf32>
    %c0_48 = arith.constant 0 : index
    %c0_49 = arith.constant 0 : index
    %114 = vector.load %arg8[%c0_48, %c0_49] : memref<2x128xf32, #tpu.memory_space<vmem>>, vector<2x128xf32>
    tpu.vector_store %arg8[%c0_48, %c0_49], %113 {strides = array<i32>} : memref<2x128xf32, #tpu.memory_space<vmem>>, vector<2x128xf32>,
    %c0_50 = arith.constant 0 : index
    %c0_51 = arith.constant 0 : index
    %115 = vector.load %arg9[%c0_50, %c0_51] : memref<2x128xf32, #tpu.memory_space<vmem>>, vector<2x128xf32>
    tpu.vector_store %arg9[%c0_50, %c0_51], %111 {strides = array<i32>} : memref<2x128xf32, #tpu.memory_space<vmem>>, vector<2x128xf32>,
    %116 = arith.index_cast %c2_i32 : i32 to index
    %c0_52 = arith.constant 0 : index
    %c0_53 = arith.constant 0 : index
    %117 = vector.load %arg10[%116, %c0_52, %c0_53] : memref<8x2x128xf32, #tpu.memory_space<vmem>>, vector<1x2x128xf32>
    %118 = vector.shape_cast %117 : vector<1x2x128xf32> to vector<2x128xf32>
    %119 = vector.shape_cast %113 : vector<2x128xf32> to vector<1x2x128xf32>
    tpu.vector_store %arg10[%116, %c0_52, %c0_53], %119 {strides = array<i32>} : memref<8x2x128xf32, #tpu.memory_space<vmem>>, vector<1x2x128xf32>,
    %c3_i32 = arith.constant 3 : i32
    %c0_54 = arith.constant 0 : index
    %c0_55 = arith.constant 0 : index
    %120 = vector.load %arg8[%c0_54, %c0_55] : memref<2x128xf32, #tpu.memory_space<vmem>>, vector<2x128xf32>
    %c0_56 = arith.constant 0 : index
    %c0_57 = arith.constant 0 : index
    %121 = vector.load %arg9[%c0_56, %c0_57] : memref<2x128xf32, #tpu.memory_space<vmem>>, vector<2x128xf32>
    %c0_58 = arith.constant 0 : index
    %c0_59 = arith.constant 0 : index
    %122 = vector.load %arg2[%c0_58, %c0_59] : memref<128x512xf32, #tpu.memory_space<vmem>>, vector<128x512xf32>
    %cst_60 = arith.constant dense<0.000000e+00> : vector<2x512xf32>
    %123 = tpu.matmul %120, %122, %cst_60 {dimension_numbers = #tpu.dot_dimension_numbers<[1], [0], [0], [1], [0, 0, 1, 1], [], []>} : vector<2x128xf32>, vector<128x512xf32>, vector<2x512xf32> -> vector<2x512xf32>
    %124 = arith.index_cast %c3_i32 : i32 to index
    %c0_61 = arith.constant 0 : index
    %c0_62 = arith.constant 0 : index
    %125 = vector.load %arg1[%124, %c0_61, %c0_62] : memref<8x2x512xf32, #tpu.memory_space<vmem>>, vector<1x2x512xf32>
    %126 = vector.shape_cast %125 : vector<1x2x512xf32> to vector<2x512xf32>
    %127 = arith.addf %123, %126 : vector<2x512xf32>
    %128 = vector.extract_strided_slice %127 {offsets = [0, 0], sizes = [2, 128], strides = [1, 1]} : vector<2x512xf32> to vector<2x128xf32>
    %129 = arith.negf %128 : vector<2x128xf32>
    %130 = math.exp %129 : vector<2x128xf32>
    %cst_63 = arith.constant 1.000000e+00 : f32
    %131 = vector.broadcast %cst_63 : f32 to vector<2x128xf32>
    %132 = arith.addf %131, %130 : vector<2x128xf32>
    %133 = arith.divf %131, %132 : vector<2x128xf32>
    %134 = vector.extract_strided_slice %127 {offsets = [0, 128], sizes = [2, 128], strides = [1, 1]} : vector<2x512xf32> to vector<2x128xf32>
    %135 = arith.negf %134 : vector<2x128xf32>
    %136 = math.exp %135 : vector<2x128xf32>
    %cst_64 = arith.constant 1.000000e+00 : f32
    %137 = vector.broadcast %cst_64 : f32 to vector<2x128xf32>
    %138 = arith.addf %137, %136 : vector<2x128xf32>
    %139 = arith.divf %137, %138 : vector<2x128xf32>
    %140 = vector.extract_strided_slice %127 {offsets = [0, 256], sizes = [2, 128], strides = [1, 1]} : vector<2x512xf32> to vector<2x128xf32>
    %141 = math.tanh %140 : vector<2x128xf32>
    %142 = vector.extract_strided_slice %127 {offsets = [0, 384], sizes = [2, 128], strides = [1, 1]} : vector<2x512xf32> to vector<2x128xf32>
    %143 = arith.negf %142 : vector<2x128xf32>
    %144 = math.exp %143 : vector<2x128xf32>
    %cst_65 = arith.constant 1.000000e+00 : f32
    %145 = vector.broadcast %cst_65 : f32 to vector<2x128xf32>
    %146 = arith.addf %145, %144 : vector<2x128xf32>
    %147 = arith.divf %145, %146 : vector<2x128xf32>
    %148 = arith.mulf %139, %121 : vector<2x128xf32>
    %149 = arith.mulf %133, %141 : vector<2x128xf32>
    %150 = arith.addf %148, %149 : vector<2x128xf32>
    %151 = math.tanh %150 : vector<2x128xf32>
    %152 = arith.mulf %147, %151 : vector<2x128xf32>
    %c0_66 = arith.constant 0 : index
    %c0_67 = arith.constant 0 : index
    %153 = vector.load %arg8[%c0_66, %c0_67] : memref<2x128xf32, #tpu.memory_space<vmem>>, vector<2x128xf32>
    tpu.vector_store %arg8[%c0_66, %c0_67], %152 {strides = array<i32>} : memref<2x128xf32, #tpu.memory_space<vmem>>, vector<2x128xf32>,
    %c0_68 = arith.constant 0 : index
    %c0_69 = arith.constant 0 : index
    %154 = vector.load %arg9[%c0_68, %c0_69] : memref<2x128xf32, #tpu.memory_space<vmem>>, vector<2x128xf32>
    tpu.vector_store %arg9[%c0_68, %c0_69], %150 {strides = array<i32>} : memref<2x128xf32, #tpu.memory_space<vmem>>, vector<2x128xf32>,
    %155 = arith.index_cast %c3_i32 : i32 to index
    %c0_70 = arith.constant 0 : index
    %c0_71 = arith.constant 0 : index
    %156 = vector.load %arg10[%155, %c0_70, %c0_71] : memref<8x2x128xf32, #tpu.memory_space<vmem>>, vector<1x2x128xf32>
    %157 = vector.shape_cast %156 : vector<1x2x128xf32> to vector<2x128xf32>
    %158 = vector.shape_cast %152 : vector<2x128xf32> to vector<1x2x128xf32>
    tpu.vector_store %arg10[%155, %c0_70, %c0_71], %158 {strides = array<i32>} : memref<8x2x128xf32, #tpu.memory_space<vmem>>, vector<1x2x128xf32>,
    %c4_i32 = arith.constant 4 : i32
    %c0_72 = arith.constant 0 : index
    %c0_73 = arith.constant 0 : index
    %159 = vector.load %arg8[%c0_72, %c0_73] : memref<2x128xf32, #tpu.memory_space<vmem>>, vector<2x128xf32>
    %c0_74 = arith.constant 0 : index
    %c0_75 = arith.constant 0 : index
    %160 = vector.load %arg9[%c0_74, %c0_75] : memref<2x128xf32, #tpu.memory_space<vmem>>, vector<2x128xf32>
    %c0_76 = arith.constant 0 : index
    %c0_77 = arith.constant 0 : index
    %161 = vector.load %arg2[%c0_76, %c0_77] : memref<128x512xf32, #tpu.memory_space<vmem>>, vector<128x512xf32>
    %cst_78 = arith.constant dense<0.000000e+00> : vector<2x512xf32>
    %162 = tpu.matmul %159, %161, %cst_78 {dimension_numbers = #tpu.dot_dimension_numbers<[1], [0], [0], [1], [0, 0, 1, 1], [], []>} : vector<2x128xf32>, vector<128x512xf32>, vector<2x512xf32> -> vector<2x512xf32>
    %163 = arith.index_cast %c4_i32 : i32 to index
    %c0_79 = arith.constant 0 : index
    %c0_80 = arith.constant 0 : index
    %164 = vector.load %arg1[%163, %c0_79, %c0_80] : memref<8x2x512xf32, #tpu.memory_space<vmem>>, vector<1x2x512xf32>
    %165 = vector.shape_cast %164 : vector<1x2x512xf32> to vector<2x512xf32>
    %166 = arith.addf %162, %165 : vector<2x512xf32>
    %167 = vector.extract_strided_slice %166 {offsets = [0, 0], sizes = [2, 128], strides = [1, 1]} : vector<2x512xf32> to vector<2x128xf32>
    %168 = arith.negf %167 : vector<2x128xf32>
    %169 = math.exp %168 : vector<2x128xf32>
    %cst_81 = arith.constant 1.000000e+00 : f32
    %170 = vector.broadcast %cst_81 : f32 to vector<2x128xf32>
    %171 = arith.addf %170, %169 : vector<2x128xf32>
    %172 = arith.divf %170, %171 : vector<2x128xf32>
    %173 = vector.extract_strided_slice %166 {offsets = [0, 128], sizes = [2, 128], strides = [1, 1]} : vector<2x512xf32> to vector<2x128xf32>
    %174 = arith.negf %173 : vector<2x128xf32>
    %175 = math.exp %174 : vector<2x128xf32>
    %cst_82 = arith.constant 1.000000e+00 : f32
    %176 = vector.broadcast %cst_82 : f32 to vector<2x128xf32>
    %177 = arith.addf %176, %175 : vector<2x128xf32>
    %178 = arith.divf %176, %177 : vector<2x128xf32>
    %179 = vector.extract_strided_slice %166 {offsets = [0, 256], sizes = [2, 128], strides = [1, 1]} : vector<2x512xf32> to vector<2x128xf32>
    %180 = math.tanh %179 : vector<2x128xf32>
    %181 = vector.extract_strided_slice %166 {offsets = [0, 384], sizes = [2, 128], strides = [1, 1]} : vector<2x512xf32> to vector<2x128xf32>
    %182 = arith.negf %181 : vector<2x128xf32>
    %183 = math.exp %182 : vector<2x128xf32>
    %cst_83 = arith.constant 1.000000e+00 : f32
    %184 = vector.broadcast %cst_83 : f32 to vector<2x128xf32>
    %185 = arith.addf %184, %183 : vector<2x128xf32>
    %186 = arith.divf %184, %185 : vector<2x128xf32>
    %187 = arith.mulf %178, %160 : vector<2x128xf32>
    %188 = arith.mulf %172, %180 : vector<2x128xf32>
    %189 = arith.addf %187, %188 : vector<2x128xf32>
    %190 = math.tanh %189 : vector<2x128xf32>
    %191 = arith.mulf %186, %190 : vector<2x128xf32>
    %c0_84 = arith.constant 0 : index
    %c0_85 = arith.constant 0 : index
    %192 = vector.load %arg8[%c0_84, %c0_85] : memref<2x128xf32, #tpu.memory_space<vmem>>, vector<2x128xf32>
    tpu.vector_store %arg8[%c0_84, %c0_85], %191 {strides = array<i32>} : memref<2x128xf32, #tpu.memory_space<vmem>>, vector<2x128xf32>,
    %c0_86 = arith.constant 0 : index
    %c0_87 = arith.constant 0 : index
    %193 = vector.load %arg9[%c0_86, %c0_87] : memref<2x128xf32, #tpu.memory_space<vmem>>, vector<2x128xf32>
    tpu.vector_store %arg9[%c0_86, %c0_87], %189 {strides = array<i32>} : memref<2x128xf32, #tpu.memory_space<vmem>>, vector<2x128xf32>,
    %194 = arith.index_cast %c4_i32 : i32 to index
    %c0_88 = arith.constant 0 : index
    %c0_89 = arith.constant 0 : index
    %195 = vector.load %arg10[%194, %c0_88, %c0_89] : memref<8x2x128xf32, #tpu.memory_space<vmem>>, vector<1x2x128xf32>
    %196 = vector.shape_cast %195 : vector<1x2x128xf32> to vector<2x128xf32>
    %197 = vector.shape_cast %191 : vector<2x128xf32> to vector<1x2x128xf32>
    tpu.vector_store %arg10[%194, %c0_88, %c0_89], %197 {strides = array<i32>} : memref<8x2x128xf32, #tpu.memory_space<vmem>>, vector<1x2x128xf32>,
    %c5_i32 = arith.constant 5 : i32
    %c0_90 = arith.constant 0 : index
    %c0_91 = arith.constant 0 : index
    %198 = vector.load %arg8[%c0_90, %c0_91] : memref<2x128xf32, #tpu.memory_space<vmem>>, vector<2x128xf32>
    %c0_92 = arith.constant 0 : index
    %c0_93 = arith.constant 0 : index
    %199 = vector.load %arg9[%c0_92, %c0_93] : memref<2x128xf32, #tpu.memory_space<vmem>>, vector<2x128xf32>
    %c0_94 = arith.constant 0 : index
    %c0_95 = arith.constant 0 : index
    %200 = vector.load %arg2[%c0_94, %c0_95] : memref<128x512xf32, #tpu.memory_space<vmem>>, vector<128x512xf32>
    %cst_96 = arith.constant dense<0.000000e+00> : vector<2x512xf32>
    %201 = tpu.matmul %198, %200, %cst_96 {dimension_numbers = #tpu.dot_dimension_numbers<[1], [0], [0], [1], [0, 0, 1, 1], [], []>} : vector<2x128xf32>, vector<128x512xf32>, vector<2x512xf32> -> vector<2x512xf32>
    %202 = arith.index_cast %c5_i32 : i32 to index
    %c0_97 = arith.constant 0 : index
    %c0_98 = arith.constant 0 : index
    %203 = vector.load %arg1[%202, %c0_97, %c0_98] : memref<8x2x512xf32, #tpu.memory_space<vmem>>, vector<1x2x512xf32>
    %204 = vector.shape_cast %203 : vector<1x2x512xf32> to vector<2x512xf32>
    %205 = arith.addf %201, %204 : vector<2x512xf32>
    %206 = vector.extract_strided_slice %205 {offsets = [0, 0], sizes = [2, 128], strides = [1, 1]} : vector<2x512xf32> to vector<2x128xf32>
    %207 = arith.negf %206 : vector<2x128xf32>
    %208 = math.exp %207 : vector<2x128xf32>
    %cst_99 = arith.constant 1.000000e+00 : f32
    %209 = vector.broadcast %cst_99 : f32 to vector<2x128xf32>
    %210 = arith.addf %209, %208 : vector<2x128xf32>
    %211 = arith.divf %209, %210 : vector<2x128xf32>
    %212 = vector.extract_strided_slice %205 {offsets = [0, 128], sizes = [2, 128], strides = [1, 1]} : vector<2x512xf32> to vector<2x128xf32>
    %213 = arith.negf %212 : vector<2x128xf32>
    %214 = math.exp %213 : vector<2x128xf32>
    %cst_100 = arith.constant 1.000000e+00 : f32
    %215 = vector.broadcast %cst_100 : f32 to vector<2x128xf32>
    %216 = arith.addf %215, %214 : vector<2x128xf32>
    %217 = arith.divf %215, %216 : vector<2x128xf32>
    %218 = vector.extract_strided_slice %205 {offsets = [0, 256], sizes = [2, 128], strides = [1, 1]} : vector<2x512xf32> to vector<2x128xf32>
    %219 = math.tanh %218 : vector<2x128xf32>
    %220 = vector.extract_strided_slice %205 {offsets = [0, 384], sizes = [2, 128], strides = [1, 1]} : vector<2x512xf32> to vector<2x128xf32>
    %221 = arith.negf %220 : vector<2x128xf32>
    %222 = math.exp %221 : vector<2x128xf32>
    %cst_101 = arith.constant 1.000000e+00 : f32
    %223 = vector.broadcast %cst_101 : f32 to vector<2x128xf32>
    %224 = arith.addf %223, %222 : vector<2x128xf32>
    %225 = arith.divf %223, %224 : vector<2x128xf32>
    %226 = arith.mulf %217, %199 : vector<2x128xf32>
    %227 = arith.mulf %211, %219 : vector<2x128xf32>
    %228 = arith.addf %226, %227 : vector<2x128xf32>
    %229 = math.tanh %228 : vector<2x128xf32>
    %230 = arith.mulf %225, %229 : vector<2x128xf32>
    %c0_102 = arith.constant 0 : index
    %c0_103 = arith.constant 0 : index
    %231 = vector.load %arg8[%c0_102, %c0_103] : memref<2x128xf32, #tpu.memory_space<vmem>>, vector<2x128xf32>
    tpu.vector_store %arg8[%c0_102, %c0_103], %230 {strides = array<i32>} : memref<2x128xf32, #tpu.memory_space<vmem>>, vector<2x128xf32>,
    %c0_104 = arith.constant 0 : index
    %c0_105 = arith.constant 0 : index
    %232 = vector.load %arg9[%c0_104, %c0_105] : memref<2x128xf32, #tpu.memory_space<vmem>>, vector<2x128xf32>
    tpu.vector_store %arg9[%c0_104, %c0_105], %228 {strides = array<i32>} : memref<2x128xf32, #tpu.memory_space<vmem>>, vector<2x128xf32>,
    %233 = arith.index_cast %c5_i32 : i32 to index
    %c0_106 = arith.constant 0 : index
    %c0_107 = arith.constant 0 : index
    %234 = vector.load %arg10[%233, %c0_106, %c0_107] : memref<8x2x128xf32, #tpu.memory_space<vmem>>, vector<1x2x128xf32>
    %235 = vector.shape_cast %234 : vector<1x2x128xf32> to vector<2x128xf32>
    %236 = vector.shape_cast %230 : vector<2x128xf32> to vector<1x2x128xf32>
    tpu.vector_store %arg10[%233, %c0_106, %c0_107], %236 {strides = array<i32>} : memref<8x2x128xf32, #tpu.memory_space<vmem>>, vector<1x2x128xf32>,
    %c6_i32 = arith.constant 6 : i32
    %c0_108 = arith.constant 0 : index
    %c0_109 = arith.constant 0 : index
    %237 = vector.load %arg8[%c0_108, %c0_109] : memref<2x128xf32, #tpu.memory_space<vmem>>, vector<2x128xf32>
    %c0_110 = arith.constant 0 : index
    %c0_111 = arith.constant 0 : index
    %238 = vector.load %arg9[%c0_110, %c0_111] : memref<2x128xf32, #tpu.memory_space<vmem>>, vector<2x128xf32>
    %c0_112 = arith.constant 0 : index
    %c0_113 = arith.constant 0 : index
    %239 = vector.load %arg2[%c0_112, %c0_113] : memref<128x512xf32, #tpu.memory_space<vmem>>, vector<128x512xf32>
    %cst_114 = arith.constant dense<0.000000e+00> : vector<2x512xf32>
    %240 = tpu.matmul %237, %239, %cst_114 {dimension_numbers = #tpu.dot_dimension_numbers<[1], [0], [0], [1], [0, 0, 1, 1], [], []>} : vector<2x128xf32>, vector<128x512xf32>, vector<2x512xf32> -> vector<2x512xf32>
    %241 = arith.index_cast %c6_i32 : i32 to index
    %c0_115 = arith.constant 0 : index
    %c0_116 = arith.constant 0 : index
    %242 = vector.load %arg1[%241, %c0_115, %c0_116] : memref<8x2x512xf32, #tpu.memory_space<vmem>>, vector<1x2x512xf32>
    %243 = vector.shape_cast %242 : vector<1x2x512xf32> to vector<2x512xf32>
    %244 = arith.addf %240, %243 : vector<2x512xf32>
    %245 = vector.extract_strided_slice %244 {offsets = [0, 0], sizes = [2, 128], strides = [1, 1]} : vector<2x512xf32> to vector<2x128xf32>
    %246 = arith.negf %245 : vector<2x128xf32>
    %247 = math.exp %246 : vector<2x128xf32>
    %cst_117 = arith.constant 1.000000e+00 : f32
    %248 = vector.broadcast %cst_117 : f32 to vector<2x128xf32>
    %249 = arith.addf %248, %247 : vector<2x128xf32>
    %250 = arith.divf %248, %249 : vector<2x128xf32>
    %251 = vector.extract_strided_slice %244 {offsets = [0, 128], sizes = [2, 128], strides = [1, 1]} : vector<2x512xf32> to vector<2x128xf32>
    %252 = arith.negf %251 : vector<2x128xf32>
    %253 = math.exp %252 : vector<2x128xf32>
    %cst_118 = arith.constant 1.000000e+00 : f32
    %254 = vector.broadcast %cst_118 : f32 to vector<2x128xf32>
    %255 = arith.addf %254, %253 : vector<2x128xf32>
    %256 = arith.divf %254, %255 : vector<2x128xf32>
    %257 = vector.extract_strided_slice %244 {offsets = [0, 256], sizes = [2, 128], strides = [1, 1]} : vector<2x512xf32> to vector<2x128xf32>
    %258 = math.tanh %257 : vector<2x128xf32>
    %259 = vector.extract_strided_slice %244 {offsets = [0, 384], sizes = [2, 128], strides = [1, 1]} : vector<2x512xf32> to vector<2x128xf32>
    %260 = arith.negf %259 : vector<2x128xf32>
    %261 = math.exp %260 : vector<2x128xf32>
    %cst_119 = arith.constant 1.000000e+00 : f32
    %262 = vector.broadcast %cst_119 : f32 to vector<2x128xf32>
    %263 = arith.addf %262, %261 : vector<2x128xf32>
    %264 = arith.divf %262, %263 : vector<2x128xf32>
    %265 = arith.mulf %256, %238 : vector<2x128xf32>
    %266 = arith.mulf %250, %258 : vector<2x128xf32>
    %267 = arith.addf %265, %266 : vector<2x128xf32>
    %268 = math.tanh %267 : vector<2x128xf32>
    %269 = arith.mulf %264, %268 : vector<2x128xf32>
    %c0_120 = arith.constant 0 : index
    %c0_121 = arith.constant 0 : index
    %270 = vector.load %arg8[%c0_120, %c0_121] : memref<2x128xf32, #tpu.memory_space<vmem>>, vector<2x128xf32>
    tpu.vector_store %arg8[%c0_120, %c0_121], %269 {strides = array<i32>} : memref<2x128xf32, #tpu.memory_space<vmem>>, vector<2x128xf32>,
    %c0_122 = arith.constant 0 : index
    %c0_123 = arith.constant 0 : index
    %271 = vector.load %arg9[%c0_122, %c0_123] : memref<2x128xf32, #tpu.memory_space<vmem>>, vector<2x128xf32>
    tpu.vector_store %arg9[%c0_122, %c0_123], %267 {strides = array<i32>} : memref<2x128xf32, #tpu.memory_space<vmem>>, vector<2x128xf32>,
    %272 = arith.index_cast %c6_i32 : i32 to index
    %c0_124 = arith.constant 0 : index
    %c0_125 = arith.constant 0 : index
    %273 = vector.load %arg10[%272, %c0_124, %c0_125] : memref<8x2x128xf32, #tpu.memory_space<vmem>>, vector<1x2x128xf32>
    %274 = vector.shape_cast %273 : vector<1x2x128xf32> to vector<2x128xf32>
    %275 = vector.shape_cast %269 : vector<2x128xf32> to vector<1x2x128xf32>
    tpu.vector_store %arg10[%272, %c0_124, %c0_125], %275 {strides = array<i32>} : memref<8x2x128xf32, #tpu.memory_space<vmem>>, vector<1x2x128xf32>,
    %c7_i32 = arith.constant 7 : i32
    %c0_126 = arith.constant 0 : index
    %c0_127 = arith.constant 0 : index
    %276 = vector.load %arg8[%c0_126, %c0_127] : memref<2x128xf32, #tpu.memory_space<vmem>>, vector<2x128xf32>
    %c0_128 = arith.constant 0 : index
    %c0_129 = arith.constant 0 : index
    %277 = vector.load %arg9[%c0_128, %c0_129] : memref<2x128xf32, #tpu.memory_space<vmem>>, vector<2x128xf32>
    %c0_130 = arith.constant 0 : index
    %c0_131 = arith.constant 0 : index
    %278 = vector.load %arg2[%c0_130, %c0_131] : memref<128x512xf32, #tpu.memory_space<vmem>>, vector<128x512xf32>
    %cst_132 = arith.constant dense<0.000000e+00> : vector<2x512xf32>
    %279 = tpu.matmul %276, %278, %cst_132 {dimension_numbers = #tpu.dot_dimension_numbers<[1], [0], [0], [1], [0, 0, 1, 1], [], []>} : vector<2x128xf32>, vector<128x512xf32>, vector<2x512xf32> -> vector<2x512xf32>
    %280 = arith.index_cast %c7_i32 : i32 to index
    %c0_133 = arith.constant 0 : index
    %c0_134 = arith.constant 0 : index
    %281 = vector.load %arg1[%280, %c0_133, %c0_134] : memref<8x2x512xf32, #tpu.memory_space<vmem>>, vector<1x2x512xf32>
    %282 = vector.shape_cast %281 : vector<1x2x512xf32> to vector<2x512xf32>
    %283 = arith.addf %279, %282 : vector<2x512xf32>
    %284 = vector.extract_strided_slice %283 {offsets = [0, 0], sizes = [2, 128], strides = [1, 1]} : vector<2x512xf32> to vector<2x128xf32>
    %285 = arith.negf %284 : vector<2x128xf32>
    %286 = math.exp %285 : vector<2x128xf32>
    %cst_135 = arith.constant 1.000000e+00 : f32
    %287 = vector.broadcast %cst_135 : f32 to vector<2x128xf32>
    %288 = arith.addf %287, %286 : vector<2x128xf32>
    %289 = arith.divf %287, %288 : vector<2x128xf32>
    %290 = vector.extract_strided_slice %283 {offsets = [0, 128], sizes = [2, 128], strides = [1, 1]} : vector<2x512xf32> to vector<2x128xf32>
    %291 = arith.negf %290 : vector<2x128xf32>
    %292 = math.exp %291 : vector<2x128xf32>
    %cst_136 = arith.constant 1.000000e+00 : f32
    %293 = vector.broadcast %cst_136 : f32 to vector<2x128xf32>
    %294 = arith.addf %293, %292 : vector<2x128xf32>
    %295 = arith.divf %293, %294 : vector<2x128xf32>
    %296 = vector.extract_strided_slice %283 {offsets = [0, 256], sizes = [2, 128], strides = [1, 1]} : vector<2x512xf32> to vector<2x128xf32>
    %297 = math.tanh %296 : vector<2x128xf32>
    %298 = vector.extract_strided_slice %283 {offsets = [0, 384], sizes = [2, 128], strides = [1, 1]} : vector<2x512xf32> to vector<2x128xf32>
    %299 = arith.negf %298 : vector<2x128xf32>
    %300 = math.exp %299 : vector<2x128xf32>
    %cst_137 = arith.constant 1.000000e+00 : f32
    %301 = vector.broadcast %cst_137 : f32 to vector<2x128xf32>
    %302 = arith.addf %301, %300 : vector<2x128xf32>
    %303 = arith.divf %301, %302 : vector<2x128xf32>
    %304 = arith.mulf %295, %277 : vector<2x128xf32>
    %305 = arith.mulf %289, %297 : vector<2x128xf32>
    %306 = arith.addf %304, %305 : vector<2x128xf32>
    %307 = math.tanh %306 : vector<2x128xf32>
    %308 = arith.mulf %303, %307 : vector<2x128xf32>
    %c0_138 = arith.constant 0 : index
    %c0_139 = arith.constant 0 : index
    %309 = vector.load %arg8[%c0_138, %c0_139] : memref<2x128xf32, #tpu.memory_space<vmem>>, vector<2x128xf32>
    tpu.vector_store %arg8[%c0_138, %c0_139], %308 {strides = array<i32>} : memref<2x128xf32, #tpu.memory_space<vmem>>, vector<2x128xf32>,
    %c0_140 = arith.constant 0 : index
    %c0_141 = arith.constant 0 : index
    %310 = vector.load %arg9[%c0_140, %c0_141] : memref<2x128xf32, #tpu.memory_space<vmem>>, vector<2x128xf32>
    tpu.vector_store %arg9[%c0_140, %c0_141], %306 {strides = array<i32>} : memref<2x128xf32, #tpu.memory_space<vmem>>, vector<2x128xf32>,
    %311 = arith.index_cast %c7_i32 : i32 to index
    %c0_142 = arith.constant 0 : index
    %c0_143 = arith.constant 0 : index
    %312 = vector.load %arg10[%311, %c0_142, %c0_143] : memref<8x2x128xf32, #tpu.memory_space<vmem>>, vector<1x2x128xf32>
    %313 = vector.shape_cast %312 : vector<1x2x128xf32> to vector<2x128xf32>
    %314 = vector.shape_cast %308 : vector<2x128xf32> to vector<1x2x128xf32>
    tpu.vector_store %arg10[%311, %c0_142, %c0_143], %314 {strides = array<i32>} : memref<8x2x128xf32, #tpu.memory_space<vmem>>, vector<1x2x128xf32>,
    %c8_i32 = arith.constant 8 : i32
    %c0_144 = arith.constant 0 : index
    %c0_145 = arith.constant 0 : index
    %315 = vector.load %arg8[%c0_144, %c0_145] : memref<2x128xf32, #tpu.memory_space<vmem>>, vector<2x128xf32>
    %c0_146 = arith.constant 0 : index
    %c0_147 = arith.constant 0 : index
    %316 = vector.load %arg6[%c0_146, %c0_147] : memref<2x128xf32, #tpu.memory_space<vmem>>, vector<2x128xf32>
    tpu.vector_store %arg6[%c0_146, %c0_147], %315 {strides = array<i32>} : memref<2x128xf32, #tpu.memory_space<vmem>>, vector<2x128xf32>,
    %c0_148 = arith.constant 0 : index
    %c0_149 = arith.constant 0 : index
    %317 = vector.load %arg9[%c0_148, %c0_149] : memref<2x128xf32, #tpu.memory_space<vmem>>, vector<2x128xf32>
    %c0_150 = arith.constant 0 : index
    %c0_151 = arith.constant 0 : index
    %318 = vector.load %arg7[%c0_150, %c0_151] : memref<2x128xf32, #tpu.memory_space<vmem>>, vector<2x128xf32>
    tpu.vector_store %arg7[%c0_150, %c0_151], %317 {strides = array<i32>} : memref<2x128xf32, #tpu.memory_space<vmem>>, vector<2x128xf32>,
    %c0_152 = arith.constant 0 : index
    %c0_153 = arith.constant 0 : index
    %c0_154 = arith.constant 0 : index
    %319 = vector.load %arg10[%c0_152, %c0_153, %c0_154] : memref<8x2x128xf32, #tpu.memory_space<vmem>>, vector<8x2x128xf32>
    %320 = tpu.transpose %319, [1, 0, 2] : vector<8x2x128xf32> -> vector<2x8x128xf32>
    %c0_155 = arith.constant 0 : index
    %c0_156 = arith.constant 0 : index
    %c0_157 = arith.constant 0 : index
    %321 = vector.load %arg5[%c0_155, %c0_156, %c0_157] : memref<2x8x128xf32, #tpu.memory_space<vmem>>, vector<2x8x128xf32>
    tpu.vector_store %arg5[%c0_155, %c0_156, %c0_157], %320 {strides = array<i32>} : memref<2x8x128xf32, #tpu.memory_space<vmem>>, vector<2x8x128xf32>,
    return
  }
  func.func @transform_0(%arg0: i32) -> (i32, i32, i32) {
    %c0_i32 = arith.constant 0 : i32
    %c0_i32_0 = arith.constant 0 : i32
    %c0_i32_1 = arith.constant 0 : i32
    return %arg0, %c0_i32, %c0_i32_0 : i32, i32, i32
  }
  func.func @transform_1(%arg0: i32) -> (i32, i32) {
    %c0_i32 = arith.constant 0 : i32
    %c0_i32_0 = arith.constant 0 : i32
    %c0_i32_1 = arith.constant 0 : i32
    return %c0_i32, %c0_i32_0 : i32, i32
  }
  func.func @transform_2(%arg0: i32) -> (i32, i32) {
    %c0_i32 = arith.constant 0 : i32
    %c0_i32_0 = arith.constant 0 : i32
    %c0_i32_1 = arith.constant 0 : i32
    return %c0_i32, %c0_i32_0 : i32, i32
  }
  func.func @transform_3(%arg0: i32) -> (i32, i32) {
    %c0_i32 = arith.constant 0 : i32
    %c0_i32_0 = arith.constant 0 : i32
    %c0_i32_1 = arith.constant 0 : i32
    return %c0_i32, %c0_i32_0 : i32, i32
  }
  func.func @transform_4(%arg0: i32) -> (i32, i32, i32) {
    %c0_i32 = arith.constant 0 : i32
    %c0_i32_0 = arith.constant 0 : i32
    %c0_i32_1 = arith.constant 0 : i32
    return %c0_i32, %arg0, %c0_i32_0 : i32, i32, i32
  }
  func.func @transform_5(%arg0: i32) -> (i32, i32) {
    %c0_i32 = arith.constant 0 : i32
    %c0_i32_0 = arith.constant 0 : i32
    %c0_i32_1 = arith.constant 0 : i32
    return %c0_i32, %c0_i32_0 : i32, i32
  }
  func.func @transform_6(%arg0: i32) -> (i32, i32) {
    %c0_i32 = arith.constant 0 : i32
    %c0_i32_0 = arith.constant 0 : i32
    %c0_i32_1 = arith.constant 0 : i32
    return %c0_i32, %c0_i32_0 : i32, i32
  }
}

</mosaic_0001>

<bundles_post_ra>
// kernel: encoder_lstm_forward.4
= control target key start
LH: loop header
LB: loop body
LE: loop exit
PB: predicated region body
PF: predicated region fallthrough
CT: control target
= control target key end

     0   :  { %10 = vsyncpa [#allocation3], 0  ;;  %s716_s0 = inlined_call_operand.vmem [shape: f32[2,8,4], index: 0, kind: input, shape index: {}]   ;;  %s717_s1 = inlined_call_operand.vmem [shape: f32[4,12], index: 1, kind: input, shape index: {}]   ;;  %s718_s2 = inlined_call_operand.hbm [shape: f32[1,12], index: 2, kind: input, shape index: {}]   ;;  %s719_s3 = inlined_call_operand.hbm [shape: f32[12,512], index: 3, kind: input, shape index: {}]   ;;  %s720_s4 = inlined_call_operand.hbm [shape: f32[1,512], index: 4, kind: input, shape index: {}]   ;;  %s721_s5 = inlined_call_operand.vmem [shape: f32[8,2,512], index: 5, kind: output, shape index: {}]  }
   0x1   :  { %11 = vsyncpa [#allocation5], 0  ;;  %s630_s18 = smov [#allocation4]  }
   0x2   :  { %s31_s19 = sshll.u32 %s630_s18, 4  ;;  %s32_s19 = int_to_ptr.vmem [resolvable:$true] %s31_s19 }
   0x3   :  { %s574_s20 = scalar_lea.vmem %s32_s19, 1024  ;;  %p579_p1 = scmp.lt.s32.totalorder %s32_s19, %s32_s19 }
   0x4   :  { %p575_p0 = scmp.ne.s32.totalorder %s32_s19, %s574_s20  ;;  %p580_p2 = scmp.lt.s32.totalorder %s574_s20, %s574_s20 }
   0x6   :  { %p581_p3 = por %p580_p2, %p579_p1 }
   0x8   :  { %p582_p4 = pnand %p581_p3, %p575_p0 }
   0xa   :  { %585 = shalt.err (!%p582_p4)
}
   0xb   :  { %s631_s21 = smov 512   ;;  %s632_s22 = smov 32  }
   0xc   :  { %37 = dma.hbm_to_vmem [thread:$0]  %s719_s3, 1024, %s32_s19, [#allocation5], %s631_s21, %s631_s21, %s632_s22  }
   0xd   :  { %s633_s25 = smov [#allocation2]   ;;  %s634_s27 = smov [#allocation6]  }
   0xe   :  { %s22_s26 = sshll.u32 %s633_s25, 4  ;;  %s44_s28 = sshll.u32 %s634_s27, 4  ;;  %s23_s26 = int_to_ptr.vmem [resolvable:$true] %s22_s26  ;;  %s45_s28 = int_to_ptr.vmem [resolvable:$true] %s44_s28 }
   0xf   :  { %s594_s29 = scalar_lea.vmem %s23_s26, 16  ;;  %s598_s30 = scalar_lea.vmem %s23_s26, 32 }
  0x10   :  { %p595_p5 = scmp.ne.s32.totalorder %s23_s26, %s594_s29  ;;  %p599_p6 = scmp.lt.s32.totalorder %s23_s26, %s23_s26 }
  0x11   :  { %p600_p7 = scmp.lt.s32.totalorder %s598_s30, %s594_s29 }
  0x13   :  { %p601_p8 = por %p600_p7, %p599_p6 }
  0x15   :  { %p602_p9 = pnand %p601_p8, %p595_p5 }
  0x17   :  { %605 = shalt.err (!%p602_p9)
}
  0x18   :  { %25 = dma.hbm_to_vmem [thread:$0]  %s718_s2, 16, %s23_s26, [#allocation3]  }
  0x19   :  { %s614_s8 = scalar_lea.vmem %s45_s28, 64  ;;  %p619_p11 = scmp.lt.s32.totalorder %s45_s28, %s45_s28 }
  0x1a   :  { %p615_p10 = scmp.ne.s32.totalorder %s45_s28, %s614_s8  ;;  %p620_p12 = scmp.lt.s32.totalorder %s614_s8, %s614_s8 }
  0x1c   :  { %p621_p13 = por %p620_p12, %p619_p11 }
  0x1e   :  { %p622_p0 = pnand %p621_p13, %p615_p10 }
  0x20   :  { %625 = shalt.err (!%p622_p0)
}
  0x21   :  { %47 = dma.hbm_to_vmem [thread:$0]  %s720_s4, 64, %s45_s28, [#allocation5]  }
  0x22   :  { %626 = dma.done.wait [#allocation3], 16  }
  0x23   :  { %627 = vsyncadd [#allocation3], 4294967280 }
  0x24   :  { %628 = dma.done.wait [#allocation5], 1088  }
  0x25   :  { %629 = vsyncadd [#allocation5], 4294966208  ;;  %vm74_vm0 = vcmask 1043456   ;;  %vm67_vm1 = vcmask 31744   ;;  %v59_v0 = vld [vmem:[%s717_s1] sm:$0xf]  ;;  %v163_v17 = vlaneseq }
  0x26   :  { %v57_v1 = vld [vmem:[%s716_s0] sm:$0xff]  ;;  %v58_v2 = vld [vmem:[%s716_s0 + $0x8] sm:$0xff]  ;;  %553 = vmatprep.subr.msk.mxu0 %vm74_vm0, %v59_v0  ;;  %v160_v3 = vld [vmem:[#allocation4 + $0x38] sm:$0xf]  ;;  %v635_v11 = vmov 0.0   ;;  %vm183_vm2 = vcmask 97280  }
  0x27   :  { %555 = vmatprep.mubr.msk.f32.mxu0 %vm67_vm1, %v57_v1  ;;  %554 = vmatpush3.msk.msra.mxu0 %vm74_vm0, %v59_v0  ;;  %v158_v4 = vld [vmem:[#allocation4 + $0x28] sm:$0xf]  ;;  %v159_v5 = vld [vmem:[#allocation4 + $0x30] sm:$0xf]  ;;  %v157_v6 = vld [vmem:[#allocation4 + $0x20] sm:$0xf] }
  0x28   :  { %556 = vmatmul.mubr.msk.f32.vlgmr.msra.gmra.mxu0 %vm67_vm1, %v58_v2  ;;  %538 = vmatprep.subr.msk.mxu0 %vm74_vm0, %v160_v3  ;;  %v156_v7 = vld [vmem:[#allocation4 + $0x18] sm:$0xff]  ;;  %v154_v8 = vld [vmem:[#allocation4 + $0x8] sm:$0xff]  ;;  %v155_v9 = vld [vmem:[#allocation4 + $0x10] sm:$0xff]  ;;  %v164_v18 = vshrl.u32 %v163_v17, 7  ;;  %v636_v23 = vmov 1983009808  }
  0x29   :  { %534 = vmatprep.subr.msk.mxu1 %vm74_vm0, %v158_v4  ;;  %539 = vmatpush1.msk.msra.mxu0 %vm74_vm0, %v159_v5  ;;  %v153_v10 = vld [vmem:[#allocation4] sm:$0xff]  ;;  %v530_v13 = vld [vmem:[#allocation2] ss:$0 sm:$0xff]  ;;  %v369_v24 = vunpack.c.l.s4 %v636_v23  ;;  %v637_v36 = vmov 1934713408  }
  0x2a   :  { %535 = vmatpush1.msk.msra.mxu1 %vm74_vm0, %v157_v6  ;;  %309 = vmatprep.subr.mxu0 %v156_v7  ;;  %v169_v19 = vsub.s32 1, %v164_v18  ;;  %v165_v20 = vsub.s32 0, %v164_v18  ;;  %v177_v21 = vsub.s32 3, %v164_v18  ;;  %v161_v22 = vld [vmem:[#allocation6] sm:$0xf]  ;;  %v173_v25 = vsub.s32 2, %v164_v18 }
  0x2b   :  { %232 = vmatprep.subr.mxu1 %v154_v8  ;;  %310 = vmatpush1.msra.mxu0 %v155_v9  ;;  %v370_v32 = vunpack.c.0.s8 %v369_v24  ;;  %v447_v37 = vunpack.c.l.s4 %v637_v36 }
  0x2c   :  { %233 = vmatpush1.msra.mxu1 %v153_v10  ;;  %266 = vmatprep.mubr.f32.mxu1 %v635_v11  ;;  %v170_v26 = vrot.slane %v161_v22, %v169_v19  ;;  %v166_v29 = vrot.slane %v161_v22, %v165_v20  ;;  %v178_v30 = vrot.slane %v161_v22, %v177_v21 }
  0x2d   :  { %343 = vmatprep.mubr.f32.mxu0 %v635_v11  ;;  %v174_v34 = vrot.slane %v161_v22, %v173_v25  ;;  %v373_v42 = vsub.s32 %v370_v32, %v164_v18  ;;  %v448_v48 = vunpack.c.0.s8 %v447_v37 }
  0x2f   :  { %v451_v61 = vsub.s32 %v448_v48, %v164_v18 }
  0xe8   :  { %v557_v12 = vpop.f32.mrf.mxu0 }
  0xe9   :  { %v150_v16 = vadd.f32 %v557_v12, %v530_v13 }
  0xea   :  { %v144_v14 = vpop.f32.mrf.mxu0 }
  0xeb   :  { %v145_v15 = vadd.f32 %v530_v13, %v144_v14 }
  0xed   :  { %536 = vmatmul.mubr.msk.f32.vlgmr.msra.gmra.mxu1 %vm183_vm2, %v145_v15  ;;  %540 = vmatmul.mubr.msk.f32.vlgmr.msra.gmra.mxu0 %vm183_vm2, %v145_v15 }
  0xee   :  { %272 = vmatprep.mubr.f32.mxu1 %v635_v11  ;;  %349 = vmatprep.mubr.f32.mxu0 %v635_v11 }
  0xf1   :  { %537 = vmatmul.mubr.msk.f32.gmra.mxu1 %vm183_vm2, %v150_v16  ;;  %541 = vmatmul.mubr.msk.f32.gmra.mxu0 %vm183_vm2, %v150_v16 }
 0x1ad   :  { %v268_v27 = vpop.f32.mrf.mxu1  ;;  %v345_v28 = vpop.f32.mrf.mxu0 }
 0x1ae   :  { %v269_v40 = vadd.f32 %v268_v27, %v166_v29  ;;  %v346_v45 = vadd.f32 %v345_v28, %v174_v34 }
 0x1af   :  { %v270_v31 = vpop.f32.mrf.mxu1  ;;  %v347_v33 = vpop.f32.mrf.mxu0 }
 0x1b0   :  { %v271_v35 = vadd.f32 %v270_v31, %v170_v26  ;;  %v348_v41 = vadd.f32 %v347_v33, %v178_v30 }
 0x1b1   :  { %v274_v38 = vpop.f32.mrf.mxu1  ;;  %v351_v39 = vpop.f32.mrf.mxu0 }
 0x1b2   :  { %v364_v46 = vcombine.low %v269_v40, %v271_v35  ;;  %v365_v47 = vcombine.high %v269_v40, %v271_v35  ;;  %v275_v49 = vadd.f32 %v274_v38, %v166_v29  ;;  %v352_v50 = vadd.f32 %v351_v39, %v174_v34 }
 0x1b3   :  { %v276_v43 = vpop.f32.mrf.mxu1  ;;  %v353_v44 = vpop.f32.mrf.mxu0  ;;  %v366_v53 = vcombine.low %v346_v45, %v348_v41  ;;  %v367_v54 = vcombine.high %v346_v45, %v348_v41 }
 0x1b4   :  { %v277_v51 = vadd.f32 %v276_v43, %v170_v26  ;;  %v354_v52 = vadd.f32 %v353_v44, %v178_v30  ;;  %v374_v59 = vrot.slane %v364_v46, %v373_v42  ;;  %v381_v60 = vrot.slane %v365_v47, %v373_v42 }
 0x1b5   :  { %v388_v2 = vrot.slane %v366_v53, %v373_v42  ;;  %v395_v3 = vrot.slane %v367_v54, %v373_v42 }
 0x1b6   :  { %v400_v55 = vcombine.low %v275_v49, %v277_v51  ;;  %v401_v56 = vcombine.high %v275_v49, %v277_v51  ;;  %v402_v57 = vcombine.low %v352_v50, %v354_v52  ;;  %v403_v58 = vcombine.high %v352_v50, %v354_v52 }
 0x1b8   :  { %v410_v62 = vrot.slane %v400_v55, %v373_v42  ;;  %v417_v63 = vrot.slane %v401_v56, %v373_v42  ;;  %v424_v0 = vrot.slane %v402_v57, %v373_v42  ;;  %v431_v1 = vrot.slane %v403_v58, %v373_v42 }
 0x1ba   :  { %v542_v4 = vcombine.low %v374_v59, %v410_v62  ;;  %v544_v5 = vcombine.high %v374_v59, %v410_v62  ;;  %v546_v6 = vcombine.low %v381_v60, %v417_v63  ;;  %v548_v7 = vcombine.high %v381_v60, %v417_v63 }
 0x1bb   :  { %v543_v8 = vcombine.low %v388_v2, %v424_v0  ;;  %v545_v9 = vcombine.high %v388_v2, %v424_v0  ;;  %v547_v10 = vcombine.low %v395_v3, %v431_v1  ;;  %v549_v11 = vcombine.high %v395_v3, %v431_v1 }
 0x1bc   :  { %v452_v12 = vrot.slane %v542_v4, %v451_v61  ;;  %v470_v13 = vrot.slane %v544_v5, %v451_v61  ;;  %v488_v14 = vrot.slane %v546_v6, %v451_v61  ;;  %v506_v15 = vrot.slane %v548_v7, %v451_v61 }
 0x1bd   :  { %v459_v16 = vrot.slane %v543_v8, %v451_v61  ;;  %v477_v17 = vrot.slane %v545_v9, %v451_v61  ;;  %v495_v18 = vrot.slane %v547_v10, %v451_v61  ;;  %v513_v19 = vrot.slane %v549_v11, %v451_v61 }
 0x1bf   :  { %v460_v20 = vcombine.low %v452_v12, %v459_v16  ;;  %v461_v21 = vcombine.high %v452_v12, %v459_v16  ;;  %v478_v22 = vcombine.low %v470_v13, %v477_v17  ;;  %v479_v23 = vcombine.high %v470_v13, %v477_v17 }
 0x1c0   :  { %v496_v24 = vcombine.low %v488_v14, %v495_v18  ;;  %v497_v25 = vcombine.high %v488_v14, %v495_v18  ;;  %v514_v26 = vcombine.low %v506_v15, %v513_v19  ;;  %v515_v27 = vcombine.high %v506_v15, %v513_v19 }
 0x1c1   :  { %516 = vst [vmem:[%s721_s5] sm:$0xff] %v460_v20  ;;  %517 = vst [vmem:[%s721_s5 + $0x8] sm:$0xff] %v461_v21 }
 0x1c2   :  { %518 = vst [vmem:[%s721_s5 + $0x10] sm:$0xff] %v478_v22  ;;  %519 = vst [vmem:[%s721_s5 + $0x18] sm:$0xff] %v479_v23 }
 0x1c3   :  { %520 = vst [vmem:[%s721_s5 + $0x20] sm:$0xff] %v496_v24  ;;  %521 = vst [vmem:[%s721_s5 + $0x28] sm:$0xff] %v497_v25 }
 0x1c4   :  { %522 = vst [vmem:[%s721_s5 + $0x30] sm:$0xff] %v514_v26  ;;  %523 = vst [vmem:[%s721_s5 + $0x38] sm:$0xff] %v515_v27 }
 0x1c5   :  { %528 = vsyncpa [#allocation3], 1 }
 0x1c6   :  { %529 = vsyncpa [#allocation5], 1 }

// kernel: encoder_lstm_forward.6
= control target key start
LH: loop header
LB: loop body
LE: loop exit
PB: predicated region body
PF: predicated region fallthrough
CT: control target
= control target key end

     0   :  { %v439_v3 = vmov 0.0   ;;  %s691_s1 = inlined_call_operand.vmem [shape: f32[128,512], index: 1, kind: input, shape index: {}]   ;;  %s692_s0 = inlined_call_operand.vmem [shape: f32[2,8,128], index: 0, kind: input, shape index: {}]   ;;  %s693_s2 = inlined_call_operand.vmem [shape: f32[1,512], index: 2, kind: input, shape index: {}]   ;;  %s694_s3 = inlined_call_operand.vmem [shape: f32[8,2,512], index: 3, kind: output, shape index: {}]  }
   0x1   :  { %v77_v0 = vld [vmem:[%s691_s1 + $0x1e8] sm:$0xff]  ;;  %v79_v1 = vld [vmem:[%s691_s1 + $0x1f8] sm:$0xff]  ;;  %v76_v2 = vld [vmem:[%s691_s1 + $0x1e0] sm:$0xff]  ;;  %166 = vmatprep.mubr.f32.mxu0 %v439_v3  ;;  %243 = vmatprep.mubr.f32.mxu1 %v439_v3 }
   0x2   :  { %102 = vmatprep.subr.mxu0 %v77_v0  ;;  %179 = vmatprep.subr.mxu1 %v79_v1  ;;  %v78_v4 = vld [vmem:[%s691_s1 + $0x1f0] sm:$0xff]  ;;  %v73_v5 = vld [vmem:[%s691_s1 + $0x1c8] sm:$0xff]  ;;  %v75_v6 = vld [vmem:[%s691_s1 + $0x1d8] sm:$0xff] }
   0x3   :  { %103 = vmatpush1.msra.mxu0 %v76_v2  ;;  %180 = vmatpush1.msra.mxu1 %v78_v4  ;;  %v72_v7 = vld [vmem:[%s691_s1 + $0x1c0] sm:$0xff]  ;;  %v74_v8 = vld [vmem:[%s691_s1 + $0x1d0] sm:$0xff]  ;;  %v69_v9 = vld [vmem:[%s691_s1 + $0x1a8] sm:$0xff]  ;;  %v82_v4 = vlaneseq }
   0x4   :  { %104 = vmatprep.subr.mxu0 %v73_v5  ;;  %181 = vmatprep.subr.mxu1 %v75_v6  ;;  %v71_v10 = vld [vmem:[%s691_s1 + $0x1b8] sm:$0xff]  ;;  %v68_v11 = vld [vmem:[%s691_s1 + $0x1a0] sm:$0xff]  ;;  %v70_v12 = vld [vmem:[%s691_s1 + $0x1b0] sm:$0xff] }
   0x5   :  { %105 = vmatpush1.msra.mxu0 %v72_v7  ;;  %182 = vmatpush1.msra.mxu1 %v74_v8  ;;  %v65_v13 = vld [vmem:[%s691_s1 + $0x188] sm:$0xff]  ;;  %v67_v14 = vld [vmem:[%s691_s1 + $0x198] sm:$0xff]  ;;  %v64_v15 = vld [vmem:[%s691_s1 + $0x180] sm:$0xff]  ;;  %v83_v5 = vshrl.u32 %v82_v4, 7 }
   0x6   :  { %106 = vmatprep.subr.mxu0 %v69_v9  ;;  %183 = vmatprep.subr.mxu1 %v71_v10  ;;  %v66_v16 = vld [vmem:[%s691_s1 + $0x190] sm:$0xff]  ;;  %v61_v17 = vld [vmem:[%s691_s1 + $0x168] sm:$0xff]  ;;  %v63_v18 = vld [vmem:[%s691_s1 + $0x178] sm:$0xff]  ;;  %v440_v10 = vmov 1983009808  }
   0x7   :  { %107 = vmatpush1.msra.mxu0 %v68_v11  ;;  %184 = vmatpush1.msra.mxu1 %v70_v12  ;;  %v60_v19 = vld [vmem:[%s691_s1 + $0x160] sm:$0xff]  ;;  %v62_v20 = vld [vmem:[%s691_s1 + $0x170] sm:$0xff]  ;;  %v57_v21 = vld [vmem:[%s691_s1 + $0x148] sm:$0xff]  ;;  %v88_v6 = vsub.s32 1, %v83_v5  ;;  %v84_v7 = vsub.s32 0, %v83_v5  ;;  %v96_v8 = vsub.s32 3, %v83_v5  ;;  %v269_v11 = vunpack.c.l.s4 %v440_v10 }
   0x8   :  { %108 = vmatprep.subr.mxu0 %v65_v13  ;;  %185 = vmatprep.subr.mxu1 %v67_v14  ;;  %v59_v22 = vld [vmem:[%s691_s1 + $0x158] sm:$0xff]  ;;  %v56_v23 = vld [vmem:[%s691_s1 + $0x140] sm:$0xff]  ;;  %v58_v24 = vld [vmem:[%s691_s1 + $0x150] sm:$0xff]  ;;  %v92_v12 = vsub.s32 2, %v83_v5 }
   0x9   :  { %109 = vmatpush1.msra.mxu0 %v64_v15  ;;  %186 = vmatpush1.msra.mxu1 %v66_v16  ;;  %v53_v25 = vld [vmem:[%s691_s1 + $0x128] sm:$0xff]  ;;  %v55_v26 = vld [vmem:[%s691_s1 + $0x138] sm:$0xff]  ;;  %v52_v27 = vld [vmem:[%s691_s1 + $0x120] sm:$0xff] }
   0xa   :  { %110 = vmatprep.subr.mxu0 %v61_v17  ;;  %187 = vmatprep.subr.mxu1 %v63_v18  ;;  %v54_v28 = vld [vmem:[%s691_s1 + $0x130] sm:$0xff]  ;;  %v49_v29 = vld [vmem:[%s691_s1 + $0x108] sm:$0xff]  ;;  %v51_v30 = vld [vmem:[%s691_s1 + $0x118] sm:$0xff]  ;;  %v270_v18 = vunpack.c.0.s8 %v269_v11 }
   0xb   :  { %111 = vmatpush1.msra.mxu0 %v60_v19  ;;  %188 = vmatpush1.msra.mxu1 %v62_v20  ;;  %v48_v31 = vld [vmem:[%s691_s1 + $0x100] sm:$0xff]  ;;  %v50_v32 = vld [vmem:[%s691_s1 + $0x110] sm:$0xff]  ;;  %v45_v33 = vld [vmem:[%s691_s1 + $0xe8] sm:$0xff] }
   0xc   :  { %112 = vmatprep.subr.mxu0 %v57_v21  ;;  %189 = vmatprep.subr.mxu1 %v59_v22  ;;  %v47_v34 = vld [vmem:[%s691_s1 + $0xf8] sm:$0xff]  ;;  %v44_v35 = vld [vmem:[%s691_s1 + $0xe0] sm:$0xff]  ;;  %v46_v36 = vld [vmem:[%s691_s1 + $0xf0] sm:$0xff]  ;;  %v441_v22 = vmov 1934713408  }
   0xd   :  { %113 = vmatpush1.msra.mxu0 %v56_v23  ;;  %190 = vmatpush1.msra.mxu1 %v58_v24  ;;  %v41_v37 = vld [vmem:[%s691_s1 + $0xc8] sm:$0xff]  ;;  %v43_v38 = vld [vmem:[%s691_s1 + $0xd8] sm:$0xff]  ;;  %v40_v39 = vld [vmem:[%s691_s1 + $0xc0] sm:$0xff]  ;;  %v347_v23 = vunpack.c.l.s4 %v441_v22 }
   0xe   :  { %114 = vmatprep.subr.mxu0 %v53_v25  ;;  %191 = vmatprep.subr.mxu1 %v55_v26  ;;  %v42_v40 = vld [vmem:[%s691_s1 + $0xd0] sm:$0xff]  ;;  %v37_v41 = vld [vmem:[%s691_s1 + $0xa8] sm:$0xff]  ;;  %v39_v42 = vld [vmem:[%s691_s1 + $0xb8] sm:$0xff] }
   0xf   :  { %115 = vmatpush1.msra.mxu0 %v52_v27  ;;  %192 = vmatpush1.msra.mxu1 %v54_v28  ;;  %v36_v43 = vld [vmem:[%s691_s1 + $0xa0] sm:$0xff]  ;;  %v38_v44 = vld [vmem:[%s691_s1 + $0xb0] sm:$0xff]  ;;  %v33_v45 = vld [vmem:[%s691_s1 + $0x88] sm:$0xff]  ;;  %v273_v28 = vsub.s32 %v270_v18, %v83_v5 }
  0x10   :  { %116 = vmatprep.subr.mxu0 %v49_v29  ;;  %193 = vmatprep.subr.mxu1 %v51_v30  ;;  %v35_v46 = vld [vmem:[%s691_s1 + $0x98] sm:$0xff]  ;;  %v32_v47 = vld [vmem:[%s691_s1 + $0x80] sm:$0xff]  ;;  %v34_v48 = vld [vmem:[%s691_s1 + $0x90] sm:$0xff] }
  0x11   :  { %117 = vmatpush1.msra.mxu0 %v48_v31  ;;  %194 = vmatpush1.msra.mxu1 %v50_v32  ;;  %v29_v49 = vld [vmem:[%s691_s1 + $0x68] sm:$0xff]  ;;  %v31_v50 = vld [vmem:[%s691_s1 + $0x78] sm:$0xff]  ;;  %v28_v51 = vld [vmem:[%s691_s1 + $0x60] sm:$0xff] }
  0x12   :  { %118 = vmatprep.subr.mxu0 %v45_v33  ;;  %195 = vmatprep.subr.mxu1 %v47_v34  ;;  %v30_v52 = vld [vmem:[%s691_s1 + $0x70] sm:$0xff]  ;;  %v25_v53 = vld [vmem:[%s691_s1 + $0x48] sm:$0xff]  ;;  %v27_v54 = vld [vmem:[%s691_s1 + $0x58] sm:$0xff]  ;;  %v348_v34 = vunpack.c.0.s8 %v347_v23 }
  0x13   :  { %119 = vmatpush1.msra.mxu0 %v44_v35  ;;  %196 = vmatpush1.msra.mxu1 %v46_v36  ;;  %v24_v55 = vld [vmem:[%s691_s1 + $0x40] sm:$0xff]  ;;  %v26_v56 = vld [vmem:[%s691_s1 + $0x50] sm:$0xff]  ;;  %v21_v57 = vld [vmem:[%s691_s1 + $0x28] sm:$0xff] }
  0x14   :  { %120 = vmatprep.subr.mxu0 %v41_v37  ;;  %197 = vmatprep.subr.mxu1 %v43_v38  ;;  %v23_v58 = vld [vmem:[%s691_s1 + $0x38] sm:$0xff]  ;;  %v20_v59 = vld [vmem:[%s691_s1 + $0x20] sm:$0xff]  ;;  %v22_v60 = vld [vmem:[%s691_s1 + $0x30] sm:$0xff] }
  0x15   :  { %121 = vmatpush1.msra.mxu0 %v40_v39  ;;  %198 = vmatpush1.msra.mxu1 %v42_v40  ;;  %v17_v61 = vld [vmem:[%s691_s1 + $0x8] sm:$0xff]  ;;  %v19_v62 = vld [vmem:[%s691_s1 + $0x18] sm:$0xff]  ;;  %v16_v63 = vld [vmem:[%s691_s1] sm:$0xff] }
  0x16   :  { %122 = vmatprep.subr.mxu0 %v37_v41  ;;  %199 = vmatprep.subr.mxu1 %v39_v42  ;;  %v18_v0 = vld [vmem:[%s691_s1 + $0x10] sm:$0xff]  ;;  %v14_v1 = vld [vmem:[%s692_s0] sm:$0xff]  ;;  %v15_v2 = vld [vmem:[%s692_s0 + $0x8] sm:$0xff] }
  0x17   :  { %123 = vmatpush1.msra.mxu0 %v36_v43  ;;  %200 = vmatpush1.msra.mxu1 %v38_v44  ;;  %v80_v9 = vld [vmem:[%s693_s2] sm:$0xf] }
  0x18   :  { %124 = vmatprep.subr.mxu0 %v33_v45  ;;  %201 = vmatprep.subr.mxu1 %v35_v46  ;;  %v89_v13 = vrot.slane %v80_v9, %v88_v6  ;;  %v85_v15 = vrot.slane %v80_v9, %v84_v7  ;;  %v97_v16 = vrot.slane %v80_v9, %v96_v8 }
  0x19   :  { %125 = vmatpush1.msra.mxu0 %v32_v47  ;;  %202 = vmatpush1.msra.mxu1 %v34_v48  ;;  %v93_v20 = vrot.slane %v80_v9, %v92_v12  ;;  %v351_v47 = vsub.s32 %v348_v34, %v83_v5 }
  0x1a   :  { %126 = vmatprep.subr.mxu0 %v29_v49  ;;  %203 = vmatprep.subr.mxu1 %v31_v50 }
  0x1b   :  { %127 = vmatpush1.msra.mxu0 %v28_v51  ;;  %204 = vmatpush1.msra.mxu1 %v30_v52 }
  0x1c   :  { %128 = vmatprep.subr.mxu0 %v25_v53  ;;  %205 = vmatprep.subr.mxu1 %v27_v54 }
  0x1d   :  { %129 = vmatpush1.msra.mxu0 %v24_v55  ;;  %206 = vmatpush1.msra.mxu1 %v26_v56 }
  0x1e   :  { %130 = vmatprep.subr.mxu0 %v21_v57  ;;  %207 = vmatprep.subr.mxu1 %v23_v58 }
  0x1f   :  { %131 = vmatpush1.msra.mxu0 %v20_v59  ;;  %208 = vmatpush1.msra.mxu1 %v22_v60 }
  0x20   :  { %132 = vmatprep.subr.mxu0 %v17_v61  ;;  %209 = vmatprep.subr.mxu1 %v19_v62 }
  0x21   :  { %133 = vmatpush1.msra.mxu0 %v16_v63  ;;  %210 = vmatpush1.msra.mxu1 %v18_v0 }
  0x22   :  { %167 = vmatmul.mubr.f32.vlgmr.msra.gmra.mxu0 %v14_v1  ;;  %244 = vmatmul.mubr.f32.vlgmr.msra.gmra.mxu1 %v14_v1 }
  0x23   :  { %172 = vmatprep.mubr.f32.mxu0 %v439_v3  ;;  %249 = vmatprep.mubr.f32.mxu1 %v439_v3 }
  0x26   :  { %173 = vmatmul.mubr.f32.gmra.mxu0 %v15_v2  ;;  %250 = vmatmul.mubr.f32.gmra.mxu1 %v15_v2 }
  0xe2   :  { %v168_v3 = vpop.f32.mrf.mxu0  ;;  %v245_v14 = vpop.f32.mrf.mxu1 }
  0xe3   :  { %v169_v26 = vadd.f32 %v168_v3, %v85_v15  ;;  %v246_v31 = vadd.f32 %v245_v14, %v93_v20 }
  0xe4   :  { %v170_v17 = vpop.f32.mrf.mxu0  ;;  %v247_v19 = vpop.f32.mrf.mxu1 }
  0xe5   :  { %v171_v21 = vadd.f32 %v170_v17, %v89_v13  ;;  %v248_v27 = vadd.f32 %v247_v19, %v97_v16 }
  0xe6   :  { %v174_v24 = vpop.f32.mrf.mxu0  ;;  %v251_v25 = vpop.f32.mrf.mxu1 }
  0xe7   :  { %v264_v32 = vcombine.low %v169_v26, %v171_v21  ;;  %v265_v33 = vcombine.high %v169_v26, %v171_v21  ;;  %v175_v35 = vadd.f32 %v174_v24, %v85_v15  ;;  %v252_v36 = vadd.f32 %v251_v25, %v93_v20 }
  0xe8   :  { %v176_v29 = vpop.f32.mrf.mxu0  ;;  %v253_v30 = vpop.f32.mrf.mxu1  ;;  %v266_v39 = vcombine.low %v246_v31, %v248_v27  ;;  %v267_v40 = vcombine.high %v246_v31, %v248_v27 }
  0xe9   :  { %v177_v37 = vadd.f32 %v176_v29, %v89_v13  ;;  %v254_v38 = vadd.f32 %v253_v30, %v97_v16  ;;  %v274_v45 = vrot.slane %v264_v32, %v273_v28  ;;  %v281_v46 = vrot.slane %v265_v33, %v273_v28 }
  0xea   :  { %v288_v52 = vrot.slane %v266_v39, %v273_v28  ;;  %v295_v53 = vrot.slane %v267_v40, %v273_v28 }
  0xeb   :  { %v300_v41 = vcombine.low %v175_v35, %v177_v37  ;;  %v301_v42 = vcombine.high %v175_v35, %v177_v37  ;;  %v302_v43 = vcombine.low %v252_v36, %v254_v38  ;;  %v303_v44 = vcombine.high %v252_v36, %v254_v38 }
  0xed   :  { %v310_v48 = vrot.slane %v300_v41, %v273_v28  ;;  %v317_v49 = vrot.slane %v301_v42, %v273_v28  ;;  %v324_v50 = vrot.slane %v302_v43, %v273_v28  ;;  %v331_v51 = vrot.slane %v303_v44, %v273_v28 }
  0xef   :  { %v428_v54 = vcombine.low %v274_v45, %v310_v48  ;;  %v430_v55 = vcombine.high %v274_v45, %v310_v48  ;;  %v432_v56 = vcombine.low %v281_v46, %v317_v49  ;;  %v434_v57 = vcombine.high %v281_v46, %v317_v49 }
  0xf0   :  { %v429_v58 = vcombine.low %v288_v52, %v324_v50  ;;  %v431_v59 = vcombine.high %v288_v52, %v324_v50  ;;  %v433_v60 = vcombine.low %v295_v53, %v331_v51  ;;  %v435_v61 = vcombine.high %v295_v53, %v331_v51 }
  0xf1   :  { %v352_v62 = vrot.slane %v428_v54, %v351_v47  ;;  %v370_v63 = vrot.slane %v430_v55, %v351_v47  ;;  %v388_v0 = vrot.slane %v432_v56, %v351_v47  ;;  %v406_v1 = vrot.slane %v434_v57, %v351_v47 }
  0xf2   :  { %v359_v2 = vrot.slane %v429_v58, %v351_v47  ;;  %v377_v4 = vrot.slane %v431_v59, %v351_v47  ;;  %v395_v5 = vrot.slane %v433_v60, %v351_v47  ;;  %v413_v6 = vrot.slane %v435_v61, %v351_v47 }
  0xf4   :  { %v360_v7 = vcombine.low %v352_v62, %v359_v2  ;;  %v361_v8 = vcombine.high %v352_v62, %v359_v2  ;;  %v378_v9 = vcombine.low %v370_v63, %v377_v4  ;;  %v379_v10 = vcombine.high %v370_v63, %v377_v4 }
  0xf5   :  { %v396_v11 = vcombine.low %v388_v0, %v395_v5  ;;  %v397_v12 = vcombine.high %v388_v0, %v395_v5  ;;  %v414_v13 = vcombine.low %v406_v1, %v413_v6  ;;  %v415_v3 = vcombine.high %v406_v1, %v413_v6 }
  0xf6   :  { %416 = vst [vmem:[%s694_s3] sm:$0xff] %v360_v7  ;;  %417 = vst [vmem:[%s694_s3 + $0x8] sm:$0xff] %v361_v8 }
  0xf7   :  { %418 = vst [vmem:[%s694_s3 + $0x10] sm:$0xff] %v378_v9  ;;  %419 = vst [vmem:[%s694_s3 + $0x18] sm:$0xff] %v379_v10 }
  0xf8   :  { %420 = vst [vmem:[%s694_s3 + $0x20] sm:$0xff] %v396_v11  ;;  %421 = vst [vmem:[%s694_s3 + $0x28] sm:$0xff] %v397_v12 }
  0xf9   :  { %422 = vst [vmem:[%s694_s3 + $0x30] sm:$0xff] %v414_v13  ;;  %423 = vst [vmem:[%s694_s3 + $0x38] sm:$0xff] %v415_v3 }

// kernel: encoder_lstm_forward.5
= control target key start
LH: loop header
LB: loop body
LE: loop exit
PB: predicated region body
PF: predicated region fallthrough
CT: control target
= control target key end

     0   :  { %12 = vsyncpa [#allocation6], 0  ;;  %s2392_s21 = smov [#allocation5]   ;;  %s3358_s0 = inlined_call_operand.vmem [shape: f32[8,2,512], index: 0, kind: input, shape index: {}]   ;;  %s3359_s1 = inlined_call_operand.hbm [shape: f32[128,512], index: 1, kind: input, shape index: {}]   ;;  %s3360_s2 = inlined_call_operand.vmem [shape: f32[2,128], index: 2, kind: input, shape index: {}]   ;;  %s3361_s3 = inlined_call_operand.vmem [shape: f32[2,128], index: 3, kind: input, shape index: {}]   ;;  %s3362_s4 = inlined_call_operand.vmem [shape: f32[2,8,128], index: 4, kind: output, shape index: {0}]   ;;  %s3363_s5 = inlined_call_operand.vmem [shape: f32[2,128], index: 5, kind: output, shape index: {1}]   ;;  %s3364_s6 = inlined_call_operand.vmem [shape: f32[2,128], index: 6, kind: output, shape index: {2}]  }
   0x1   :  { %s20_s22 = sshll.u32 %s2392_s21, 4  ;;  %s21_s22 = int_to_ptr.vmem [resolvable:$true] %s20_s22 }
   0x2   :  { %s2378_s23 = scalar_lea.vmem %s21_s22, 8192  ;;  %p2383_p1 = scmp.lt.s32.totalorder %s21_s22, %s21_s22 }
   0x3   :  { %p2379_p0 = scmp.ne.s32.totalorder %s21_s22, %s2378_s23  ;;  %p2384_p2 = scmp.lt.s32.totalorder %s2378_s23, %s2378_s23 }
   0x5   :  { %p2385_p3 = por %p2384_p2, %p2383_p1 }
   0x7   :  { %p2386_p4 = pnand %p2385_p3, %p2379_p0 }
   0x9   :  { %2389 = shalt.err (!%p2386_p4)
}
   0xa   :  { %s2393_s24 = smov 512   ;;  %s2394_s25 = smov 32  }
   0xb   :  { %26 = dma.hbm_to_vmem [thread:$0]  %s3359_s1, 8192, %s21_s22, [#allocation6], %s2393_s24, %s2393_s24, %s2394_s25  }
   0xc   :  { %2390 = dma.done.wait [#allocation6], 8192  }
   0xd   :  { %2391 = vsyncadd [#allocation6], 4294959104  ;;  %v3365_v0 = vmov 0.0   ;;  %v2438_v1 = vld [vmem:[#allocation5 + $0x1e8] sm:$0xff]  ;;  %v2440_v2 = vld [vmem:[#allocation5 + $0x1e0] sm:$0xff] }
   0xe   :  { %195 = vmatprep.mubr.f32.mxu0 %v3365_v0  ;;  %266 = vmatprep.mubr.f32.mxu1 %v3365_v0  ;;  %v2442_v3 = vld [vmem:[#allocation5 + $0x1c8] sm:$0xff]  ;;  %v2445_v4 = vld [vmem:[#allocation5 + $0x1c0] sm:$0xff]  ;;  %v2459_v9 = vld [vmem:[#allocation5 + $0x1f8] sm:$0xff] }
   0xf   :  { %131 = vmatprep.subr.mxu0 %v2438_v1  ;;  %v2448_v5 = vld [vmem:[#allocation5 + $0x1a8] sm:$0xff]  ;;  %v2451_v6 = vld [vmem:[#allocation5 + $0x1a0] sm:$0xff]  ;;  %3446 = vst [vmem:[#allocation8_spill] sm:$0xff] %v2459_v9  ;;  %202 = vmatprep.subr.mxu1 %v2459_v9  ;;  %v2465_v11 = vld [vmem:[#allocation5 + $0x1f0] sm:$0xff] }
  0x10   :  { %132 = vmatpush1.msra.mxu0 %v2440_v2  ;;  %v2454_v7 = vld [vmem:[#allocation5 + $0x188] sm:$0xff]  ;;  %v2457_v8 = vld [vmem:[#allocation5 + $0x180] sm:$0xff]  ;;  %203 = vmatpush1.msra.mxu1 %v2465_v11  ;;  %v2471_v13 = vld [vmem:[#allocation5 + $0x1d8] sm:$0xff] }
  0x11   :  { %133 = vmatprep.subr.mxu0 %v2442_v3  ;;  %v2462_v10 = vld [vmem:[#allocation5 + $0x168] sm:$0xff]  ;;  %v2468_v12 = vld [vmem:[#allocation5 + $0x160] sm:$0xff]  ;;  %v2473_v14 = vld [vmem:[#allocation5 + $0x1d0] sm:$0xff]  ;;  %204 = vmatprep.subr.mxu1 %v2471_v13 }
  0x12   :  { %134 = vmatpush1.msra.mxu0 %v2445_v4  ;;  %v2476_v15 = vld [vmem:[#allocation5 + $0x148] sm:$0xff]  ;;  %v2479_v16 = vld [vmem:[#allocation5 + $0x1b8] sm:$0xff]  ;;  %v2482_v17 = vld [vmem:[#allocation5 + $0x140] sm:$0xff]  ;;  %205 = vmatpush1.msra.mxu1 %v2473_v14 }
  0x13   :  { %135 = vmatprep.subr.mxu0 %v2448_v5  ;;  %v2485_v18 = vld [vmem:[#allocation5 + $0x1b0] sm:$0xff]  ;;  %v2487_v19 = vld [vmem:[#allocation5 + $0x198] sm:$0xff]  ;;  %v2490_v20 = vld [vmem:[#allocation5 + $0x128] sm:$0xff]  ;;  %206 = vmatprep.subr.mxu1 %v2479_v16 }
  0x14   :  { %136 = vmatpush1.msra.mxu0 %v2451_v6  ;;  %v2493_v21 = vld [vmem:[#allocation5 + $0x190] sm:$0xff]  ;;  %v2496_v22 = vld [vmem:[#allocation5 + $0x120] sm:$0xff]  ;;  %207 = vmatpush1.msra.mxu1 %v2485_v18  ;;  %v2499_v23 = vld [vmem:[#allocation5 + $0x178] sm:$0xff] }
  0x15   :  { %137 = vmatprep.subr.mxu0 %v2454_v7  ;;  %v2502_v24 = vld [vmem:[#allocation5 + $0x108] sm:$0xff]  ;;  %208 = vmatprep.subr.mxu1 %v2487_v19  ;;  %v2505_v25 = vld [vmem:[#allocation5 + $0x170] sm:$0xff]  ;;  %v2508_v26 = vld [vmem:[#allocation5 + $0x100] sm:$0xff] }
  0x16   :  { %138 = vmatpush1.msra.mxu0 %v2457_v8  ;;  %209 = vmatpush1.msra.mxu1 %v2493_v21  ;;  %v2511_v27 = vld [vmem:[#allocation5 + $0x158] sm:$0xff]  ;;  %v2514_v28 = vld [vmem:[#allocation5 + $0xe8] sm:$0xff]  ;;  %v2517_v29 = vld [vmem:[#allocation5 + $0x150] sm:$0xff] }
  0x17   :  { %139 = vmatprep.subr.mxu0 %v2462_v10  ;;  %210 = vmatprep.subr.mxu1 %v2499_v23  ;;  %v2520_v30 = vld [vmem:[#allocation5 + $0xe0] sm:$0xff]  ;;  %v2523_v31 = vld [vmem:[#allocation5 + $0x138] sm:$0xff]  ;;  %v2526_v32 = vld [vmem:[#allocation5 + $0xc8] sm:$0xff] }
  0x18   :  { %140 = vmatpush1.msra.mxu0 %v2468_v12  ;;  %211 = vmatpush1.msra.mxu1 %v2505_v25  ;;  %v2529_v33 = vld [vmem:[#allocation5 + $0x130] sm:$0xff]  ;;  %v38_v34 = vld [vmem:[%s3360_s2] sm:$0x3]  ;;  %v2535_v35 = vld [vmem:[#allocation5 + $0xc0] sm:$0xff] }
  0x19   :  { %141 = vmatprep.subr.mxu0 %v2476_v15  ;;  %212 = vmatprep.subr.mxu1 %v2511_v27  ;;  %v2538_v36 = vld [vmem:[#allocation5 + $0x118] sm:$0xff]  ;;  %39 = vst [vmem:[#allocation2] sm:$0x3] %v38_v34  ;;  %v2541_v37 = vld [vmem:[#allocation5 + $0xa8] sm:$0xff]  ;;  %v2544_v38 = vld [vmem:[#allocation5 + $0x110] sm:$0xff] }
  0x1a   :  { %142 = vmatpush1.msra.mxu0 %v2482_v17  ;;  %213 = vmatpush1.msra.mxu1 %v2517_v29  ;;  %v2547_v39 = vld [vmem:[#allocation5 + $0xa0] sm:$0xff]  ;;  %v2550_v40 = vld [vmem:[#allocation5 + $0xf8] sm:$0xff]  ;;  %v2553_v41 = vld [vmem:[#allocation5 + $0x88] sm:$0xff] }
  0x1b   :  { %143 = vmatprep.subr.mxu0 %v2490_v20  ;;  %214 = vmatprep.subr.mxu1 %v2523_v31  ;;  %v2556_v42 = vld [vmem:[#allocation5 + $0xf0] sm:$0xff]  ;;  %v2559_v43 = vld [vmem:[#allocation5 + $0x80] sm:$0xff]  ;;  %v2562_v44 = vld [vmem:[#allocation5 + $0xd8] sm:$0xff] }
  0x1c   :  { %144 = vmatpush1.msra.mxu0 %v2496_v22  ;;  %215 = vmatpush1.msra.mxu1 %v2529_v33  ;;  %3447 = vst [vmem:[#allocation9_spill] sm:$0xff] %v2559_v43  ;;  %v2565_v45 = vld [vmem:[#allocation5 + $0x68] sm:$0xff]  ;;  %v2568_v46 = vld [vmem:[#allocation5 + $0xd0] sm:$0xff]  ;;  %v2571_v47 = vld [vmem:[#allocation5 + $0x60] sm:$0xff] }
  0x1d   :  { %145 = vmatprep.subr.mxu0 %v2502_v24  ;;  %216 = vmatprep.subr.mxu1 %v2538_v36  ;;  %3448 = vst [vmem:[#allocation10_spill] sm:$0xff] %v2565_v45  ;;  %3449 = vst [vmem:[#allocation11_spill] sm:$0xff] %v2571_v47  ;;  %v2574_v48 = vld [vmem:[#allocation5 + $0xb8] sm:$0xff]  ;;  %v2577_v49 = vld [vmem:[#allocation5 + $0x48] sm:$0xff] }
  0x1e   :  { %146 = vmatpush1.msra.mxu0 %v2508_v26  ;;  %217 = vmatpush1.msra.mxu1 %v2544_v38  ;;  %3450 = vst [vmem:[#allocation12_spill] sm:$0xff] %v2577_v49  ;;  %v2580_v50 = vld [vmem:[#allocation5 + $0xb0] sm:$0xff]  ;;  %v2583_v51 = vld [vmem:[#allocation5 + $0x40] sm:$0xff]  ;;  %v2586_v52 = vld [vmem:[#allocation5 + $0x98] sm:$0xff] }
  0x1f   :  { %147 = vmatprep.subr.mxu0 %v2514_v28  ;;  %218 = vmatprep.subr.mxu1 %v2550_v40  ;;  %3451 = vst [vmem:[#allocation13_spill] sm:$0xff] %v2583_v51  ;;  %3452 = vst [vmem:[#allocation14_spill] sm:$0xff] %v2586_v52  ;;  %v2589_v53 = vld [vmem:[#allocation5 + $0x28] sm:$0xff]  ;;  %v2592_v54 = vld [vmem:[#allocation5 + $0x90] sm:$0xff] }
  0x20   :  { %148 = vmatpush1.msra.mxu0 %v2520_v30  ;;  %219 = vmatpush1.msra.mxu1 %v2556_v42  ;;  %3453 = vst [vmem:[#allocation15_spill] sm:$0xff] %v2589_v53  ;;  %3454 = vst [vmem:[#allocation16_spill] sm:$0xff] %v2592_v54  ;;  %v2595_v55 = vld [vmem:[#allocation5 + $0x20] sm:$0xff]  ;;  %v2598_v56 = vld [vmem:[#allocation5 + $0x78] sm:$0xff] }
  0x21   :  { %149 = vmatprep.subr.mxu0 %v2526_v32  ;;  %220 = vmatprep.subr.mxu1 %v2562_v44  ;;  %3455 = vst [vmem:[#allocation17_spill] sm:$0xff] %v2595_v55  ;;  %3456 = vst [vmem:[#allocation18_spill] sm:$0xff] %v2598_v56  ;;  %v2601_v57 = vld [vmem:[#allocation5 + $0x8] sm:$0xff]  ;;  %v2604_v58 = vld [vmem:[#allocation5 + $0x70] sm:$0xff] }
  0x22   :  { %150 = vmatpush1.msra.mxu0 %v2535_v35  ;;  %221 = vmatpush1.msra.mxu1 %v2568_v46  ;;  %3457 = vst [vmem:[#allocation19_spill] sm:$0xff] %v2601_v57  ;;  %3458 = vst [vmem:[#allocation20_spill] sm:$0xff] %v2604_v58  ;;  %v2607_v59 = vld [vmem:[#allocation5] sm:$0xff]  ;;  %v2610_v60 = vld [vmem:[#allocation5 + $0x58] sm:$0xff] }
  0x23   :  { %151 = vmatprep.subr.mxu0 %v2541_v37  ;;  %222 = vmatprep.subr.mxu1 %v2574_v48  ;;  %3459 = vst [vmem:[#allocation21_spill] sm:$0xff] %v2607_v59  ;;  %3460 = vst [vmem:[#allocation22_spill] sm:$0xff] %v2610_v60  ;;  %v42_v61 = vld [vmem:[#allocation2] sm:$0x3]  ;;  %v2614_v62 = vld [vmem:[#allocation5 + $0x50] sm:$0xff] }
  0x24   :  { %152 = vmatpush1.msra.mxu0 %v2547_v39  ;;  %223 = vmatpush1.msra.mxu1 %v2580_v50  ;;  %3461 = vst [vmem:[#allocation23_spill] sm:$0xff] %v2614_v62  ;;  %v2618_v63 = vld [vmem:[#allocation5 + $0x38] sm:$0xff]  ;;  %v2622_v34 = vld [vmem:[#allocation5 + $0x30] sm:$0xff] }
  0x25   :  { %153 = vmatprep.subr.mxu0 %v2553_v41  ;;  %224 = vmatprep.subr.mxu1 %v2586_v52  ;;  %3462 = vst [vmem:[#allocation24_spill] sm:$0xff] %v2618_v63  ;;  %3463 = vst [vmem:[#allocation25_spill] sm:$0xff] %v2622_v34  ;;  %v2625_v0 = vld [vmem:[#allocation5 + $0x18] sm:$0xff] }
  0x26   :  { %154 = vmatpush1.msra.mxu0 %v2559_v43  ;;  %225 = vmatpush1.msra.mxu1 %v2592_v54  ;;  %3464 = vst [vmem:[#allocation26_spill] sm:$0xff] %v2625_v0 }
  0x27   :  { %155 = vmatprep.subr.mxu0 %v2565_v45  ;;  %226 = vmatprep.subr.mxu1 %v2598_v56 }
  0x28   :  { %156 = vmatpush1.msra.mxu0 %v2571_v47  ;;  %227 = vmatpush1.msra.mxu1 %v2604_v58 }
  0x29   :  { %157 = vmatprep.subr.mxu0 %v2577_v49  ;;  %228 = vmatprep.subr.mxu1 %v2610_v60 }
  0x2a   :  { %158 = vmatpush1.msra.mxu0 %v2583_v51  ;;  %229 = vmatpush1.msra.mxu1 %v2614_v62 }
  0x2b   :  { %159 = vmatprep.subr.mxu0 %v2589_v53  ;;  %230 = vmatprep.subr.mxu1 %v2618_v63 }
  0x2c   :  { %160 = vmatpush1.msra.mxu0 %v2595_v55  ;;  %v2628_v55 = vld [vmem:[#allocation5 + $0x10] sm:$0xff]  ;;  %231 = vmatpush1.msra.mxu1 %v2622_v34 }
  0x2d   :  { %161 = vmatprep.subr.mxu0 %v2601_v57  ;;  %3465 = vst [vmem:[#allocation27_spill] sm:$0xff] %v2628_v55  ;;  %232 = vmatprep.subr.mxu1 %v2625_v0 }
  0x2e   :  { %162 = vmatpush1.msra.mxu0 %v2607_v59  ;;  %233 = vmatpush1.msra.mxu1 %v2628_v55 }
  0x2f   :  { %196 = vmatmul.mubr.f32.vlgmr.msra.gmra.mxu0 %v42_v61  ;;  %390 = vmatprep.subr.mxu0 %v2438_v1 }
  0x30   :  { %391 = vmatpush1.msra.mxu0 %v2440_v2  ;;  %267 = vmatmul.mubr.f32.vlgmr.msra.gmra.mxu1 %v42_v61  ;;  %v3466_v61 = vld [vmem:[#allocation17_spill] sm:$0xff] }
  0x31   :  { %392 = vmatprep.subr.mxu0 %v2442_v3  ;;  %461 = vmatprep.subr.mxu1 %v2459_v9 }
  0x32   :  { %393 = vmatpush1.msra.mxu0 %v2445_v4  ;;  %462 = vmatpush1.msra.mxu1 %v2465_v11 }
  0x33   :  { %394 = vmatprep.subr.mxu0 %v2448_v5  ;;  %463 = vmatprep.subr.mxu1 %v2471_v13 }
  0x34   :  { %395 = vmatpush1.msra.mxu0 %v2451_v6  ;;  %464 = vmatpush1.msra.mxu1 %v2473_v14 }
  0x35   :  { %396 = vmatprep.subr.mxu0 %v2454_v7  ;;  %465 = vmatprep.subr.mxu1 %v2479_v16 }
  0x36   :  { %397 = vmatpush1.msra.mxu0 %v2457_v8  ;;  %466 = vmatpush1.msra.mxu1 %v2485_v18 }
  0x37   :  { %398 = vmatprep.subr.mxu0 %v2462_v10  ;;  %467 = vmatprep.subr.mxu1 %v2487_v19 }
  0x38   :  { %399 = vmatpush1.msra.mxu0 %v2468_v12  ;;  %468 = vmatpush1.msra.mxu1 %v2493_v21 }
  0x39   :  { %400 = vmatprep.subr.mxu0 %v2476_v15  ;;  %469 = vmatprep.subr.mxu1 %v2499_v23 }
  0x3a   :  { %401 = vmatpush1.msra.mxu0 %v2482_v17  ;;  %470 = vmatpush1.msra.mxu1 %v2505_v25 }
  0x3b   :  { %402 = vmatprep.subr.mxu0 %v2490_v20  ;;  %471 = vmatprep.subr.mxu1 %v2511_v27 }
  0x3c   :  { %403 = vmatpush1.msra.mxu0 %v2496_v22  ;;  %472 = vmatpush1.msra.mxu1 %v2517_v29 }
  0x3d   :  { %404 = vmatprep.subr.mxu0 %v2502_v24  ;;  %473 = vmatprep.subr.mxu1 %v2523_v31 }
  0x3e   :  { %405 = vmatpush1.msra.mxu0 %v2508_v26  ;;  %474 = vmatpush1.msra.mxu1 %v2529_v33 }
  0x3f   :  { %406 = vmatprep.subr.mxu0 %v2514_v28  ;;  %475 = vmatprep.subr.mxu1 %v2538_v36 }
  0x40   :  { %407 = vmatpush1.msra.mxu0 %v2520_v30  ;;  %476 = vmatpush1.msra.mxu1 %v2544_v38 }
  0x41   :  { %408 = vmatprep.subr.mxu0 %v2526_v32  ;;  %477 = vmatprep.subr.mxu1 %v2550_v40 }
  0x42   :  { %409 = vmatpush1.msra.mxu0 %v2535_v35  ;;  %478 = vmatpush1.msra.mxu1 %v2556_v42 }
  0x43   :  { %410 = vmatprep.subr.mxu0 %v2541_v37  ;;  %479 = vmatprep.subr.mxu1 %v2562_v44 }
  0x44   :  { %411 = vmatpush1.msra.mxu0 %v2547_v39  ;;  %480 = vmatpush1.msra.mxu1 %v2568_v46 }
  0x45   :  { %412 = vmatprep.subr.mxu0 %v2553_v41  ;;  %481 = vmatprep.subr.mxu1 %v2574_v48 }
  0x46   :  { %413 = vmatpush1.msra.mxu0 %v2559_v43  ;;  %482 = vmatpush1.msra.mxu1 %v2580_v50 }
  0x47   :  { %414 = vmatprep.subr.mxu0 %v2565_v45  ;;  %483 = vmatprep.subr.mxu1 %v2586_v52 }
  0x48   :  { %415 = vmatpush1.msra.mxu0 %v2571_v47  ;;  %484 = vmatpush1.msra.mxu1 %v2592_v54 }
  0x49   :  { %416 = vmatprep.subr.mxu0 %v2577_v49  ;;  %485 = vmatprep.subr.mxu1 %v2598_v56  ;;  %v3467_v49 = vmov 0.0  }
  0x4a   :  { %417 = vmatpush1.msra.mxu0 %v2583_v51  ;;  %486 = vmatpush1.msra.mxu1 %v2604_v58 }
  0x4b   :  { %418 = vmatprep.subr.mxu0 %v2589_v53  ;;  %487 = vmatprep.subr.mxu1 %v2610_v60 }
  0x4c   :  { %419 = vmatpush1.msra.mxu0 %v3466_v61  ;;  %488 = vmatpush1.msra.mxu1 %v2614_v62 }
  0x4d   :  { %420 = vmatprep.subr.mxu0 %v2601_v57  ;;  %489 = vmatprep.subr.mxu1 %v2618_v63  ;;  %v40_v57 = vld [vmem:[%s3361_s3] sm:$0x3] }
  0x4e   :  { %421 = vmatpush1.msra.mxu0 %v2607_v59  ;;  %490 = vmatpush1.msra.mxu1 %v2622_v34  ;;  %41 = vst [vmem:[#allocation3] sm:$0x3] %v40_v57  ;;  %v2396_v59 = vmov 1983009808   ;;  %v114_v34 = vlaneseq }
  0x4f   :  { %454 = vmatprep.mubr.f32.mxu0 %v3467_v49  ;;  %491 = vmatprep.subr.mxu1 %v2625_v0  ;;  %v112_v61 = vunpack.c.l.s4 %v2396_v59 }
  0x50   :  { %525 = vmatprep.mubr.f32.mxu1 %v3467_v49  ;;  %492 = vmatpush1.msra.mxu1 %v2628_v55  ;;  %v2704_v53 = vshrl.u32 %v114_v34, 7 }
  0x51   :  { %650 = vmatprep.subr.mxu0 %v2438_v1  ;;  %721 = vmatprep.subr.mxu1 %v2459_v9  ;;  %v113_v63 = vunpack.c.0.s8 %v112_v61  ;;  %v108_v1 = vld [vmem:[%s3358_s0] sm:$0xff] }
  0x52   :  { %3468 = vst [vmem:[#allocation28_spill] sm:$0xff] %v2704_v53  ;;  %v110_v62 = vcombine.high %v108_v1, %v108_v1 }
  0x53   :  { %v2707_v0 = vsub.s32 %v113_v63, %v2704_v53 }
  0x55   :  { %v117_v9 = vrot.slane %v108_v1, %v2707_v0  ;;  %v124_v61 = vrot.slane %v110_v62, %v2707_v0 }
  0x57   :  { %v125_v55 = vcombine.high %v117_v9, %v117_v9  ;;  %v126_v63 = vcombine.high %v124_v61, %v124_v61 }
  0xef   :  { %v197_v49 = vpop.f32.mrf.mxu0 }
  0xf0   :  { %v198_v51 = vadd.f32 %v197_v49, %v117_v9  ;;  %v268_v58 = vpop.f32.mrf.mxu1 }
  0xf1   :  { %v199_v57 = vpop.f32.mrf.mxu0  ;;  %v269_v56 = vadd.f32 %v268_v58, %v124_v61 }
  0xf2   :  { %v2197_v60 = vmul.f32 -1.442695, %v198_v51  ;;  %v200_v59 = vadd.f32 %v199_v57, %v125_v55  ;;  %v270_v53 = vpop.f32.mrf.mxu1 }
  0xf3   :  { %v271_v47 = vadd.f32 %v270_v53, %v126_v63 }
  0xf4   :  { %2242 = vpow2.f32 %v2197_v60  ;;  %v2198_v34 = vmul.f32 -1.442695, %v200_v59  ;;  %v43_v60 = vld [vmem:[#allocation3] sm:$0x3] }
  0xf5   :  { %v2199_v45 = vmul.f32 -1.442695, %v271_v47 }
  0xf6   :  { %2244 = vpow2.f32 %v2198_v34 }
  0xf7   :  { %2246 = vtanh.f32 %v269_v56 }
  0xf8   :  { %2248 = vpow2.f32 %v2199_v45 }
 0x101   :  { %v2243_v54 = vpop.eup %2242 }
 0x102   :  { %v276_v43 = vadd.f32 1.0, %v2243_v54 }
 0x103   :  { %v2245_v52 = vpop.eup %2244 }
 0x104   :  { %2250 = vrcp.f32 %v276_v43  ;;  %v282_v9 = vadd.f32 1.0, %v2245_v52  ;;  %v2247_v49 = vpop.eup %2246 }
 0x105   :  { %v2249_v51 = vpop.eup %2248 }
 0x106   :  { %2252 = vrcp.f32 %v282_v9  ;;  %v289_v1 = vadd.f32 1.0, %v2249_v51 }
 0x108   :  { %2254 = vrcp.f32 %v289_v1 }
 0x111   :  { %v2251_v55 = vpop.eup %2250 }
 0x112   :  { %v293_v59 = vmul.f32 %v2251_v55, %v2247_v49 }
 0x113   :  { %v2253_v62 = vpop.eup %2252 }
 0x114   :  { %v292_v57 = vmul.f32 %v2253_v62, %v43_v60 }
 0x115   :  { %v2255_v47 = vpop.eup %2254 }
 0x116   :  { %v294_v34 = vadd.f32 %v293_v59, %v292_v57 }
 0x118   :  { %2256 = vtanh.f32 %v294_v34  ;;  %298 = vst [vmem:[#allocation3] sm:$0x3] %v294_v34 }
 0x125   :  { %v2257_v53 = vpop.eup %2256 }
 0x126   :  { %v296_v54 = vmul.f32 %v2257_v53, %v2255_v47 }
 0x128   :  { %297 = vst [vmem:[#allocation2] sm:$0x3] %v296_v54  ;;  %299 = vst [vmem:[#allocation4] sm:$0x3] %v296_v54 }
 0x12f   :  { %v300_v43 = vld [vmem:[#allocation2] sm:$0x3] }
 0x130   :  { %455 = vmatmul.mubr.f32.vlgmr.msra.gmra.mxu0 %v300_v43  ;;  %526 = vmatmul.mubr.f32.vlgmr.msra.gmra.mxu1 %v300_v43 }
 0x131   :  { %651 = vmatpush1.msra.mxu0 %v2440_v2  ;;  %722 = vmatpush1.msra.mxu1 %v2465_v11  ;;  %v3469_v2 = vld [vmem:[#allocation14_spill] sm:$0xff] }
 0x132   :  { %652 = vmatprep.subr.mxu0 %v2442_v3  ;;  %723 = vmatprep.subr.mxu1 %v2471_v13  ;;  %v3470_v3 = vld [vmem:[#allocation9_spill] sm:$0xff] }
 0x133   :  { %653 = vmatpush1.msra.mxu0 %v2445_v4  ;;  %724 = vmatpush1.msra.mxu1 %v2473_v14  ;;  %v3471_v4 = vld [vmem:[#allocation16_spill] sm:$0xff] }
 0x134   :  { %654 = vmatprep.subr.mxu0 %v2448_v5  ;;  %725 = vmatprep.subr.mxu1 %v2479_v16  ;;  %v3472_v5 = vld [vmem:[#allocation10_spill] sm:$0xff] }
 0x135   :  { %655 = vmatpush1.msra.mxu0 %v2451_v6  ;;  %726 = vmatpush1.msra.mxu1 %v2485_v18  ;;  %v3473_v6 = vld [vmem:[#allocation18_spill] sm:$0xff] }
 0x136   :  { %656 = vmatprep.subr.mxu0 %v2454_v7  ;;  %727 = vmatprep.subr.mxu1 %v2487_v19  ;;  %v3474_v7 = vld [vmem:[#allocation11_spill] sm:$0xff] }
 0x137   :  { %657 = vmatpush1.msra.mxu0 %v2457_v8  ;;  %728 = vmatpush1.msra.mxu1 %v2493_v21  ;;  %v3475_v8 = vld [vmem:[#allocation20_spill] sm:$0xff] }
 0x138   :  { %658 = vmatprep.subr.mxu0 %v2462_v10  ;;  %729 = vmatprep.subr.mxu1 %v2499_v23  ;;  %v3476_v10 = vld [vmem:[#allocation12_spill] sm:$0xff] }
 0x139   :  { %659 = vmatpush1.msra.mxu0 %v2468_v12  ;;  %730 = vmatpush1.msra.mxu1 %v2505_v25  ;;  %v3477_v12 = vld [vmem:[#allocation22_spill] sm:$0xff] }
 0x13a   :  { %660 = vmatprep.subr.mxu0 %v2476_v15  ;;  %731 = vmatprep.subr.mxu1 %v2511_v27  ;;  %v3478_v15 = vld [vmem:[#allocation13_spill] sm:$0xff] }
 0x13b   :  { %661 = vmatpush1.msra.mxu0 %v2482_v17  ;;  %732 = vmatpush1.msra.mxu1 %v2517_v29  ;;  %v3479_v17 = vld [vmem:[#allocation23_spill] sm:$0xff] }
 0x13c   :  { %662 = vmatprep.subr.mxu0 %v2490_v20  ;;  %733 = vmatprep.subr.mxu1 %v2523_v31  ;;  %v3480_v20 = vld [vmem:[#allocation15_spill] sm:$0xff] }
 0x13d   :  { %663 = vmatpush1.msra.mxu0 %v2496_v22  ;;  %734 = vmatpush1.msra.mxu1 %v2529_v33  ;;  %v3481_v22 = vld [vmem:[#allocation24_spill] sm:$0xff] }
 0x13e   :  { %664 = vmatprep.subr.mxu0 %v2502_v24  ;;  %735 = vmatprep.subr.mxu1 %v2538_v36  ;;  %v3482_v24 = vld [vmem:[#allocation17_spill] sm:$0xff] }
 0x13f   :  { %665 = vmatpush1.msra.mxu0 %v2508_v26  ;;  %736 = vmatpush1.msra.mxu1 %v2544_v38  ;;  %v3483_v26 = vld [vmem:[#allocation25_spill] sm:$0xff] }
 0x140   :  { %666 = vmatprep.subr.mxu0 %v2514_v28  ;;  %737 = vmatprep.subr.mxu1 %v2550_v40  ;;  %v3484_v28 = vld [vmem:[#allocation19_spill] sm:$0xff] }
 0x141   :  { %667 = vmatpush1.msra.mxu0 %v2520_v30  ;;  %738 = vmatpush1.msra.mxu1 %v2556_v42  ;;  %v3485_v30 = vld [vmem:[#allocation26_spill] sm:$0xff] }
 0x142   :  { %668 = vmatprep.subr.mxu0 %v2526_v32  ;;  %739 = vmatprep.subr.mxu1 %v2562_v44  ;;  %v3486_v32 = vld [vmem:[#allocation21_spill] sm:$0xff] }
 0x143   :  { %669 = vmatpush1.msra.mxu0 %v2535_v35  ;;  %740 = vmatpush1.msra.mxu1 %v2568_v46  ;;  %v3487_v35 = vmov 0.0  }
 0x144   :  { %670 = vmatprep.subr.mxu0 %v2541_v37  ;;  %741 = vmatprep.subr.mxu1 %v2574_v48  ;;  %v3488_v37 = vld [vmem:[#allocation27_spill] sm:$0xff] }
 0x145   :  { %671 = vmatpush1.msra.mxu0 %v2547_v39  ;;  %742 = vmatpush1.msra.mxu1 %v2580_v50  ;;  %v3489_v39 = vld [vmem:[#allocation8_spill] sm:$0xff] }
 0x146   :  { %672 = vmatprep.subr.mxu0 %v2553_v41  ;;  %743 = vmatprep.subr.mxu1 %v3469_v2  ;;  %v2200_v41 = vld [vmem:[%s3358_s0 + $0x8] sm:$0xff] }
 0x147   :  { %673 = vmatpush1.msra.mxu0 %v3470_v3  ;;  %744 = vmatpush1.msra.mxu1 %v3471_v4  ;;  %v376_v45 = vrot.slane %v2200_v41, %v2707_v0  ;;  %v369_v58 = vcombine.high %v2200_v41, %v2200_v41  ;;  %v2898_v41 = vld [vmem:[#allocation5 + $0x28] sm:$0xff] }
 0x148   :  { %674 = vmatprep.subr.mxu0 %v3472_v5  ;;  %745 = vmatprep.subr.mxu1 %v3473_v6  ;;  %3495 = vst [vmem:[#allocation11_spill] sm:$0xff] %v2898_v41 }
 0x149   :  { %675 = vmatpush1.msra.mxu0 %v3474_v7  ;;  %746 = vmatpush1.msra.mxu1 %v3475_v8  ;;  %v384_v52 = vcombine.high %v376_v45, %v376_v45  ;;  %v383_v51 = vrot.slane %v369_v58, %v2707_v0  ;;  %v2909_v58 = vld [vmem:[#allocation5 + $0x18] sm:$0xff] }
 0x14a   :  { %676 = vmatprep.subr.mxu0 %v3476_v10  ;;  %747 = vmatprep.subr.mxu1 %v3477_v12  ;;  %3499 = vst [vmem:[#allocation13_spill] sm:$0xff] %v2909_v58 }
 0x14b   :  { %677 = vmatpush1.msra.mxu0 %v3478_v15  ;;  %748 = vmatpush1.msra.mxu1 %v3479_v17  ;;  %v385_v62 = vcombine.high %v383_v51, %v383_v51  ;;  %v301_v15 = vld [vmem:[#allocation3] sm:$0x3] }
 0x14c   :  { %678 = vmatprep.subr.mxu0 %v3480_v20  ;;  %749 = vmatprep.subr.mxu1 %v3481_v22 }
 0x14d   :  { %679 = vmatpush1.msra.mxu0 %v3482_v24  ;;  %750 = vmatpush1.msra.mxu1 %v3483_v26 }
 0x14e   :  { %680 = vmatprep.subr.mxu0 %v3484_v28  ;;  %751 = vmatprep.subr.mxu1 %v3485_v30 }
 0x14f   :  { %681 = vmatpush1.msra.mxu0 %v3486_v32  ;;  %714 = vmatprep.mubr.f32.mxu0 %v3487_v35 }
 0x150   :  { %752 = vmatpush1.msra.mxu1 %v3488_v37  ;;  %785 = vmatprep.mubr.f32.mxu1 %v3487_v35 }
 0x151   :  { %981 = vmatprep.subr.mxu1 %v3489_v39 }
 0x1f0   :  { %v456_v56 = vpop.f32.mrf.mxu0  ;;  %v527_v55 = vpop.f32.mrf.mxu1 }
 0x1f1   :  { %v457_v61 = vadd.f32 %v456_v56, %v376_v45  ;;  %v528_v47 = vadd.f32 %v527_v55, %v383_v51  ;;  %v2901_v45 = vld [vmem:[#allocation5 + $0x20] sm:$0xff]  ;;  %v2907_v56 = vld [vmem:[#allocation5 + $0x8] sm:$0xff] }
 0x1f2   :  { %v458_v63 = vpop.f32.mrf.mxu0  ;;  %v529_v1 = vpop.f32.mrf.mxu1  ;;  %3496 = vst [vmem:[#allocation20_spill] sm:$0xff] %v2901_v45  ;;  %3498 = vst [vmem:[#allocation22_spill] sm:$0xff] %v2907_v56 }
 0x1f3   :  { %v2201_v9 = vmul.f32 -1.442695, %v457_v61  ;;  %v459_v49 = vadd.f32 %v458_v63, %v384_v52  ;;  %v530_v57 = vadd.f32 %v529_v1, %v385_v62  ;;  %v2903_v52 = vld [vmem:[#allocation5 + $0x30] sm:$0xff]  ;;  %v2913_v61 = vld [vmem:[#allocation5] sm:$0xff] }
 0x1f4   :  { %3497 = vst [vmem:[#allocation12_spill] sm:$0xff] %v2903_v52  ;;  %3500 = vst [vmem:[#allocation23_spill] sm:$0xff] %v2913_v61  ;;  %v2915_v63 = vld [vmem:[#allocation5 + $0x10] sm:$0xff] }
 0x1f5   :  { %2258 = vpow2.f32 %v2201_v9  ;;  %v2202_v60 = vmul.f32 -1.442695, %v459_v49  ;;  %v2203_v59 = vmul.f32 -1.442695, %v530_v57  ;;  %3501 = vst [vmem:[#allocation15_spill] sm:$0xff] %v2915_v63  ;;  %v2204_v9 = vld [vmem:[%s3358_s0 + $0x10] sm:$0xff] }
 0x1f6   :  { %v636_v49 = vrot.slane %v2204_v9, %v2707_v0 }
 0x1f7   :  { %2260 = vpow2.f32 %v2202_v60  ;;  %v629_v60 = vcombine.high %v2204_v9, %v2204_v9 }
 0x1f8   :  { %2262 = vpow2.f32 %v2203_v59  ;;  %v644_v51 = vcombine.high %v636_v49, %v636_v49 }
 0x202   :  { %v2259_v34 = vpop.eup %2258 }
 0x203   :  { %v535_v53 = vadd.f32 1.0, %v2259_v34  ;;  %v643_v34 = vrot.slane %v629_v60, %v2707_v0 }
 0x204   :  { %v2261_v54 = vpop.eup %2260 }
 0x205   :  { %2264 = vrcp.f32 %v535_v53  ;;  %v541_v43 = vadd.f32 1.0, %v2261_v54  ;;  %v2263_v3 = vpop.eup %2262  ;;  %v645_v54 = vcombine.high %v643_v34, %v643_v34 }
 0x206   :  { %2266 = vtanh.f32 %v528_v47  ;;  %v548_v20 = vadd.f32 1.0, %v2263_v3 }
 0x207   :  { %2268 = vrcp.f32 %v541_v43 }
 0x208   :  { %2270 = vrcp.f32 %v548_v20 }
 0x212   :  { %v2265_v5 = vpop.eup %2264 }
 0x213   :  { %v2267_v7 = vpop.eup %2266 }
 0x214   :  { %v2269_v10 = vpop.eup %2268  ;;  %v552_v24 = vmul.f32 %v2267_v7, %v2265_v5 }
 0x215   :  { %v551_v26 = vmul.f32 %v2269_v10, %v301_v15  ;;  %v2271_v30 = vpop.eup %2270 }
 0x217   :  { %v553_v28 = vadd.f32 %v552_v24, %v551_v26 }
 0x219   :  { %2272 = vtanh.f32 %v553_v28  ;;  %557 = vst [vmem:[#allocation3] sm:$0x3] %v553_v28 }
 0x226   :  { %v2273_v32 = vpop.eup %2272 }
 0x227   :  { %v555_v37 = vmul.f32 %v2273_v32, %v2271_v30 }
 0x229   :  { %556 = vst [vmem:[#allocation2] sm:$0x3] %v555_v37  ;;  %559 = vst [vmem:[#allocation4 + $0x2] sm:$0x3] %v555_v37  ;;  %v561_v37 = vld [vmem:[#allocation3] sm:$0x3] }
 0x230   :  { %v560_v39 = vld [vmem:[#allocation2] sm:$0x3] }
 0x231   :  { %715 = vmatmul.mubr.f32.vlgmr.msra.gmra.mxu0 %v560_v39  ;;  %786 = vmatmul.mubr.f32.vlgmr.msra.gmra.mxu1 %v560_v39 }
 0x232   :  { %982 = vmatpush1.msra.mxu1 %v2465_v11  ;;  %974 = vmatprep.mubr.f32.mxu0 %v3487_v35  ;;  %v2814_v11 = vld [vmem:[#allocation5 + $0x1e8] sm:$0xff] }
 0x233   :  { %983 = vmatprep.subr.mxu1 %v2471_v13  ;;  %1045 = vmatprep.mubr.f32.mxu1 %v3487_v35  ;;  %v2817_v13 = vld [vmem:[#allocation5 + $0x1e0] sm:$0xff] }
 0x234   :  { %984 = vmatpush1.msra.mxu1 %v2473_v14  ;;  %910 = vmatprep.subr.mxu0 %v2814_v11  ;;  %v2820_v14 = vld [vmem:[#allocation5 + $0x1c8] sm:$0xff] }
 0x235   :  { %985 = vmatprep.subr.mxu1 %v2479_v16  ;;  %911 = vmatpush1.msra.mxu0 %v2817_v13  ;;  %v2823_v16 = vld [vmem:[#allocation5 + $0x1c0] sm:$0xff] }
 0x236   :  { %986 = vmatpush1.msra.mxu1 %v2485_v18  ;;  %912 = vmatprep.subr.mxu0 %v2820_v14  ;;  %v2826_v18 = vld [vmem:[#allocation5 + $0x1a8] sm:$0xff] }
 0x237   :  { %987 = vmatprep.subr.mxu1 %v2487_v19  ;;  %913 = vmatpush1.msra.mxu0 %v2823_v16  ;;  %v2829_v19 = vld [vmem:[#allocation5 + $0x1a0] sm:$0xff] }
 0x238   :  { %988 = vmatpush1.msra.mxu1 %v2493_v21  ;;  %914 = vmatprep.subr.mxu0 %v2826_v18  ;;  %v2832_v21 = vld [vmem:[#allocation5 + $0x188] sm:$0xff] }
 0x239   :  { %989 = vmatprep.subr.mxu1 %v2499_v23  ;;  %915 = vmatpush1.msra.mxu0 %v2829_v19  ;;  %v2835_v23 = vld [vmem:[#allocation5 + $0x180] sm:$0xff] }
 0x23a   :  { %990 = vmatpush1.msra.mxu1 %v2505_v25  ;;  %916 = vmatprep.subr.mxu0 %v2832_v21  ;;  %v2838_v25 = vld [vmem:[#allocation5 + $0x168] sm:$0xff] }
 0x23b   :  { %991 = vmatprep.subr.mxu1 %v2511_v27  ;;  %917 = vmatpush1.msra.mxu0 %v2835_v23  ;;  %v2841_v27 = vld [vmem:[#allocation5 + $0x160] sm:$0xff] }
 0x23c   :  { %992 = vmatpush1.msra.mxu1 %v2517_v29  ;;  %918 = vmatprep.subr.mxu0 %v2838_v25  ;;  %v2844_v29 = vld [vmem:[#allocation5 + $0x148] sm:$0xff] }
 0x23d   :  { %993 = vmatprep.subr.mxu1 %v2523_v31  ;;  %919 = vmatpush1.msra.mxu0 %v2841_v27  ;;  %v2847_v31 = vld [vmem:[#allocation5 + $0x140] sm:$0xff] }
 0x23e   :  { %994 = vmatpush1.msra.mxu1 %v2529_v33  ;;  %920 = vmatprep.subr.mxu0 %v2844_v29  ;;  %v2850_v33 = vld [vmem:[#allocation5 + $0x128] sm:$0xff] }
 0x23f   :  { %995 = vmatprep.subr.mxu1 %v2538_v36  ;;  %921 = vmatpush1.msra.mxu0 %v2847_v31  ;;  %v2853_v36 = vld [vmem:[#allocation5 + $0x120] sm:$0xff] }
 0x240   :  { %996 = vmatpush1.msra.mxu1 %v2544_v38  ;;  %922 = vmatprep.subr.mxu0 %v2850_v33  ;;  %v2856_v38 = vld [vmem:[#allocation5 + $0x108] sm:$0xff] }
 0x241   :  { %997 = vmatprep.subr.mxu1 %v2550_v40  ;;  %923 = vmatpush1.msra.mxu0 %v2853_v36  ;;  %v2859_v40 = vld [vmem:[#allocation5 + $0x100] sm:$0xff] }
 0x242   :  { %998 = vmatpush1.msra.mxu1 %v2556_v42  ;;  %924 = vmatprep.subr.mxu0 %v2856_v38  ;;  %v2862_v42 = vld [vmem:[#allocation5 + $0xe8] sm:$0xff] }
 0x243   :  { %999 = vmatprep.subr.mxu1 %v2562_v44  ;;  %925 = vmatpush1.msra.mxu0 %v2859_v40  ;;  %v2865_v44 = vld [vmem:[#allocation5 + $0xe0] sm:$0xff] }
 0x244   :  { %1000 = vmatpush1.msra.mxu1 %v2568_v46  ;;  %926 = vmatprep.subr.mxu0 %v2862_v42  ;;  %v2868_v46 = vld [vmem:[#allocation5 + $0xc8] sm:$0xff] }
 0x245   :  { %1001 = vmatprep.subr.mxu1 %v2574_v48  ;;  %927 = vmatpush1.msra.mxu0 %v2865_v44  ;;  %v2871_v48 = vld [vmem:[#allocation5 + $0xc0] sm:$0xff] }
 0x246   :  { %1002 = vmatpush1.msra.mxu1 %v2580_v50  ;;  %928 = vmatprep.subr.mxu0 %v2868_v46  ;;  %v2874_v50 = vld [vmem:[#allocation5 + $0xa8] sm:$0xff] }
 0x247   :  { %1003 = vmatprep.subr.mxu1 %v3469_v2  ;;  %929 = vmatpush1.msra.mxu0 %v2871_v48  ;;  %v2877_v2 = vld [vmem:[#allocation5 + $0xa0] sm:$0xff] }
 0x248   :  { %1004 = vmatpush1.msra.mxu1 %v3471_v4  ;;  %930 = vmatprep.subr.mxu0 %v2874_v50  ;;  %v2880_v4 = vld [vmem:[#allocation5 + $0x88] sm:$0xff] }
 0x249   :  { %1005 = vmatprep.subr.mxu1 %v3473_v6  ;;  %931 = vmatpush1.msra.mxu0 %v2877_v2  ;;  %v2883_v6 = vld [vmem:[#allocation5 + $0x80] sm:$0xff] }
 0x24a   :  { %1006 = vmatpush1.msra.mxu1 %v3475_v8  ;;  %932 = vmatprep.subr.mxu0 %v2880_v4  ;;  %3490 = vst [vmem:[#allocation14_spill] sm:$0xff] %v2883_v6  ;;  %v2886_v8 = vld [vmem:[#allocation5 + $0x68] sm:$0xff] }
 0x24b   :  { %1007 = vmatprep.subr.mxu1 %v3477_v12  ;;  %933 = vmatpush1.msra.mxu0 %v2883_v6  ;;  %3491 = vst [vmem:[#allocation9_spill] sm:$0xff] %v2886_v8  ;;  %v2889_v12 = vld [vmem:[#allocation5 + $0x60] sm:$0xff] }
 0x24c   :  { %1008 = vmatpush1.msra.mxu1 %v3479_v17  ;;  %934 = vmatprep.subr.mxu0 %v2886_v8  ;;  %3492 = vst [vmem:[#allocation16_spill] sm:$0xff] %v2889_v12  ;;  %v2892_v17 = vld [vmem:[#allocation5 + $0x48] sm:$0xff] }
 0x24d   :  { %1009 = vmatprep.subr.mxu1 %v3481_v22  ;;  %935 = vmatpush1.msra.mxu0 %v2889_v12  ;;  %3493 = vst [vmem:[#allocation10_spill] sm:$0xff] %v2892_v17  ;;  %v2895_v22 = vld [vmem:[#allocation5 + $0x40] sm:$0xff] }
 0x24e   :  { %936 = vmatprep.subr.mxu0 %v2892_v17  ;;  %3494 = vst [vmem:[#allocation18_spill] sm:$0xff] %v2895_v22  ;;  %1010 = vmatpush1.msra.mxu1 %v2903_v52 }
 0x24f   :  { %937 = vmatpush1.msra.mxu0 %v2895_v22  ;;  %1011 = vmatprep.subr.mxu1 %v2909_v58 }
 0x250   :  { %938 = vmatprep.subr.mxu0 %v2898_v41  ;;  %1012 = vmatpush1.msra.mxu1 %v2915_v63 }
 0x251   :  { %939 = vmatpush1.msra.mxu0 %v2901_v45 }
 0x252   :  { %940 = vmatprep.subr.mxu0 %v2907_v56 }
 0x253   :  { %941 = vmatpush1.msra.mxu0 %v2913_v61 }
 0x254   :  { %1170 = vmatprep.subr.mxu0 %v2814_v11 }
 0x2f1   :  { %v716_v55 = vpop.f32.mrf.mxu0  ;;  %v787_v47 = vpop.f32.mrf.mxu1 }
 0x2f2   :  { %v717_v62 = vadd.f32 %v716_v55, %v636_v49  ;;  %v788_v10 = vadd.f32 %v787_v47, %v643_v34  ;;  %v2965_v34 = vld [vmem:[#allocation5 + $0x1d8] sm:$0xff]  ;;  %v2968_v47 = vld [vmem:[#allocation5 + $0x1d0] sm:$0xff] }
 0x2f3   :  { %v718_v1 = vpop.f32.mrf.mxu0  ;;  %v789_v43 = vpop.f32.mrf.mxu1 }
 0x2f4   :  { %v2205_v57 = vmul.f32 -1.442695, %v717_v62  ;;  %v719_v59 = vadd.f32 %v718_v1, %v644_v51  ;;  %v790_v3 = vadd.f32 %v789_v43, %v645_v54  ;;  %v2977_v54 = vld [vmem:[#allocation5 + $0x198] sm:$0xff]  ;;  %v2980_v43 = vld [vmem:[#allocation5 + $0x190] sm:$0xff] }
 0x2f6   :  { %2274 = vpow2.f32 %v2205_v57  ;;  %v2206_v53 = vmul.f32 -1.442695, %v719_v59  ;;  %v2207_v5 = vmul.f32 -1.442695, %v790_v3  ;;  %v2959_v57 = vld [vmem:[#allocation5 + $0x1f8] sm:$0xff]  ;;  %v2962_v59 = vld [vmem:[#allocation5 + $0x1f0] sm:$0xff] }
 0x2f7   :  { %3502 = vst [vmem:[#allocation24_spill] sm:$0xff] %v2959_v57  ;;  %1241 = vmatprep.subr.mxu1 %v2959_v57  ;;  %v2983_v3 = vld [vmem:[#allocation5 + $0x178] sm:$0xff] }
 0x2f8   :  { %2276 = vpow2.f32 %v2206_v53  ;;  %v2971_v53 = vld [vmem:[#allocation5 + $0x1b8] sm:$0xff] }
 0x2f9   :  { %2278 = vpow2.f32 %v2207_v5  ;;  %v2986_v5 = vld [vmem:[#allocation5 + $0x170] sm:$0xff] }
 0x303   :  { %v2275_v7 = vpop.eup %2274 }
 0x304   :  { %v795_v15 = vadd.f32 1.0, %v2275_v7  ;;  %v2989_v7 = vld [vmem:[#allocation5 + $0x158] sm:$0xff] }
 0x305   :  { %v2277_v20 = vpop.eup %2276 }
 0x306   :  { %2280 = vrcp.f32 %v795_v15  ;;  %v801_v24 = vadd.f32 1.0, %v2277_v20  ;;  %v2279_v26 = vpop.eup %2278  ;;  %v2995_v15 = vld [vmem:[#allocation5 + $0x138] sm:$0xff]  ;;  %v2998_v20 = vld [vmem:[#allocation5 + $0x130] sm:$0xff] }
 0x307   :  { %2282 = vtanh.f32 %v788_v10  ;;  %v808_v39 = vadd.f32 1.0, %v2279_v26  ;;  %v2992_v10 = vld [vmem:[#allocation5 + $0x150] sm:$0xff] }
 0x308   :  { %2284 = vrcp.f32 %v801_v24  ;;  %v3001_v24 = vld [vmem:[#allocation5 + $0x118] sm:$0xff]  ;;  %v3004_v26 = vld [vmem:[#allocation5 + $0x110] sm:$0xff] }
 0x309   :  { %2286 = vrcp.f32 %v808_v39  ;;  %v3019_v39 = vld [vmem:[#allocation5 + $0xb8] sm:$0xff] }
 0x313   :  { %v2281_v28 = vpop.eup %2280 }
 0x314   :  { %v2283_v30 = vpop.eup %2282 }
 0x315   :  { %v2285_v32 = vpop.eup %2284  ;;  %v812_v9 = vmul.f32 %v2283_v30, %v2281_v28  ;;  %v3007_v28 = vld [vmem:[#allocation5 + $0xf8] sm:$0xff]  ;;  %v3010_v30 = vld [vmem:[#allocation5 + $0xf0] sm:$0xff] }
 0x316   :  { %v811_v49 = vmul.f32 %v2285_v32, %v561_v37  ;;  %v2287_v55 = vpop.eup %2286  ;;  %v3013_v32 = vld [vmem:[#allocation5 + $0xd8] sm:$0xff]  ;;  %v3016_v37 = vld [vmem:[#allocation5 + $0xd0] sm:$0xff] }
 0x318   :  { %v813_v51 = vadd.f32 %v812_v9, %v811_v49  ;;  %v3022_v9 = vld [vmem:[#allocation5 + $0xb0] sm:$0xff]  ;;  %v3025_v49 = vld [vmem:[#allocation5 + $0x98] sm:$0xff] }
 0x319   :  { %3503 = vst [vmem:[#allocation17_spill] sm:$0xff] %v3025_v49 }
 0x31a   :  { %2288 = vtanh.f32 %v813_v51  ;;  %817 = vst [vmem:[#allocation3] sm:$0x3] %v813_v51  ;;  %v3028_v51 = vld [vmem:[#allocation5 + $0x90] sm:$0xff] }
 0x31b   :  { %3504 = vst [vmem:[#allocation25_spill] sm:$0xff] %v3028_v51 }
 0x327   :  { %v2289_v60 = vpop.eup %2288 }
 0x328   :  { %v815_v62 = vmul.f32 %v2289_v60, %v2287_v55  ;;  %v3031_v55 = vld [vmem:[#allocation5 + $0x78] sm:$0xff]  ;;  %v3034_v60 = vld [vmem:[#allocation5 + $0x70] sm:$0xff] }
 0x329   :  { %3505 = vst [vmem:[#allocation19_spill] sm:$0xff] %v3031_v55  ;;  %3506 = vst [vmem:[#allocation26_spill] sm:$0xff] %v3034_v60 }
 0x32a   :  { %816 = vst [vmem:[#allocation2] sm:$0x3] %v815_v62  ;;  %819 = vst [vmem:[#allocation4 + $0x4] sm:$0x3] %v815_v62  ;;  %v3037_v62 = vld [vmem:[#allocation5 + $0x58] sm:$0xff] }
 0x32b   :  { %3507 = vst [vmem:[#allocation21_spill] sm:$0xff] %v3037_v62 }
 0x331   :  { %v820_v1 = vld [vmem:[#allocation2] sm:$0x3] }
 0x332   :  { %975 = vmatmul.mubr.f32.vlgmr.msra.gmra.mxu0 %v820_v1  ;;  %1046 = vmatmul.mubr.f32.vlgmr.msra.gmra.mxu1 %v820_v1  ;;  %v3040_v1 = vld [vmem:[#allocation5 + $0x50] sm:$0xff] }
 0x333   :  { %1171 = vmatpush1.msra.mxu0 %v2817_v13  ;;  %1234 = vmatprep.mubr.f32.mxu0 %v3487_v35  ;;  %3508 = vst [vmem:[#allocation27_spill] sm:$0xff] %v3040_v1 }
 0x334   :  { %1172 = vmatprep.subr.mxu0 %v2820_v14  ;;  %1305 = vmatprep.mubr.f32.mxu1 %v3487_v35  ;;  %v3043_v35 = vld [vmem:[#allocation5 + $0x38] sm:$0xff] }
 0x335   :  { %1173 = vmatpush1.msra.mxu0 %v2823_v16  ;;  %1242 = vmatpush1.msra.mxu1 %v2962_v59  ;;  %3509 = vst [vmem:[#allocation8_spill] sm:$0xff] %v3043_v35 }
 0x336   :  { %1174 = vmatprep.subr.mxu0 %v2826_v18  ;;  %1243 = vmatprep.subr.mxu1 %v2965_v34 }
 0x337   :  { %1175 = vmatpush1.msra.mxu0 %v2829_v19  ;;  %1244 = vmatpush1.msra.mxu1 %v2968_v47 }
 0x338   :  { %1176 = vmatprep.subr.mxu0 %v2832_v21  ;;  %1245 = vmatprep.subr.mxu1 %v2971_v53 }
 0x339   :  { %1177 = vmatpush1.msra.mxu0 %v2835_v23 }
 0x33a   :  { %1178 = vmatprep.subr.mxu0 %v2838_v25 }
 0x33b   :  { %1179 = vmatpush1.msra.mxu0 %v2841_v27 }
 0x33c   :  { %1180 = vmatprep.subr.mxu0 %v2844_v29 }
 0x33d   :  { %1181 = vmatpush1.msra.mxu0 %v2847_v31 }
 0x33e   :  { %1182 = vmatprep.subr.mxu0 %v2850_v33 }
 0x33f   :  { %1183 = vmatpush1.msra.mxu0 %v2853_v36 }
 0x340   :  { %1184 = vmatprep.subr.mxu0 %v2856_v38 }
 0x341   :  { %1185 = vmatpush1.msra.mxu0 %v2859_v40 }
 0x342   :  { %1186 = vmatprep.subr.mxu0 %v2862_v42 }
 0x343   :  { %1187 = vmatpush1.msra.mxu0 %v2865_v44 }
 0x344   :  { %1188 = vmatprep.subr.mxu0 %v2868_v46 }
 0x345   :  { %1189 = vmatpush1.msra.mxu0 %v2871_v48 }
 0x346   :  { %1190 = vmatprep.subr.mxu0 %v2874_v50 }
 0x347   :  { %1191 = vmatpush1.msra.mxu0 %v2877_v2 }
 0x348   :  { %1192 = vmatprep.subr.mxu0 %v2880_v4 }
 0x349   :  { %1193 = vmatpush1.msra.mxu0 %v2883_v6 }
 0x34a   :  { %1194 = vmatprep.subr.mxu0 %v2886_v8 }
 0x34b   :  { %1195 = vmatpush1.msra.mxu0 %v2889_v12 }
 0x34c   :  { %1196 = vmatprep.subr.mxu0 %v2892_v17 }
 0x34d   :  { %1197 = vmatpush1.msra.mxu0 %v2895_v22 }
 0x34e   :  { %1198 = vmatprep.subr.mxu0 %v2898_v41 }
 0x34f   :  { %1199 = vmatpush1.msra.mxu0 %v2901_v45 }
 0x350   :  { %1200 = vmatprep.subr.mxu0 %v2907_v56 }
 0x351   :  { %1201 = vmatpush1.msra.mxu0 %v2913_v61  ;;  %v2208_v61 = vld [vmem:[%s3358_s0 + $0x18] sm:$0xff] }
 0x352   :  { %1430 = vmatprep.subr.mxu0 %v2814_v11  ;;  %v2974_v11 = vld [vmem:[#allocation5 + $0x1b0] sm:$0xff]  ;;  %v896_v56 = vrot.slane %v2208_v61, %v2707_v0 }
 0x353   :  { %1246 = vmatpush1.msra.mxu1 %v2974_v11 }
 0x354   :  { %1247 = vmatprep.subr.mxu1 %v2977_v54  ;;  %v904_v45 = vcombine.high %v896_v56, %v896_v56 }
 0x355   :  { %1248 = vmatpush1.msra.mxu1 %v2980_v43 }
 0x356   :  { %1249 = vmatprep.subr.mxu1 %v2983_v3 }
 0x357   :  { %1250 = vmatpush1.msra.mxu1 %v2986_v5 }
 0x358   :  { %1251 = vmatprep.subr.mxu1 %v2989_v7 }
 0x359   :  { %1252 = vmatpush1.msra.mxu1 %v2992_v10 }
 0x35a   :  { %1253 = vmatprep.subr.mxu1 %v2995_v15 }
 0x35b   :  { %1254 = vmatpush1.msra.mxu1 %v2998_v20 }
 0x35c   :  { %1255 = vmatprep.subr.mxu1 %v3001_v24 }
 0x35d   :  { %1256 = vmatpush1.msra.mxu1 %v3004_v26 }
 0x35e   :  { %1257 = vmatprep.subr.mxu1 %v3007_v28 }
 0x35f   :  { %1258 = vmatpush1.msra.mxu1 %v3010_v30 }
 0x360   :  { %1259 = vmatprep.subr.mxu1 %v3013_v32 }
 0x361   :  { %1260 = vmatpush1.msra.mxu1 %v3016_v37 }
 0x362   :  { %1261 = vmatprep.subr.mxu1 %v3019_v39 }
 0x363   :  { %1262 = vmatpush1.msra.mxu1 %v3022_v9 }
 0x364   :  { %1263 = vmatprep.subr.mxu1 %v3025_v49 }
 0x365   :  { %1264 = vmatpush1.msra.mxu1 %v3028_v51 }
 0x366   :  { %1265 = vmatprep.subr.mxu1 %v3031_v55 }
 0x367   :  { %1266 = vmatpush1.msra.mxu1 %v3034_v60 }
 0x368   :  { %1267 = vmatprep.subr.mxu1 %v3037_v62 }
 0x369   :  { %1268 = vmatpush1.msra.mxu1 %v3040_v1  ;;  %v889_v1 = vcombine.high %v2208_v61, %v2208_v61  ;;  %v821_v61 = vld [vmem:[#allocation3] sm:$0x3] }
 0x36a   :  { %1269 = vmatprep.subr.mxu1 %v3043_v35 }
 0x36b   :  { %1270 = vmatpush1.msra.mxu1 %v2903_v52  ;;  %v903_v52 = vrot.slane %v889_v1, %v2707_v0 }
 0x36c   :  { %1271 = vmatprep.subr.mxu1 %v2909_v58 }
 0x36d   :  { %1272 = vmatpush1.msra.mxu1 %v2915_v63 }
 0x36e   :  { %1501 = vmatprep.subr.mxu1 %v2959_v57  ;;  %v905_v57 = vcombine.high %v903_v52, %v903_v52 }
 0x3f2   :  { %v976_v41 = vpop.f32.mrf.mxu0  ;;  %v1047_v58 = vpop.f32.mrf.mxu1 }
 0x3f3   :  { %v977_v22 = vadd.f32 %v976_v41, %v896_v56  ;;  %v1048_v51 = vadd.f32 %v1047_v58, %v903_v52 }
 0x3f4   :  { %v978_v62 = vpop.f32.mrf.mxu0  ;;  %v1049_v60 = vpop.f32.mrf.mxu1 }
 0x3f5   :  { %v2209_v35 = vmul.f32 -1.442695, %v977_v22  ;;  %v979_v17 = vadd.f32 %v978_v62, %v904_v45  ;;  %v1050_v12 = vadd.f32 %v1049_v60, %v905_v57 }
 0x3f7   :  { %2290 = vpow2.f32 %v2209_v35  ;;  %v2210_v63 = vmul.f32 -1.442695, %v979_v17  ;;  %v2211_v55 = vmul.f32 -1.442695, %v1050_v12 }
 0x3f9   :  { %2292 = vpow2.f32 %v2210_v63 }
 0x3fa   :  { %2294 = vpow2.f32 %v2211_v55 }
 0x404   :  { %v2291_v8 = vpop.eup %2290 }
 0x405   :  { %v1055_v6 = vadd.f32 1.0, %v2291_v8 }
 0x406   :  { %v2293_v49 = vpop.eup %2292 }
 0x407   :  { %2296 = vrcp.f32 %v1055_v6  ;;  %v1061_v41 = vadd.f32 1.0, %v2293_v49  ;;  %v2295_v22 = vpop.eup %2294 }
 0x408   :  { %2298 = vtanh.f32 %v1048_v51  ;;  %v1068_v17 = vadd.f32 1.0, %v2295_v22 }
 0x409   :  { %2300 = vrcp.f32 %v1061_v41 }
 0x40a   :  { %2302 = vrcp.f32 %v1068_v17 }
 0x414   :  { %v2297_v45 = vpop.eup %2296 }
 0x415   :  { %v2299_v56 = vpop.eup %2298 }
 0x416   :  { %v2301_v35 = vpop.eup %2300  ;;  %v1072_v63 = vmul.f32 %v2299_v56, %v2297_v45 }
 0x417   :  { %v1071_v62 = vmul.f32 %v2301_v35, %v821_v61  ;;  %v2303_v12 = vpop.eup %2302 }
 0x419   :  { %v1073_v1 = vadd.f32 %v1072_v63, %v1071_v62 }
 0x41b   :  { %2304 = vtanh.f32 %v1073_v1  ;;  %1077 = vst [vmem:[#allocation3] sm:$0x3] %v1073_v1 }
 0x428   :  { %v2305_v8 = vpop.eup %2304 }
 0x429   :  { %v1075_v52 = vmul.f32 %v2305_v8, %v2303_v12 }
 0x42b   :  { %1079 = vst [vmem:[#allocation4 + $0x6] sm:$0x3] %v1075_v52  ;;  %1076 = vst [vmem:[#allocation2] sm:$0x3] %v1075_v52 }
 0x432   :  { %v1080_v6 = vld [vmem:[#allocation2] sm:$0x3] }
 0x433   :  { %1235 = vmatmul.mubr.f32.vlgmr.msra.gmra.mxu0 %v1080_v6  ;;  %1306 = vmatmul.mubr.f32.vlgmr.msra.gmra.mxu1 %v1080_v6 }
 0x434   :  { %1431 = vmatpush1.msra.mxu0 %v2817_v13  ;;  %1502 = vmatpush1.msra.mxu1 %v2962_v59  ;;  %v3510_v13 = vld [vmem:[#allocation17_spill] sm:$0xff] }
 0x435   :  { %1432 = vmatprep.subr.mxu0 %v2820_v14  ;;  %1503 = vmatprep.subr.mxu1 %v2965_v34  ;;  %v3511_v14 = vld [vmem:[#allocation14_spill] sm:$0xff] }
 0x436   :  { %1433 = vmatpush1.msra.mxu0 %v2823_v16  ;;  %1504 = vmatpush1.msra.mxu1 %v2968_v47  ;;  %v3512_v16 = vld [vmem:[#allocation25_spill] sm:$0xff] }
 0x437   :  { %1434 = vmatprep.subr.mxu0 %v2826_v18  ;;  %1505 = vmatprep.subr.mxu1 %v2971_v53  ;;  %v3513_v18 = vld [vmem:[#allocation9_spill] sm:$0xff] }
 0x438   :  { %1435 = vmatpush1.msra.mxu0 %v2829_v19  ;;  %1506 = vmatpush1.msra.mxu1 %v2974_v11  ;;  %v3514_v19 = vld [vmem:[#allocation19_spill] sm:$0xff] }
 0x439   :  { %1436 = vmatprep.subr.mxu0 %v2832_v21  ;;  %1507 = vmatprep.subr.mxu1 %v2977_v54  ;;  %v3515_v21 = vld [vmem:[#allocation16_spill] sm:$0xff] }
 0x43a   :  { %1437 = vmatpush1.msra.mxu0 %v2835_v23  ;;  %1508 = vmatpush1.msra.mxu1 %v2980_v43  ;;  %v3516_v23 = vld [vmem:[#allocation26_spill] sm:$0xff] }
 0x43b   :  { %1438 = vmatprep.subr.mxu0 %v2838_v25  ;;  %1509 = vmatprep.subr.mxu1 %v2983_v3  ;;  %v3517_v25 = vld [vmem:[#allocation10_spill] sm:$0xff] }
 0x43c   :  { %1439 = vmatpush1.msra.mxu0 %v2841_v27  ;;  %1510 = vmatpush1.msra.mxu1 %v2986_v5  ;;  %v3518_v27 = vld [vmem:[#allocation21_spill] sm:$0xff] }
 0x43d   :  { %1440 = vmatprep.subr.mxu0 %v2844_v29  ;;  %1511 = vmatprep.subr.mxu1 %v2989_v7  ;;  %v3519_v29 = vld [vmem:[#allocation18_spill] sm:$0xff] }
 0x43e   :  { %1441 = vmatpush1.msra.mxu0 %v2847_v31  ;;  %1512 = vmatpush1.msra.mxu1 %v2992_v10  ;;  %v3520_v31 = vld [vmem:[#allocation27_spill] sm:$0xff] }
 0x43f   :  { %1442 = vmatprep.subr.mxu0 %v2850_v33  ;;  %1513 = vmatprep.subr.mxu1 %v2995_v15  ;;  %v3521_v33 = vld [vmem:[#allocation11_spill] sm:$0xff] }
 0x440   :  { %1443 = vmatpush1.msra.mxu0 %v2853_v36  ;;  %1514 = vmatpush1.msra.mxu1 %v2998_v20  ;;  %v3522_v36 = vld [vmem:[#allocation8_spill] sm:$0xff] }
 0x441   :  { %1444 = vmatprep.subr.mxu0 %v2856_v38  ;;  %1515 = vmatprep.subr.mxu1 %v3001_v24  ;;  %v3523_v38 = vld [vmem:[#allocation20_spill] sm:$0xff] }
 0x442   :  { %1445 = vmatpush1.msra.mxu0 %v2859_v40  ;;  %1516 = vmatpush1.msra.mxu1 %v3004_v26  ;;  %v3524_v40 = vld [vmem:[#allocation12_spill] sm:$0xff] }
 0x443   :  { %1446 = vmatprep.subr.mxu0 %v2862_v42  ;;  %1517 = vmatprep.subr.mxu1 %v3007_v28  ;;  %v3525_v42 = vld [vmem:[#allocation22_spill] sm:$0xff] }
 0x444   :  { %1447 = vmatpush1.msra.mxu0 %v2865_v44  ;;  %1518 = vmatpush1.msra.mxu1 %v3010_v30  ;;  %v3526_v44 = vld [vmem:[#allocation13_spill] sm:$0xff] }
 0x445   :  { %1448 = vmatprep.subr.mxu0 %v2868_v46  ;;  %1519 = vmatprep.subr.mxu1 %v3013_v32  ;;  %v3527_v46 = vld [vmem:[#allocation23_spill] sm:$0xff] }
 0x446   :  { %1449 = vmatpush1.msra.mxu0 %v2871_v48  ;;  %1520 = vmatpush1.msra.mxu1 %v3016_v37  ;;  %v3528_v48 = vmov 0.0  }
 0x447   :  { %1450 = vmatprep.subr.mxu0 %v2874_v50  ;;  %1521 = vmatprep.subr.mxu1 %v3019_v39  ;;  %v3529_v50 = vld [vmem:[#allocation15_spill] sm:$0xff] }
 0x448   :  { %1451 = vmatpush1.msra.mxu0 %v2877_v2  ;;  %1522 = vmatpush1.msra.mxu1 %v3022_v9  ;;  %v3530_v2 = vld [vmem:[#allocation24_spill] sm:$0xff] }
 0x449   :  { %1452 = vmatprep.subr.mxu0 %v2880_v4  ;;  %1523 = vmatprep.subr.mxu1 %v3510_v13  ;;  %v2212_v4 = vld [vmem:[%s3358_s0 + $0x20] sm:$0xff] }
 0x44a   :  { %1453 = vmatpush1.msra.mxu0 %v3511_v14  ;;  %1524 = vmatpush1.msra.mxu1 %v3512_v16  ;;  %v1156_v58 = vrot.slane %v2212_v4, %v2707_v0  ;;  %v1149_v51 = vcombine.high %v2212_v4, %v2212_v4 }
 0x44b   :  { %1454 = vmatprep.subr.mxu0 %v3513_v18  ;;  %1525 = vmatprep.subr.mxu1 %v3514_v19 }
 0x44c   :  { %1455 = vmatpush1.msra.mxu0 %v3515_v21  ;;  %1526 = vmatpush1.msra.mxu1 %v3516_v23  ;;  %v1164_v57 = vcombine.high %v1156_v58, %v1156_v58  ;;  %v1163_v45 = vrot.slane %v1149_v51, %v2707_v0  ;;  %v3164_v51 = vld [vmem:[#allocation5 + $0x1c0] sm:$0xff] }
 0x44d   :  { %1456 = vmatprep.subr.mxu0 %v3517_v25  ;;  %1527 = vmatprep.subr.mxu1 %v3518_v27 }
 0x44e   :  { %1457 = vmatpush1.msra.mxu0 %v3519_v29  ;;  %1528 = vmatpush1.msra.mxu1 %v3520_v31  ;;  %v1165_v61 = vcombine.high %v1163_v45, %v1163_v45  ;;  %v1081_v29 = vld [vmem:[#allocation3] sm:$0x3] }
 0x44f   :  { %1458 = vmatprep.subr.mxu0 %v3521_v33  ;;  %1529 = vmatprep.subr.mxu1 %v3522_v36 }
 0x450   :  { %1459 = vmatpush1.msra.mxu0 %v3523_v38  ;;  %1530 = vmatpush1.msra.mxu1 %v3524_v40 }
 0x451   :  { %1460 = vmatprep.subr.mxu0 %v3525_v42  ;;  %1531 = vmatprep.subr.mxu1 %v3526_v44 }
 0x452   :  { %1461 = vmatpush1.msra.mxu0 %v3527_v46  ;;  %1494 = vmatprep.mubr.f32.mxu0 %v3528_v48 }
 0x453   :  { %1532 = vmatpush1.msra.mxu1 %v3529_v50  ;;  %1565 = vmatprep.mubr.f32.mxu1 %v3528_v48 }
 0x454   :  { %1761 = vmatprep.subr.mxu1 %v3530_v2 }
 0x4f3   :  { %v1236_v49 = vpop.f32.mrf.mxu0  ;;  %v1307_v56 = vpop.f32.mrf.mxu1 }
 0x4f4   :  { %v1237_v55 = vadd.f32 %v1236_v49, %v1156_v58  ;;  %v1308_v12 = vadd.f32 %v1307_v56, %v1163_v45  ;;  %v3155_v58 = vld [vmem:[#allocation5 + $0x1e8] sm:$0xff]  ;;  %v3182_v56 = vld [vmem:[#allocation5 + $0x160] sm:$0xff] }
 0x4f5   :  { %v1238_v60 = vpop.f32.mrf.mxu0  ;;  %v1309_v17 = vpop.f32.mrf.mxu1  ;;  %1690 = vmatprep.subr.mxu0 %v3155_v58  ;;  %v3161_v49 = vld [vmem:[#allocation5 + $0x1c8] sm:$0xff] }
 0x4f6   :  { %v2213_v41 = vmul.f32 -1.442695, %v1237_v55  ;;  %v1239_v22 = vadd.f32 %v1238_v60, %v1164_v57  ;;  %v1310_v63 = vadd.f32 %v1309_v17, %v1165_v61  ;;  %v3158_v57 = vld [vmem:[#allocation5 + $0x1e0] sm:$0xff]  ;;  %v3167_v55 = vld [vmem:[#allocation5 + $0x1a8] sm:$0xff] }
 0x4f7   :  { %v3170_v60 = vld [vmem:[#allocation5 + $0x1a0] sm:$0xff]  ;;  %v3179_v45 = vld [vmem:[#allocation5 + $0x168] sm:$0xff] }
 0x4f8   :  { %2306 = vpow2.f32 %v2213_v41  ;;  %v2214_v35 = vmul.f32 -1.442695, %v1239_v22  ;;  %v2215_v62 = vmul.f32 -1.442695, %v1310_v63  ;;  %v3173_v41 = vld [vmem:[#allocation5 + $0x188] sm:$0xff]  ;;  %v3176_v22 = vld [vmem:[#allocation5 + $0x180] sm:$0xff] }
 0x4f9   :  { %v3188_v61 = vld [vmem:[#allocation5 + $0x140] sm:$0xff]  ;;  %v3191_v17 = vld [vmem:[#allocation5 + $0x128] sm:$0xff] }
 0x4fa   :  { %2308 = vpow2.f32 %v2214_v35  ;;  %v3185_v35 = vld [vmem:[#allocation5 + $0x148] sm:$0xff]  ;;  %v3194_v63 = vld [vmem:[#allocation5 + $0x120] sm:$0xff] }
 0x4fb   :  { %2310 = vpow2.f32 %v2215_v62  ;;  %v3197_v62 = vld [vmem:[#allocation5 + $0x108] sm:$0xff] }
 0x505   :  { %v2307_v1 = vpop.eup %2306 }
 0x506   :  { %v1315_v8 = vadd.f32 1.0, %v2307_v1  ;;  %v3200_v1 = vld [vmem:[#allocation5 + $0x100] sm:$0xff] }
 0x507   :  { %v2309_v52 = vpop.eup %2308 }
 0x508   :  { %2312 = vrcp.f32 %v1315_v8  ;;  %v1321_v6 = vadd.f32 1.0, %v2309_v52  ;;  %v2311_v14 = vpop.eup %2310  ;;  %v3206_v8 = vld [vmem:[#allocation5 + $0xe0] sm:$0xff]  ;;  %v3209_v52 = vld [vmem:[#allocation5 + $0xc8] sm:$0xff] }
 0x509   :  { %2314 = vtanh.f32 %v1308_v12  ;;  %v1328_v33 = vadd.f32 1.0, %v2311_v14  ;;  %v3203_v12 = vld [vmem:[#allocation5 + $0xe8] sm:$0xff] }
 0x50a   :  { %2316 = vrcp.f32 %v1321_v6  ;;  %v3212_v6 = vld [vmem:[#allocation5 + $0xc0] sm:$0xff]  ;;  %v3215_v14 = vld [vmem:[#allocation5 + $0xa8] sm:$0xff] }
 0x50b   :  { %2318 = vrcp.f32 %v1328_v33  ;;  %v3230_v33 = vld [vmem:[#allocation5 + $0x60] sm:$0xff] }
 0x50c   :  { %3533 = vst [vmem:[#allocation16_spill] sm:$0xff] %v3230_v33 }
 0x515   :  { %v2313_v18 = vpop.eup %2312 }
 0x516   :  { %v2315_v21 = vpop.eup %2314 }
 0x517   :  { %v2317_v25 = vpop.eup %2316  ;;  %v1332_v38 = vmul.f32 %v2315_v21, %v2313_v18  ;;  %v3218_v18 = vld [vmem:[#allocation5 + $0xa0] sm:$0xff]  ;;  %v3221_v21 = vld [vmem:[#allocation5 + $0x88] sm:$0xff] }
 0x518   :  { %v1331_v40 = vmul.f32 %v2317_v25, %v1081_v29  ;;  %v2319_v44 = vpop.eup %2318  ;;  %v3224_v25 = vld [vmem:[#allocation5 + $0x80] sm:$0xff]  ;;  %v3227_v29 = vld [vmem:[#allocation5 + $0x68] sm:$0xff] }
 0x519   :  { %3531 = vst [vmem:[#allocation14_spill] sm:$0xff] %v3224_v25  ;;  %3532 = vst [vmem:[#allocation9_spill] sm:$0xff] %v3227_v29 }
 0x51a   :  { %v1333_v42 = vadd.f32 %v1332_v38, %v1331_v40  ;;  %v3233_v38 = vld [vmem:[#allocation5 + $0x48] sm:$0xff]  ;;  %v3236_v40 = vld [vmem:[#allocation5 + $0x40] sm:$0xff] }
 0x51b   :  { %3534 = vst [vmem:[#allocation10_spill] sm:$0xff] %v3233_v38  ;;  %3535 = vst [vmem:[#allocation18_spill] sm:$0xff] %v3236_v40 }
 0x51c   :  { %2320 = vtanh.f32 %v1333_v42  ;;  %1337 = vst [vmem:[#allocation3] sm:$0x3] %v1333_v42  ;;  %v3239_v42 = vld [vmem:[#allocation5 + $0x28] sm:$0xff] }
 0x51d   :  { %3536 = vst [vmem:[#allocation11_spill] sm:$0xff] %v3239_v42 }
 0x529   :  { %v2321_v46 = vpop.eup %2320 }
 0x52a   :  { %v1335_v50 = vmul.f32 %v2321_v46, %v2319_v44  ;;  %v3242_v44 = vld [vmem:[#allocation5 + $0x20] sm:$0xff]  ;;  %v3244_v46 = vld [vmem:[#allocation5 + $0x30] sm:$0xff] }
 0x52b   :  { %3537 = vst [vmem:[#allocation20_spill] sm:$0xff] %v3242_v44  ;;  %3538 = vst [vmem:[#allocation12_spill] sm:$0xff] %v3244_v46 }
 0x52c   :  { %1339 = vst [vmem:[#allocation4 + $0x8] sm:$0x3] %v1335_v50  ;;  %1336 = vst [vmem:[#allocation2] sm:$0x3] %v1335_v50  ;;  %v3248_v50 = vld [vmem:[#allocation5 + $0x8] sm:$0xff] }
 0x52d   :  { %3539 = vst [vmem:[#allocation22_spill] sm:$0xff] %v3248_v50 }
 0x533   :  { %v1340_v4 = vld [vmem:[#allocation2] sm:$0x3] }
 0x534   :  { %1495 = vmatmul.mubr.f32.vlgmr.msra.gmra.mxu0 %v1340_v4  ;;  %1566 = vmatmul.mubr.f32.vlgmr.msra.gmra.mxu1 %v1340_v4  ;;  %v3250_v4 = vld [vmem:[#allocation5 + $0x18] sm:$0xff] }
 0x535   :  { %1762 = vmatpush1.msra.mxu1 %v2962_v59  ;;  %1754 = vmatprep.mubr.f32.mxu0 %v3528_v48  ;;  %3540 = vst [vmem:[#allocation13_spill] sm:$0xff] %v3250_v4 }
 0x536   :  { %1763 = vmatprep.subr.mxu1 %v2965_v34  ;;  %1825 = vmatprep.mubr.f32.mxu1 %v3528_v48  ;;  %v3254_v48 = vld [vmem:[#allocation5] sm:$0xff] }
 0x537   :  { %1764 = vmatpush1.msra.mxu1 %v2968_v47  ;;  %1691 = vmatpush1.msra.mxu0 %v3158_v57  ;;  %3541 = vst [vmem:[#allocation23_spill] sm:$0xff] %v3254_v48 }
 0x538   :  { %1765 = vmatprep.subr.mxu1 %v2971_v53  ;;  %1692 = vmatprep.subr.mxu0 %v3161_v49 }
 0x539   :  { %1766 = vmatpush1.msra.mxu1 %v2974_v11  ;;  %1693 = vmatpush1.msra.mxu0 %v3164_v51 }
 0x53a   :  { %1767 = vmatprep.subr.mxu1 %v2977_v54  ;;  %1694 = vmatprep.subr.mxu0 %v3167_v55 }
 0x53b   :  { %1768 = vmatpush1.msra.mxu1 %v2980_v43  ;;  %1695 = vmatpush1.msra.mxu0 %v3170_v60 }
 0x53c   :  { %1769 = vmatprep.subr.mxu1 %v2983_v3  ;;  %1696 = vmatprep.subr.mxu0 %v3173_v41 }
 0x53d   :  { %1770 = vmatpush1.msra.mxu1 %v2986_v5  ;;  %1697 = vmatpush1.msra.mxu0 %v3176_v22 }
 0x53e   :  { %1771 = vmatprep.subr.mxu1 %v2989_v7  ;;  %1698 = vmatprep.subr.mxu0 %v3179_v45 }
 0x53f   :  { %1772 = vmatpush1.msra.mxu1 %v2992_v10  ;;  %1699 = vmatpush1.msra.mxu0 %v3182_v56 }
 0x540   :  { %1773 = vmatprep.subr.mxu1 %v2995_v15  ;;  %1700 = vmatprep.subr.mxu0 %v3185_v35 }
 0x541   :  { %1774 = vmatpush1.msra.mxu1 %v2998_v20  ;;  %1701 = vmatpush1.msra.mxu0 %v3188_v61 }
 0x542   :  { %1775 = vmatprep.subr.mxu1 %v3001_v24  ;;  %1702 = vmatprep.subr.mxu0 %v3191_v17 }
 0x543   :  { %1776 = vmatpush1.msra.mxu1 %v3004_v26  ;;  %1703 = vmatpush1.msra.mxu0 %v3194_v63 }
 0x544   :  { %1777 = vmatprep.subr.mxu1 %v3007_v28  ;;  %1704 = vmatprep.subr.mxu0 %v3197_v62 }
 0x545   :  { %1778 = vmatpush1.msra.mxu1 %v3010_v30  ;;  %1705 = vmatpush1.msra.mxu0 %v3200_v1 }
 0x546   :  { %1779 = vmatprep.subr.mxu1 %v3013_v32  ;;  %1706 = vmatprep.subr.mxu0 %v3203_v12 }
 0x547   :  { %1780 = vmatpush1.msra.mxu1 %v3016_v37  ;;  %1707 = vmatpush1.msra.mxu0 %v3206_v8 }
 0x548   :  { %1781 = vmatprep.subr.mxu1 %v3019_v39  ;;  %1708 = vmatprep.subr.mxu0 %v3209_v52 }
 0x549   :  { %1782 = vmatpush1.msra.mxu1 %v3022_v9  ;;  %1709 = vmatpush1.msra.mxu0 %v3212_v6 }
 0x54a   :  { %1783 = vmatprep.subr.mxu1 %v3510_v13  ;;  %1710 = vmatprep.subr.mxu0 %v3215_v14 }
 0x54b   :  { %1784 = vmatpush1.msra.mxu1 %v3512_v16  ;;  %1711 = vmatpush1.msra.mxu0 %v3218_v18 }
 0x54c   :  { %1785 = vmatprep.subr.mxu1 %v3514_v19  ;;  %1712 = vmatprep.subr.mxu0 %v3221_v21 }
 0x54d   :  { %1786 = vmatpush1.msra.mxu1 %v3516_v23  ;;  %1713 = vmatpush1.msra.mxu0 %v3224_v25 }
 0x54e   :  { %1787 = vmatprep.subr.mxu1 %v3518_v27  ;;  %1714 = vmatprep.subr.mxu0 %v3227_v29 }
 0x54f   :  { %1788 = vmatpush1.msra.mxu1 %v3520_v31  ;;  %1715 = vmatpush1.msra.mxu0 %v3230_v33 }
 0x550   :  { %1789 = vmatprep.subr.mxu1 %v3522_v36  ;;  %1716 = vmatprep.subr.mxu0 %v3233_v38  ;;  %v3256_v36 = vld [vmem:[#allocation5 + $0x10] sm:$0xff] }
 0x551   :  { %1717 = vmatpush1.msra.mxu0 %v3236_v40  ;;  %1790 = vmatpush1.msra.mxu1 %v3244_v46  ;;  %3542 = vst [vmem:[#allocation15_spill] sm:$0xff] %v3256_v36  ;;  %v2216_v46 = vld [vmem:[%s3358_s0 + $0x28] sm:$0xff] }
 0x552   :  { %1718 = vmatprep.subr.mxu0 %v3239_v42  ;;  %1791 = vmatprep.subr.mxu1 %v3250_v4  ;;  %v1409_v42 = vcombine.high %v2216_v46, %v2216_v46 }
 0x553   :  { %1719 = vmatpush1.msra.mxu0 %v3242_v44  ;;  %1792 = vmatpush1.msra.mxu1 %v3256_v36 }
 0x554   :  { %1720 = vmatprep.subr.mxu0 %v3248_v50  ;;  %2021 = vmatprep.subr.mxu1 %v3530_v2  ;;  %v1416_v50 = vrot.slane %v2216_v46, %v2707_v0 }
 0x555   :  { %1721 = vmatpush1.msra.mxu0 %v3254_v48  ;;  %v1423_v48 = vrot.slane %v1409_v42, %v2707_v0 }
 0x556   :  { %1950 = vmatprep.subr.mxu0 %v3155_v58  ;;  %v1424_v44 = vcombine.high %v1416_v50, %v1416_v50 }
 0x557   :  { %v1425_v2 = vcombine.high %v1423_v48, %v1423_v48 }
 0x5f4   :  { %v1496_v4 = vpop.f32.mrf.mxu0  ;;  %v1567_v36 = vpop.f32.mrf.mxu1 }
 0x5f5   :  { %v1497_v31 = vadd.f32 %v1496_v4, %v1416_v50  ;;  %v1568_v16 = vadd.f32 %v1567_v36, %v1423_v48 }
 0x5f6   :  { %v1498_v40 = vpop.f32.mrf.mxu0  ;;  %v1569_v23 = vpop.f32.mrf.mxu1 }
 0x5f7   :  { %v2217_v27 = vmul.f32 -1.442695, %v1497_v31  ;;  %v1499_v38 = vadd.f32 %v1498_v40, %v1424_v44  ;;  %v1570_v33 = vadd.f32 %v1569_v23, %v1425_v2  ;;  %v1341_v44 = vld [vmem:[#allocation3] sm:$0x3] }
 0x5f9   :  { %2322 = vpow2.f32 %v2217_v27  ;;  %v2218_v58 = vmul.f32 -1.442695, %v1499_v38  ;;  %v2219_v19 = vmul.f32 -1.442695, %v1570_v33 }
 0x5fb   :  { %2324 = vpow2.f32 %v2218_v58 }
 0x5fc   :  { %2326 = vpow2.f32 %v2219_v19 }
 0x606   :  { %v2323_v29 = vpop.eup %2322 }
 0x607   :  { %v1575_v25 = vadd.f32 1.0, %v2323_v29 }
 0x608   :  { %v2325_v13 = vpop.eup %2324 }
 0x609   :  { %2328 = vrcp.f32 %v1575_v25  ;;  %v1581_v46 = vadd.f32 1.0, %v2325_v13  ;;  %v2327_v31 = vpop.eup %2326 }
 0x60a   :  { %2330 = vtanh.f32 %v1568_v16  ;;  %v1588_v38 = vadd.f32 1.0, %v2327_v31 }
 0x60b   :  { %2332 = vrcp.f32 %v1581_v46 }
 0x60c   :  { %2334 = vrcp.f32 %v1588_v38 }
 0x616   :  { %v2329_v40 = vpop.eup %2328 }
 0x617   :  { %v2331_v42 = vpop.eup %2330 }
 0x618   :  { %v2333_v27 = vpop.eup %2332  ;;  %v1592_v50 = vmul.f32 %v2331_v42, %v2329_v40 }
 0x619   :  { %v1591_v4 = vmul.f32 %v2333_v27, %v1341_v44  ;;  %v2335_v23 = vpop.eup %2334  ;;  %v2224_v44 = vld [vmem:[%s3358_s0 + $0x38] sm:$0xff] }
 0x61a   :  { %v1936_v38 = vrot.slane %v2224_v44, %v2707_v0 }
 0x61b   :  { %v1593_v58 = vadd.f32 %v1592_v50, %v1591_v4 }
 0x61c   :  { %v1944_v50 = vcombine.high %v1936_v38, %v1936_v38 }
 0x61d   :  { %2336 = vtanh.f32 %v1593_v58  ;;  %1597 = vst [vmem:[#allocation3] sm:$0x3] %v1593_v58  ;;  %v1929_v58 = vcombine.high %v2224_v44, %v2224_v44 }
 0x624   :  { %v1601_v25 = vld [vmem:[#allocation3] sm:$0x3] }
 0x62a   :  { %v2337_v36 = vpop.eup %2336 }
 0x62b   :  { %v1595_v48 = vmul.f32 %v2337_v36, %v2335_v23 }
 0x62d   :  { %1599 = vst [vmem:[#allocation4 + $0xa] sm:$0x3] %v1595_v48  ;;  %1596 = vst [vmem:[#allocation2] sm:$0x3] %v1595_v48 }
 0x634   :  { %v1600_v13 = vld [vmem:[#allocation2] sm:$0x3] }
 0x635   :  { %1755 = vmatmul.mubr.f32.vlgmr.msra.gmra.mxu0 %v1600_v13  ;;  %1826 = vmatmul.mubr.f32.vlgmr.msra.gmra.mxu1 %v1600_v13 }
 0x636   :  { %1951 = vmatpush1.msra.mxu0 %v3158_v57  ;;  %2022 = vmatpush1.msra.mxu1 %v2962_v59  ;;  %v3543_v59 = vld [vmem:[#allocation17_spill] sm:$0xff] }
 0x637   :  { %1952 = vmatprep.subr.mxu0 %v3161_v49  ;;  %2023 = vmatprep.subr.mxu1 %v2965_v34  ;;  %v3544_v34 = vld [vmem:[#allocation14_spill] sm:$0xff] }
 0x638   :  { %1953 = vmatpush1.msra.mxu0 %v3164_v51  ;;  %2024 = vmatpush1.msra.mxu1 %v2968_v47  ;;  %v3545_v47 = vld [vmem:[#allocation25_spill] sm:$0xff] }
 0x639   :  { %1954 = vmatprep.subr.mxu0 %v3167_v55  ;;  %2025 = vmatprep.subr.mxu1 %v2971_v53  ;;  %v3546_v53 = vld [vmem:[#allocation9_spill] sm:$0xff] }
 0x63a   :  { %1955 = vmatpush1.msra.mxu0 %v3170_v60  ;;  %2026 = vmatpush1.msra.mxu1 %v2974_v11  ;;  %v3547_v11 = vld [vmem:[#allocation19_spill] sm:$0xff] }
 0x63b   :  { %1956 = vmatprep.subr.mxu0 %v3173_v41  ;;  %2027 = vmatprep.subr.mxu1 %v2977_v54  ;;  %v3548_v54 = vld [vmem:[#allocation16_spill] sm:$0xff] }
 0x63c   :  { %1957 = vmatpush1.msra.mxu0 %v3176_v22  ;;  %2028 = vmatpush1.msra.mxu1 %v2980_v43  ;;  %v3549_v43 = vld [vmem:[#allocation26_spill] sm:$0xff] }
 0x63d   :  { %1958 = vmatprep.subr.mxu0 %v3179_v45  ;;  %2029 = vmatprep.subr.mxu1 %v2983_v3  ;;  %v3550_v3 = vld [vmem:[#allocation10_spill] sm:$0xff] }
 0x63e   :  { %1959 = vmatpush1.msra.mxu0 %v3182_v56  ;;  %2030 = vmatpush1.msra.mxu1 %v2986_v5  ;;  %v3551_v5 = vld [vmem:[#allocation21_spill] sm:$0xff] }
 0x63f   :  { %1960 = vmatprep.subr.mxu0 %v3185_v35  ;;  %2031 = vmatprep.subr.mxu1 %v2989_v7  ;;  %v3552_v7 = vld [vmem:[#allocation18_spill] sm:$0xff] }
 0x640   :  { %1961 = vmatpush1.msra.mxu0 %v3188_v61  ;;  %2032 = vmatpush1.msra.mxu1 %v2992_v10  ;;  %v3553_v10 = vld [vmem:[#allocation27_spill] sm:$0xff] }
 0x641   :  { %1962 = vmatprep.subr.mxu0 %v3191_v17  ;;  %2033 = vmatprep.subr.mxu1 %v2995_v15  ;;  %v3554_v15 = vld [vmem:[#allocation11_spill] sm:$0xff] }
 0x642   :  { %1963 = vmatpush1.msra.mxu0 %v3194_v63  ;;  %2034 = vmatpush1.msra.mxu1 %v2998_v20  ;;  %v3555_v20 = vld [vmem:[#allocation8_spill] sm:$0xff] }
 0x643   :  { %1964 = vmatprep.subr.mxu0 %v3197_v62  ;;  %2035 = vmatprep.subr.mxu1 %v3001_v24  ;;  %v3556_v24 = vld [vmem:[#allocation20_spill] sm:$0xff] }
 0x644   :  { %1965 = vmatpush1.msra.mxu0 %v3200_v1  ;;  %2036 = vmatpush1.msra.mxu1 %v3004_v26  ;;  %v3557_v26 = vld [vmem:[#allocation12_spill] sm:$0xff] }
 0x645   :  { %1966 = vmatprep.subr.mxu0 %v3203_v12  ;;  %2037 = vmatprep.subr.mxu1 %v3007_v28  ;;  %v3558_v28 = vld [vmem:[#allocation22_spill] sm:$0xff] }
 0x646   :  { %1967 = vmatpush1.msra.mxu0 %v3206_v8  ;;  %2038 = vmatpush1.msra.mxu1 %v3010_v30  ;;  %v3559_v30 = vld [vmem:[#allocation13_spill] sm:$0xff] }
 0x647   :  { %1968 = vmatprep.subr.mxu0 %v3209_v52  ;;  %2039 = vmatprep.subr.mxu1 %v3013_v32  ;;  %v3560_v32 = vld [vmem:[#allocation23_spill] sm:$0xff] }
 0x648   :  { %1969 = vmatpush1.msra.mxu0 %v3212_v6  ;;  %2040 = vmatpush1.msra.mxu1 %v3016_v37  ;;  %v3561_v37 = vmov 0.0  }
 0x649   :  { %1970 = vmatprep.subr.mxu0 %v3215_v14  ;;  %2041 = vmatprep.subr.mxu1 %v3019_v39  ;;  %v3562_v39 = vld [vmem:[#allocation15_spill] sm:$0xff] }
 0x64a   :  { %1971 = vmatpush1.msra.mxu0 %v3218_v18  ;;  %2042 = vmatpush1.msra.mxu1 %v3022_v9  ;;  %v2220_v9 = vld [vmem:[%s3358_s0 + $0x30] sm:$0xff] }
 0x64b   :  { %1972 = vmatprep.subr.mxu0 %v3221_v21  ;;  %2043 = vmatprep.subr.mxu1 %v3543_v59  ;;  %v1676_v16 = vrot.slane %v2220_v9, %v2707_v0  ;;  %v1669_v49 = vcombine.high %v2220_v9, %v2220_v9  ;;  %v1943_v59 = vrot.slane %v1929_v58, %v2707_v0 }
 0x64c   :  { %1973 = vmatpush1.msra.mxu0 %v3544_v34  ;;  %2044 = vmatpush1.msra.mxu1 %v3545_v47 }
 0x64d   :  { %1974 = vmatprep.subr.mxu0 %v3546_v53  ;;  %2045 = vmatprep.subr.mxu1 %v3547_v11  ;;  %v1684_v19 = vcombine.high %v1676_v16, %v1676_v16  ;;  %v1683_v22 = vrot.slane %v1669_v49, %v2707_v0  ;;  %v1945_v53 = vcombine.high %v1943_v59, %v1943_v59 }
 0x64e   :  { %1975 = vmatpush1.msra.mxu0 %v3548_v54  ;;  %2046 = vmatpush1.msra.mxu1 %v3549_v43 }
 0x64f   :  { %1976 = vmatprep.subr.mxu0 %v3550_v3  ;;  %2047 = vmatprep.subr.mxu1 %v3551_v5  ;;  %v1685_v35 = vcombine.high %v1683_v22, %v1683_v22 }
 0x650   :  { %1977 = vmatpush1.msra.mxu0 %v3552_v7  ;;  %2048 = vmatpush1.msra.mxu1 %v3553_v10 }
 0x651   :  { %1978 = vmatprep.subr.mxu0 %v3554_v15  ;;  %2049 = vmatprep.subr.mxu1 %v3555_v20 }
 0x652   :  { %1979 = vmatpush1.msra.mxu0 %v3556_v24  ;;  %2050 = vmatpush1.msra.mxu1 %v3557_v26 }
 0x653   :  { %1980 = vmatprep.subr.mxu0 %v3558_v28  ;;  %2051 = vmatprep.subr.mxu1 %v3559_v30 }
 0x654   :  { %1981 = vmatpush1.msra.mxu0 %v3560_v32  ;;  %2014 = vmatprep.mubr.f32.mxu0 %v3561_v37 }
 0x655   :  { %2052 = vmatpush1.msra.mxu1 %v3562_v39  ;;  %2085 = vmatprep.mubr.f32.mxu1 %v3561_v37 }
 0x6f5   :  { %v1756_v57 = vpop.f32.mrf.mxu0  ;;  %v1827_v45 = vpop.f32.mrf.mxu1 }
 0x6f6   :  { %v1757_v51 = vadd.f32 %v1756_v57, %v1676_v16  ;;  %v1828_v1 = vadd.f32 %v1827_v45, %v1683_v22  ;;  %v2397_v22 = vmov 1934713408  }
 0x6f7   :  { %v1758_v55 = vpop.f32.mrf.mxu0  ;;  %v1829_v61 = vpop.f32.mrf.mxu1  ;;  %v2166_v45 = vunpack.c.l.s4 %v2397_v22 }
 0x6f8   :  { %v2221_v60 = vmul.f32 -1.442695, %v1757_v51  ;;  %v1759_v41 = vadd.f32 %v1758_v55, %v1684_v19  ;;  %v1830_v17 = vadd.f32 %v1829_v61, %v1685_v35  ;;  %v2127_v51 = vld [vmem:[#allocation4 + $0x6] sm:$0x3]  ;;  %v2125_v55 = vld [vmem:[#allocation4 + $0x2] sm:$0x3] }
 0x6fa   :  { %2338 = vpow2.f32 %v2221_v60  ;;  %v2222_v56 = vmul.f32 -1.442695, %v1759_v41  ;;  %v2223_v63 = vmul.f32 -1.442695, %v1830_v17  ;;  %v2126_v60 = vld [vmem:[#allocation4 + $0x4] sm:$0x3]  ;;  %v2140_v41 = vcombine.low %v2125_v55, %v2127_v51 }
 0x6fb   :  { %v2128_v17 = vld [vmem:[#allocation4 + $0x8] sm:$0x3] }
 0x6fc   :  { %2340 = vpow2.f32 %v2222_v56  ;;  %v2124_v56 = vld [vmem:[#allocation4] sm:$0x3] }
 0x6fd   :  { %2342 = vpow2.f32 %v2223_v63  ;;  %v2132_v61 = vcombine.low %v2124_v56, %v2126_v60  ;;  %v2147_v63 = vrot.slane %v2140_v41, %v2707_v0 }
 0x707   :  { %v2339_v62 = vpop.eup %2338 }
 0x708   :  { %v1835_v12 = vadd.f32 1.0, %v2339_v62  ;;  %v2167_v62 = vunpack.c.0.s8 %v2166_v45 }
 0x709   :  { %v2341_v8 = vpop.eup %2340 }
 0x70a   :  { %2344 = vrcp.f32 %v1835_v12  ;;  %v1841_v52 = vadd.f32 1.0, %v2341_v8  ;;  %v2343_v6 = vpop.eup %2342  ;;  %v2129_v12 = vld [vmem:[#allocation4 + $0xa] sm:$0x3] }
 0x70b   :  { %2346 = vtanh.f32 %v1828_v1  ;;  %v1848_v29 = vadd.f32 1.0, %v2343_v6  ;;  %v2139_v6 = vrot.slane %v2132_v61, %v2707_v0 }
 0x70c   :  { %2348 = vrcp.f32 %v1841_v52 }
 0x70d   :  { %2350 = vrcp.f32 %v1848_v29 }
 0x717   :  { %v2345_v14 = vpop.eup %2344 }
 0x718   :  { %v2347_v18 = vpop.eup %2346 }
 0x719   :  { %v2349_v21 = vpop.eup %2348  ;;  %v1852_v33 = vmul.f32 %v2347_v18, %v2345_v14  ;;  %v2164_v18 = vcombine.low %v2139_v6, %v2147_v63 }
 0x71a   :  { %v1851_v2 = vmul.f32 %v2349_v21, %v1601_v25  ;;  %v2351_v31 = vpop.eup %2350  ;;  %v3563_v21 = vld [vmem:[#allocation28_spill] sm:$0xff] }
 0x71b   :  { %v2170_v25 = vsub.s32 %v2167_v62, %v3563_v21 }
 0x71c   :  { %v1853_v46 = vadd.f32 %v1852_v33, %v1851_v2 }
 0x71e   :  { %2352 = vtanh.f32 %v1853_v46  ;;  %1857 = vst [vmem:[#allocation3] sm:$0x3] %v1853_v46  ;;  %v2171_v46 = vrot.slane %v2164_v18, %v2170_v25 }
 0x725   :  { %v1861_v30 = vld [vmem:[#allocation3] sm:$0x3] }
 0x72b   :  { %v2353_v40 = vpop.eup %2352 }
 0x72c   :  { %v1855_v42 = vmul.f32 %v2353_v40, %v2351_v31 }
 0x72e   :  { %1859 = vst [vmem:[#allocation4 + $0xc] sm:$0x3] %v1855_v42  ;;  %1856 = vst [vmem:[#allocation2] sm:$0x3] %v1855_v42 }
 0x735   :  { %v1860_v27 = vld [vmem:[#allocation2] sm:$0x3]  ;;  %v2130_v35 = vld [vmem:[#allocation4 + $0xc] sm:$0x3] }
 0x736   :  { %2015 = vmatmul.mubr.f32.vlgmr.msra.gmra.mxu0 %v1860_v27  ;;  %2086 = vmatmul.mubr.f32.vlgmr.msra.gmra.mxu1 %v1860_v27  ;;  %v2148_v1 = vcombine.low %v2128_v17, %v2130_v35 }
 0x738   :  { %v2155_v29 = vrot.slane %v2148_v1, %v2707_v0 }
 0x7f6   :  { %v2016_v4 = vpop.f32.mrf.mxu0  ;;  %v2087_v34 = vpop.f32.mrf.mxu1 }
 0x7f7   :  { %v2017_v23 = vadd.f32 %v2016_v4, %v1936_v38  ;;  %v2088_v5 = vadd.f32 %v2087_v34, %v1943_v59 }
 0x7f8   :  { %v2018_v36 = vpop.f32.mrf.mxu0  ;;  %v2089_v11 = vpop.f32.mrf.mxu1 }
 0x7f9   :  { %v2225_v48 = vmul.f32 -1.442695, %v2017_v23  ;;  %v2019_v13 = vadd.f32 %v2018_v36, %v1944_v50  ;;  %v2090_v54 = vadd.f32 %v2089_v11, %v1945_v53 }
 0x7fb   :  { %2354 = vpow2.f32 %v2225_v48  ;;  %v2226_v47 = vmul.f32 -1.442695, %v2019_v13  ;;  %v2227_v43 = vmul.f32 -1.442695, %v2090_v54 }
 0x7fd   :  { %2356 = vpow2.f32 %v2226_v47 }
 0x7fe   :  { %2358 = vpow2.f32 %v2227_v43 }
 0x808   :  { %v2355_v3 = vpop.eup %2354 }
 0x809   :  { %v2095_v7 = vadd.f32 1.0, %v2355_v3 }
 0x80a   :  { %v2357_v10 = vpop.eup %2356 }
 0x80b   :  { %2360 = vrcp.f32 %v2095_v7  ;;  %v2101_v15 = vadd.f32 1.0, %v2357_v10  ;;  %v2359_v20 = vpop.eup %2358 }
 0x80c   :  { %2362 = vtanh.f32 %v2088_v5  ;;  %v2108_v32 = vadd.f32 1.0, %v2359_v20 }
 0x80d   :  { %2364 = vrcp.f32 %v2101_v15 }
 0x80e   :  { %2366 = vrcp.f32 %v2108_v32 }
 0x818   :  { %v2361_v24 = vpop.eup %2360 }
 0x819   :  { %v2363_v26 = vpop.eup %2362 }
 0x81a   :  { %v2365_v28 = vpop.eup %2364  ;;  %v2112_v37 = vmul.f32 %v2363_v26, %v2361_v24 }
 0x81b   :  { %v2111_v39 = vmul.f32 %v2365_v28, %v1861_v30  ;;  %v2367_v19 = vpop.eup %2366 }
 0x81d   :  { %v2113_v9 = vadd.f32 %v2112_v37, %v2111_v39 }
 0x81f   :  { %2368 = vtanh.f32 %v2113_v9  ;;  %2117 = vst [vmem:[#allocation3] sm:$0x3] %v2113_v9 }
 0x826   :  { %v2122_v16 = vld [vmem:[#allocation3] sm:$0x3] }
 0x827   :  { %2123 = vst [vmem:[%s3364_s6] sm:$0x3] %v2122_v16 }
 0x82c   :  { %v2369_v57 = vpop.eup %2368 }
 0x82d   :  { %v2115_v49 = vmul.f32 %v2369_v57, %v2367_v19 }
 0x82f   :  { %2116 = vst [vmem:[#allocation2] sm:$0x3] %v2115_v49  ;;  %2119 = vst [vmem:[#allocation4 + $0xe] sm:$0x3] %v2115_v49 }
 0x836   :  { %v2120_v8 = vld [vmem:[#allocation2] sm:$0x3]  ;;  %v2131_v52 = vld [vmem:[#allocation4 + $0xe] sm:$0x3] }
 0x837   :  { %2121 = vst [vmem:[%s3363_s5] sm:$0x3] %v2120_v8  ;;  %v2156_v14 = vcombine.low %v2129_v12, %v2131_v52 }
 0x839   :  { %v2163_v33 = vrot.slane %v2156_v14, %v2707_v0 }
 0x83b   :  { %v2172_v2 = vcombine.low %v2155_v29, %v2163_v33 }
 0x83d   :  { %v2179_v31 = vrot.slane %v2172_v2, %v2170_v25 }
 0x83f   :  { %v2180_v40 = vcombine.low %v2171_v46, %v2179_v31  ;;  %v2181_v42 = vcombine.high %v2171_v46, %v2179_v31 }
 0x841   :  { %2182 = vst [vmem:[%s3362_s4] sm:$0xff] %v2180_v40  ;;  %2183 = vst [vmem:[%s3362_s4 + $0x8] sm:$0xff] %v2181_v42 }
 0x842   :  { %2196 = vsyncpa [#allocation6], 1 }

// kernel: encoder_lstm_forward.7
= control target key start
LH: loop header
LB: loop body
LE: loop exit
PB: predicated region body
PF: predicated region fallthrough
CT: control target
= control target key end

     0   :  { %v3741_v4 = vmov 0.0   ;;  %s3734_s0 = inlined_call_operand.vmem [shape: f32[8,2,512], index: 0, kind: input, shape index: {}]   ;;  %s3735_s1 = inlined_call_operand.vmem [shape: f32[128,512], index: 1, kind: input, shape index: {}]   ;;  %s3736_s2 = inlined_call_operand.vmem [shape: f32[2,128], index: 2, kind: input, shape index: {}]   ;;  %s3737_s3 = inlined_call_operand.vmem [shape: f32[2,128], index: 3, kind: input, shape index: {}]   ;;  %s3738_s4 = inlined_call_operand.hbm [shape: f32[2,8,128], index: 4, kind: output, shape index: {0}]   ;;  %s3739_s5 = inlined_call_operand.vmem [shape: f32[2,128], index: 5, kind: output, shape index: {1}]   ;;  %s3740_s6 = inlined_call_operand.vmem [shape: f32[2,128], index: 6, kind: output, shape index: {2}]  }
   0x1   :  { %v2442_v0 = vld [vmem:[%s3735_s1 + $0x1e8] sm:$0xff]  ;;  %v2447_v1 = vld [vmem:[%s3735_s1 + $0x1e0] sm:$0xff]  ;;  %182 = vmatprep.mubr.f32.mxu0 %v3741_v4  ;;  %253 = vmatprep.mubr.f32.mxu1 %v3741_v4  ;;  %v2489_v9 = vld [vmem:[%s3735_s1 + $0x1f8] sm:$0xff] }
   0x2   :  { %v2452_v2 = vld [vmem:[%s3735_s1 + $0x1c8] sm:$0xff]  ;;  %118 = vmatprep.subr.mxu0 %v2442_v0  ;;  %v2458_v3 = vld [vmem:[%s3735_s1 + $0x1c0] sm:$0xff]  ;;  %3818 = vst [vmem:[#allocation8_spill] sm:$0xff] %v2489_v9  ;;  %189 = vmatprep.subr.mxu1 %v2489_v9  ;;  %v2501_v11 = vld [vmem:[%s3735_s1 + $0x1f0] sm:$0xff] }
   0x3   :  { %119 = vmatpush1.msra.mxu0 %v2447_v1  ;;  %v2465_v5 = vld [vmem:[%s3735_s1 + $0x1a8] sm:$0xff]  ;;  %v2472_v6 = vld [vmem:[%s3735_s1 + $0x1a0] sm:$0xff]  ;;  %190 = vmatpush1.msra.mxu1 %v2501_v11  ;;  %v2513_v13 = vld [vmem:[%s3735_s1 + $0x1d8] sm:$0xff] }
   0x4   :  { %120 = vmatprep.subr.mxu0 %v2452_v2  ;;  %v2478_v7 = vld [vmem:[%s3735_s1 + $0x188] sm:$0xff]  ;;  %v2484_v8 = vld [vmem:[%s3735_s1 + $0x180] sm:$0xff]  ;;  %v2518_v14 = vld [vmem:[%s3735_s1 + $0x1d0] sm:$0xff]  ;;  %191 = vmatprep.subr.mxu1 %v2513_v13 }
   0x5   :  { %121 = vmatpush1.msra.mxu0 %v2458_v3  ;;  %v2495_v10 = vld [vmem:[%s3735_s1 + $0x168] sm:$0xff]  ;;  %v2507_v12 = vld [vmem:[%s3735_s1 + $0x160] sm:$0xff]  ;;  %v2530_v16 = vld [vmem:[%s3735_s1 + $0x1b8] sm:$0xff]  ;;  %192 = vmatpush1.msra.mxu1 %v2518_v14 }
   0x6   :  { %122 = vmatprep.subr.mxu0 %v2465_v5  ;;  %v2524_v15 = vld [vmem:[%s3735_s1 + $0x148] sm:$0xff]  ;;  %v2536_v17 = vld [vmem:[%s3735_s1 + $0x140] sm:$0xff]  ;;  %v2542_v18 = vld [vmem:[%s3735_s1 + $0x1b0] sm:$0xff]  ;;  %193 = vmatprep.subr.mxu1 %v2530_v16 }
   0x7   :  { %123 = vmatpush1.msra.mxu0 %v2472_v6  ;;  %v2547_v19 = vld [vmem:[%s3735_s1 + $0x198] sm:$0xff]  ;;  %v2553_v20 = vld [vmem:[%s3735_s1 + $0x128] sm:$0xff]  ;;  %v2559_v21 = vld [vmem:[%s3735_s1 + $0x190] sm:$0xff]  ;;  %194 = vmatpush1.msra.mxu1 %v2542_v18 }
   0x8   :  { %124 = vmatprep.subr.mxu0 %v2478_v7  ;;  %v2565_v22 = vld [vmem:[%s3735_s1 + $0x120] sm:$0xff]  ;;  %v2571_v23 = vld [vmem:[%s3735_s1 + $0x178] sm:$0xff]  ;;  %v2577_v24 = vld [vmem:[%s3735_s1 + $0x108] sm:$0xff]  ;;  %195 = vmatprep.subr.mxu1 %v2547_v19 }
   0x9   :  { %125 = vmatpush1.msra.mxu0 %v2484_v8  ;;  %v2583_v25 = vld [vmem:[%s3735_s1 + $0x170] sm:$0xff]  ;;  %v2589_v26 = vld [vmem:[%s3735_s1 + $0x100] sm:$0xff]  ;;  %196 = vmatpush1.msra.mxu1 %v2559_v21  ;;  %v2595_v27 = vld [vmem:[%s3735_s1 + $0x158] sm:$0xff] }
   0xa   :  { %126 = vmatprep.subr.mxu0 %v2495_v10  ;;  %v2601_v28 = vld [vmem:[%s3735_s1 + $0xe8] sm:$0xff]  ;;  %197 = vmatprep.subr.mxu1 %v2571_v23  ;;  %v2607_v29 = vld [vmem:[%s3735_s1 + $0x150] sm:$0xff]  ;;  %v2613_v30 = vld [vmem:[%s3735_s1 + $0xe0] sm:$0xff] }
   0xb   :  { %127 = vmatpush1.msra.mxu0 %v2507_v12  ;;  %198 = vmatpush1.msra.mxu1 %v2583_v25  ;;  %v2619_v31 = vld [vmem:[%s3735_s1 + $0x138] sm:$0xff]  ;;  %v2625_v32 = vld [vmem:[%s3735_s1 + $0xc8] sm:$0xff]  ;;  %v2631_v33 = vld [vmem:[%s3735_s1 + $0x130] sm:$0xff] }
   0xc   :  { %128 = vmatprep.subr.mxu0 %v2524_v15  ;;  %199 = vmatprep.subr.mxu1 %v2595_v27  ;;  %v25_v34 = vld [vmem:[%s3736_s2] sm:$0x3]  ;;  %v2646_v36 = vld [vmem:[%s3735_s1 + $0x118] sm:$0xff]  ;;  %v2652_v37 = vld [vmem:[%s3735_s1 + $0xa8] sm:$0xff] }
   0xd   :  { %129 = vmatpush1.msra.mxu0 %v2536_v17  ;;  %v2640_v35 = vld [vmem:[%s3735_s1 + $0xc0] sm:$0xff]  ;;  %200 = vmatpush1.msra.mxu1 %v2607_v29  ;;  %26 = vst [vmem:[#allocation2] sm:$0x3] %v25_v34  ;;  %v2658_v38 = vld [vmem:[%s3735_s1 + $0x110] sm:$0xff]  ;;  %v2670_v40 = vld [vmem:[%s3735_s1 + $0xf8] sm:$0xff] }
   0xe   :  { %130 = vmatprep.subr.mxu0 %v2553_v20  ;;  %201 = vmatprep.subr.mxu1 %v2619_v31  ;;  %v2664_v39 = vld [vmem:[%s3735_s1 + $0xa0] sm:$0xff]  ;;  %v2676_v41 = vld [vmem:[%s3735_s1 + $0x88] sm:$0xff]  ;;  %v2682_v42 = vld [vmem:[%s3735_s1 + $0xf0] sm:$0xff] }
   0xf   :  { %131 = vmatpush1.msra.mxu0 %v2565_v22  ;;  %202 = vmatpush1.msra.mxu1 %v2631_v33  ;;  %v2688_v43 = vld [vmem:[%s3735_s1 + $0x80] sm:$0xff]  ;;  %v2694_v44 = vld [vmem:[%s3735_s1 + $0xd8] sm:$0xff]  ;;  %v2700_v45 = vld [vmem:[%s3735_s1 + $0x68] sm:$0xff] }
  0x10   :  { %132 = vmatprep.subr.mxu0 %v2577_v24  ;;  %203 = vmatprep.subr.mxu1 %v2646_v36  ;;  %3819 = vst [vmem:[#allocation9_spill] sm:$0xff] %v2688_v43  ;;  %3820 = vst [vmem:[#allocation10_spill] sm:$0xff] %v2700_v45  ;;  %v2706_v46 = vld [vmem:[%s3735_s1 + $0xd0] sm:$0xff] }
  0x11   :  { %133 = vmatpush1.msra.mxu0 %v2589_v26  ;;  %204 = vmatpush1.msra.mxu1 %v2658_v38 }
  0x12   :  { %134 = vmatprep.subr.mxu0 %v2601_v28  ;;  %205 = vmatprep.subr.mxu1 %v2670_v40 }
  0x13   :  { %135 = vmatpush1.msra.mxu0 %v2613_v30 }
  0x14   :  { %136 = vmatprep.subr.mxu0 %v2625_v32 }
  0x15   :  { %137 = vmatpush1.msra.mxu0 %v2640_v35 }
  0x16   :  { %138 = vmatprep.subr.mxu0 %v2652_v37 }
  0x17   :  { %139 = vmatpush1.msra.mxu0 %v2664_v39 }
  0x18   :  { %12 = vsyncpa [#allocation6], 0  ;;  %140 = vmatprep.subr.mxu0 %v2676_v41  ;;  %v2712_v47 = vld [vmem:[%s3735_s1 + $0x60] sm:$0xff]  ;;  %206 = vmatpush1.msra.mxu1 %v2682_v42  ;;  %v2718_v48 = vld [vmem:[%s3735_s1 + $0xb8] sm:$0xff] }
  0x19   :  { %3821 = vst [vmem:[#allocation11_spill] sm:$0xff] %v2712_v47  ;;  %141 = vmatpush1.msra.mxu0 %v2688_v43  ;;  %v2724_v49 = vld [vmem:[%s3735_s1 + $0x48] sm:$0xff]  ;;  %207 = vmatprep.subr.mxu1 %v2694_v44  ;;  %v2730_v50 = vld [vmem:[%s3735_s1 + $0xb0] sm:$0xff]  ;;  %v2736_v51 = vld [vmem:[%s3735_s1 + $0x40] sm:$0xff] }
  0x1a   :  { %3822 = vst [vmem:[#allocation12_spill] sm:$0xff] %v2724_v49  ;;  %142 = vmatprep.subr.mxu0 %v2700_v45  ;;  %3823 = vst [vmem:[#allocation13_spill] sm:$0xff] %v2736_v51  ;;  %208 = vmatpush1.msra.mxu1 %v2706_v46  ;;  %v2742_v52 = vld [vmem:[%s3735_s1 + $0x98] sm:$0xff]  ;;  %v2748_v53 = vld [vmem:[%s3735_s1 + $0x28] sm:$0xff] }
  0x1b   :  { %3824 = vst [vmem:[#allocation14_spill] sm:$0xff] %v2742_v52  ;;  %143 = vmatpush1.msra.mxu0 %v2712_v47  ;;  %3825 = vst [vmem:[#allocation15_spill] sm:$0xff] %v2748_v53  ;;  %209 = vmatprep.subr.mxu1 %v2718_v48  ;;  %v2754_v54 = vld [vmem:[%s3735_s1 + $0x90] sm:$0xff]  ;;  %v2760_v55 = vld [vmem:[%s3735_s1 + $0x20] sm:$0xff] }
  0x1c   :  { %3826 = vst [vmem:[#allocation16_spill] sm:$0xff] %v2754_v54  ;;  %144 = vmatprep.subr.mxu0 %v2724_v49  ;;  %3827 = vst [vmem:[#allocation17_spill] sm:$0xff] %v2760_v55  ;;  %210 = vmatpush1.msra.mxu1 %v2730_v50  ;;  %v2766_v56 = vld [vmem:[%s3735_s1 + $0x78] sm:$0xff]  ;;  %v2772_v57 = vld [vmem:[%s3735_s1 + $0x8] sm:$0xff] }
  0x1d   :  { %3828 = vst [vmem:[#allocation18_spill] sm:$0xff] %v2766_v56  ;;  %145 = vmatpush1.msra.mxu0 %v2736_v51  ;;  %3829 = vst [vmem:[#allocation19_spill] sm:$0xff] %v2772_v57  ;;  %211 = vmatprep.subr.mxu1 %v2742_v52  ;;  %v2778_v58 = vld [vmem:[%s3735_s1 + $0x70] sm:$0xff]  ;;  %v2784_v59 = vld [vmem:[%s3735_s1] sm:$0xff] }
  0x1e   :  { %3830 = vst [vmem:[#allocation20_spill] sm:$0xff] %v2778_v58  ;;  %146 = vmatprep.subr.mxu0 %v2748_v53  ;;  %3831 = vst [vmem:[#allocation21_spill] sm:$0xff] %v2784_v59  ;;  %212 = vmatpush1.msra.mxu1 %v2754_v54  ;;  %v2790_v60 = vld [vmem:[%s3735_s1 + $0x58] sm:$0xff]  ;;  %v29_v61 = vld [vmem:[#allocation2] sm:$0x3] }
  0x1f   :  { %3832 = vst [vmem:[#allocation22_spill] sm:$0xff] %v2790_v60  ;;  %147 = vmatpush1.msra.mxu0 %v2760_v55  ;;  %213 = vmatprep.subr.mxu1 %v2766_v56  ;;  %v2797_v62 = vld [vmem:[%s3735_s1 + $0x50] sm:$0xff]  ;;  %v2804_v63 = vld [vmem:[%s3735_s1 + $0x38] sm:$0xff] }
  0x20   :  { %3833 = vst [vmem:[#allocation23_spill] sm:$0xff] %v2797_v62  ;;  %148 = vmatprep.subr.mxu0 %v2772_v57  ;;  %214 = vmatpush1.msra.mxu1 %v2778_v58  ;;  %3834 = vst [vmem:[#allocation24_spill] sm:$0xff] %v2804_v63  ;;  %v2811_v34 = vld [vmem:[%s3735_s1 + $0x30] sm:$0xff]  ;;  %v2817_v4 = vld [vmem:[%s3735_s1 + $0x18] sm:$0xff] }
  0x21   :  { %149 = vmatpush1.msra.mxu0 %v2784_v59  ;;  %215 = vmatprep.subr.mxu1 %v2790_v60  ;;  %3835 = vst [vmem:[#allocation25_spill] sm:$0xff] %v2811_v34  ;;  %3836 = vst [vmem:[#allocation26_spill] sm:$0xff] %v2817_v4  ;;  %v2823_v59 = vld [vmem:[%s3735_s1 + $0x10] sm:$0xff] }
  0x22   :  { %183 = vmatmul.mubr.f32.vlgmr.msra.gmra.mxu0 %v29_v61  ;;  %216 = vmatpush1.msra.mxu1 %v2797_v62  ;;  %3837 = vst [vmem:[#allocation27_spill] sm:$0xff] %v2823_v59 }
  0x23   :  { %217 = vmatprep.subr.mxu1 %v2804_v63  ;;  %377 = vmatprep.subr.mxu0 %v2442_v0 }
  0x24   :  { %218 = vmatpush1.msra.mxu1 %v2811_v34  ;;  %378 = vmatpush1.msra.mxu0 %v2447_v1 }
  0x25   :  { %219 = vmatprep.subr.mxu1 %v2817_v4  ;;  %379 = vmatprep.subr.mxu0 %v2452_v2 }
  0x26   :  { %220 = vmatpush1.msra.mxu1 %v2823_v59  ;;  %380 = vmatpush1.msra.mxu0 %v2458_v3 }
  0x27   :  { %254 = vmatmul.mubr.f32.vlgmr.msra.gmra.mxu1 %v29_v61  ;;  %448 = vmatprep.subr.mxu1 %v2489_v9  ;;  %v3838_v61 = vld [vmem:[#allocation21_spill] sm:$0xff] }
  0x28   :  { %449 = vmatpush1.msra.mxu1 %v2501_v11  ;;  %381 = vmatprep.subr.mxu0 %v2465_v5 }
  0x29   :  { %450 = vmatprep.subr.mxu1 %v2513_v13  ;;  %382 = vmatpush1.msra.mxu0 %v2472_v6 }
  0x2a   :  { %451 = vmatpush1.msra.mxu1 %v2518_v14  ;;  %383 = vmatprep.subr.mxu0 %v2478_v7 }
  0x2b   :  { %452 = vmatprep.subr.mxu1 %v2530_v16  ;;  %384 = vmatpush1.msra.mxu0 %v2484_v8 }
  0x2c   :  { %453 = vmatpush1.msra.mxu1 %v2542_v18  ;;  %385 = vmatprep.subr.mxu0 %v2495_v10 }
  0x2d   :  { %454 = vmatprep.subr.mxu1 %v2547_v19  ;;  %386 = vmatpush1.msra.mxu0 %v2507_v12 }
  0x2e   :  { %455 = vmatpush1.msra.mxu1 %v2559_v21  ;;  %387 = vmatprep.subr.mxu0 %v2524_v15 }
  0x2f   :  { %456 = vmatprep.subr.mxu1 %v2571_v23  ;;  %388 = vmatpush1.msra.mxu0 %v2536_v17 }
  0x30   :  { %457 = vmatpush1.msra.mxu1 %v2583_v25  ;;  %389 = vmatprep.subr.mxu0 %v2553_v20 }
  0x31   :  { %458 = vmatprep.subr.mxu1 %v2595_v27  ;;  %390 = vmatpush1.msra.mxu0 %v2565_v22 }
  0x32   :  { %459 = vmatpush1.msra.mxu1 %v2607_v29  ;;  %391 = vmatprep.subr.mxu0 %v2577_v24 }
  0x33   :  { %460 = vmatprep.subr.mxu1 %v2619_v31  ;;  %392 = vmatpush1.msra.mxu0 %v2589_v26 }
  0x34   :  { %461 = vmatpush1.msra.mxu1 %v2631_v33  ;;  %393 = vmatprep.subr.mxu0 %v2601_v28 }
  0x35   :  { %462 = vmatprep.subr.mxu1 %v2646_v36  ;;  %394 = vmatpush1.msra.mxu0 %v2613_v30 }
  0x36   :  { %463 = vmatpush1.msra.mxu1 %v2658_v38  ;;  %395 = vmatprep.subr.mxu0 %v2625_v32 }
  0x37   :  { %464 = vmatprep.subr.mxu1 %v2670_v40  ;;  %396 = vmatpush1.msra.mxu0 %v2640_v35 }
  0x38   :  { %465 = vmatpush1.msra.mxu1 %v2682_v42  ;;  %397 = vmatprep.subr.mxu0 %v2652_v37 }
  0x39   :  { %466 = vmatprep.subr.mxu1 %v2694_v44  ;;  %398 = vmatpush1.msra.mxu0 %v2664_v39 }
  0x3a   :  { %467 = vmatpush1.msra.mxu1 %v2706_v46  ;;  %399 = vmatprep.subr.mxu0 %v2676_v41 }
  0x3b   :  { %468 = vmatprep.subr.mxu1 %v2718_v48  ;;  %400 = vmatpush1.msra.mxu0 %v2688_v43 }
  0x3c   :  { %469 = vmatpush1.msra.mxu1 %v2730_v50  ;;  %401 = vmatprep.subr.mxu0 %v2700_v45 }
  0x3d   :  { %470 = vmatprep.subr.mxu1 %v2742_v52  ;;  %402 = vmatpush1.msra.mxu0 %v2712_v47 }
  0x3e   :  { %471 = vmatpush1.msra.mxu1 %v2754_v54  ;;  %403 = vmatprep.subr.mxu0 %v2724_v49  ;;  %v3839_v49 = vmov 0.0  }
  0x3f   :  { %472 = vmatprep.subr.mxu1 %v2766_v56  ;;  %404 = vmatpush1.msra.mxu0 %v2736_v51 }
  0x40   :  { %473 = vmatpush1.msra.mxu1 %v2778_v58  ;;  %405 = vmatprep.subr.mxu0 %v2748_v53 }
  0x41   :  { %474 = vmatprep.subr.mxu1 %v2790_v60  ;;  %406 = vmatpush1.msra.mxu0 %v2760_v55 }
  0x42   :  { %475 = vmatpush1.msra.mxu1 %v2797_v62  ;;  %407 = vmatprep.subr.mxu0 %v2772_v57  ;;  %v27_v57 = vld [vmem:[%s3737_s3] sm:$0x3] }
  0x43   :  { %476 = vmatprep.subr.mxu1 %v2804_v63  ;;  %408 = vmatpush1.msra.mxu0 %v3838_v61  ;;  %28 = vst [vmem:[#allocation3] sm:$0x3] %v27_v57  ;;  %v2399_v61 = vmov 1983009808  }
  0x44   :  { %477 = vmatpush1.msra.mxu1 %v2811_v34  ;;  %441 = vmatprep.mubr.f32.mxu0 %v3839_v49  ;;  %v99_v55 = vunpack.c.l.s4 %v2399_v61  ;;  %v101_v34 = vlaneseq }
  0x45   :  { %478 = vmatprep.subr.mxu1 %v2817_v4  ;;  %512 = vmatprep.mubr.f32.mxu1 %v3839_v49 }
  0x46   :  { %479 = vmatpush1.msra.mxu1 %v2823_v59  ;;  %637 = vmatprep.subr.mxu0 %v2442_v0  ;;  %v100_v63 = vunpack.c.0.s8 %v99_v55  ;;  %v2899_v53 = vshrl.u32 %v101_v34, 7  ;;  %v95_v0 = vld [vmem:[%s3734_s0] sm:$0xff] }
  0x47   :  { %708 = vmatprep.subr.mxu1 %v2489_v9  ;;  %v97_v62 = vcombine.high %v95_v0, %v95_v0 }
  0x48   :  { %3840 = vst [vmem:[#allocation28_spill] sm:$0xff] %v2899_v53  ;;  %v2902_v4 = vsub.s32 %v100_v63, %v2899_v53 }
  0x4a   :  { %v104_v9 = vrot.slane %v95_v0, %v2902_v4  ;;  %v111_v55 = vrot.slane %v97_v62, %v2902_v4 }
  0x4c   :  { %v112_v59 = vcombine.high %v104_v9, %v104_v9  ;;  %v113_v63 = vcombine.high %v111_v55, %v111_v55 }
  0xe2   :  { %v184_v49 = vpop.f32.mrf.mxu0 }
  0xe3   :  { %v185_v51 = vadd.f32 %v184_v49, %v104_v9 }
  0xe4   :  { %v186_v57 = vpop.f32.mrf.mxu0 }
  0xe5   :  { %v2195_v60 = vmul.f32 -1.442695, %v185_v51  ;;  %v187_v61 = vadd.f32 %v186_v57, %v112_v59 }
  0xe7   :  { %2244 = vpow2.f32 %v2195_v60  ;;  %v2196_v34 = vmul.f32 -1.442695, %v187_v61  ;;  %v255_v58 = vpop.f32.mrf.mxu1  ;;  %v30_v60 = vld [vmem:[#allocation3] sm:$0x3] }
  0xe8   :  { %v256_v56 = vadd.f32 %v255_v58, %v111_v55 }
  0xe9   :  { %2246 = vpow2.f32 %v2196_v34  ;;  %v257_v53 = vpop.f32.mrf.mxu1 }
  0xea   :  { %v258_v47 = vadd.f32 %v257_v53, %v113_v63  ;;  %2248 = vtanh.f32 %v256_v56 }
  0xec   :  { %v2197_v45 = vmul.f32 -1.442695, %v258_v47 }
  0xee   :  { %2250 = vpow2.f32 %v2197_v45 }
  0xf4   :  { %v2245_v54 = vpop.eup %2244 }
  0xf5   :  { %v263_v43 = vadd.f32 1.0, %v2245_v54 }
  0xf6   :  { %v2247_v52 = vpop.eup %2246 }
  0xf7   :  { %2252 = vrcp.f32 %v263_v43  ;;  %v269_v9 = vadd.f32 1.0, %v2247_v52  ;;  %v2249_v49 = vpop.eup %2248 }
  0xf9   :  { %2254 = vrcp.f32 %v269_v9 }
  0xfb   :  { %v2251_v51 = vpop.eup %2250 }
  0xfc   :  { %v276_v0 = vadd.f32 1.0, %v2251_v51 }
  0xfe   :  { %2256 = vrcp.f32 %v276_v0 }
 0x104   :  { %v2253_v59 = vpop.eup %2252 }
 0x105   :  { %v280_v61 = vmul.f32 %v2253_v59, %v2249_v49 }
 0x106   :  { %v2255_v62 = vpop.eup %2254 }
 0x107   :  { %v279_v57 = vmul.f32 %v2255_v62, %v30_v60 }
 0x109   :  { %v281_v34 = vadd.f32 %v280_v61, %v279_v57 }
 0x10b   :  { %2258 = vtanh.f32 %v281_v34  ;;  %285 = vst [vmem:[#allocation3] sm:$0x3] %v281_v34  ;;  %v2257_v47 = vpop.eup %2256 }
 0x118   :  { %v2259_v53 = vpop.eup %2258 }
 0x119   :  { %v283_v54 = vmul.f32 %v2259_v53, %v2257_v47 }
 0x11b   :  { %284 = vst [vmem:[#allocation2] sm:$0x3] %v283_v54  ;;  %286 = vst [vmem:[#allocation4] sm:$0x3] %v283_v54 }
 0x122   :  { %v287_v43 = vld [vmem:[#allocation2] sm:$0x3] }
 0x123   :  { %442 = vmatmul.mubr.f32.vlgmr.msra.gmra.mxu0 %v287_v43  ;;  %513 = vmatmul.mubr.f32.vlgmr.msra.gmra.mxu1 %v287_v43 }
 0x124   :  { %638 = vmatpush1.msra.mxu0 %v2447_v1  ;;  %709 = vmatpush1.msra.mxu1 %v2501_v11  ;;  %v3841_v1 = vld [vmem:[#allocation14_spill] sm:$0xff] }
 0x125   :  { %639 = vmatprep.subr.mxu0 %v2452_v2  ;;  %710 = vmatprep.subr.mxu1 %v2513_v13  ;;  %v3842_v2 = vld [vmem:[#allocation9_spill] sm:$0xff] }
 0x126   :  { %640 = vmatpush1.msra.mxu0 %v2458_v3  ;;  %711 = vmatpush1.msra.mxu1 %v2518_v14  ;;  %v3843_v3 = vld [vmem:[#allocation16_spill] sm:$0xff] }
 0x127   :  { %641 = vmatprep.subr.mxu0 %v2465_v5  ;;  %712 = vmatprep.subr.mxu1 %v2530_v16  ;;  %v3844_v5 = vld [vmem:[#allocation10_spill] sm:$0xff] }
 0x128   :  { %642 = vmatpush1.msra.mxu0 %v2472_v6  ;;  %713 = vmatpush1.msra.mxu1 %v2542_v18  ;;  %v3845_v6 = vld [vmem:[#allocation18_spill] sm:$0xff] }
 0x129   :  { %643 = vmatprep.subr.mxu0 %v2478_v7  ;;  %714 = vmatprep.subr.mxu1 %v2547_v19  ;;  %v3846_v7 = vld [vmem:[#allocation11_spill] sm:$0xff] }
 0x12a   :  { %644 = vmatpush1.msra.mxu0 %v2484_v8  ;;  %715 = vmatpush1.msra.mxu1 %v2559_v21  ;;  %v3847_v8 = vld [vmem:[#allocation20_spill] sm:$0xff] }
 0x12b   :  { %645 = vmatprep.subr.mxu0 %v2495_v10  ;;  %716 = vmatprep.subr.mxu1 %v2571_v23  ;;  %v3848_v10 = vld [vmem:[#allocation12_spill] sm:$0xff] }
 0x12c   :  { %646 = vmatpush1.msra.mxu0 %v2507_v12  ;;  %717 = vmatpush1.msra.mxu1 %v2583_v25  ;;  %v3849_v12 = vld [vmem:[#allocation22_spill] sm:$0xff] }
 0x12d   :  { %647 = vmatprep.subr.mxu0 %v2524_v15  ;;  %718 = vmatprep.subr.mxu1 %v2595_v27  ;;  %v3850_v15 = vld [vmem:[#allocation13_spill] sm:$0xff] }
 0x12e   :  { %648 = vmatpush1.msra.mxu0 %v2536_v17  ;;  %719 = vmatpush1.msra.mxu1 %v2607_v29  ;;  %v3851_v17 = vld [vmem:[#allocation23_spill] sm:$0xff] }
 0x12f   :  { %649 = vmatprep.subr.mxu0 %v2553_v20  ;;  %720 = vmatprep.subr.mxu1 %v2619_v31  ;;  %v3852_v20 = vld [vmem:[#allocation15_spill] sm:$0xff] }
 0x130   :  { %650 = vmatpush1.msra.mxu0 %v2565_v22  ;;  %721 = vmatpush1.msra.mxu1 %v2631_v33  ;;  %v3853_v22 = vld [vmem:[#allocation24_spill] sm:$0xff] }
 0x131   :  { %651 = vmatprep.subr.mxu0 %v2577_v24  ;;  %722 = vmatprep.subr.mxu1 %v2646_v36  ;;  %v3854_v24 = vld [vmem:[#allocation17_spill] sm:$0xff] }
 0x132   :  { %652 = vmatpush1.msra.mxu0 %v2589_v26  ;;  %723 = vmatpush1.msra.mxu1 %v2658_v38  ;;  %v3855_v26 = vld [vmem:[#allocation25_spill] sm:$0xff] }
 0x133   :  { %653 = vmatprep.subr.mxu0 %v2601_v28  ;;  %724 = vmatprep.subr.mxu1 %v2670_v40  ;;  %v3856_v28 = vld [vmem:[#allocation19_spill] sm:$0xff] }
 0x134   :  { %654 = vmatpush1.msra.mxu0 %v2613_v30  ;;  %725 = vmatpush1.msra.mxu1 %v2682_v42  ;;  %v3857_v30 = vld [vmem:[#allocation26_spill] sm:$0xff] }
 0x135   :  { %655 = vmatprep.subr.mxu0 %v2625_v32  ;;  %726 = vmatprep.subr.mxu1 %v2694_v44  ;;  %v3858_v32 = vld [vmem:[#allocation21_spill] sm:$0xff] }
 0x136   :  { %656 = vmatpush1.msra.mxu0 %v2640_v35  ;;  %727 = vmatpush1.msra.mxu1 %v2706_v46  ;;  %v3859_v35 = vmov 0.0  }
 0x137   :  { %657 = vmatprep.subr.mxu0 %v2652_v37  ;;  %728 = vmatprep.subr.mxu1 %v2718_v48  ;;  %v3860_v37 = vld [vmem:[#allocation27_spill] sm:$0xff] }
 0x138   :  { %658 = vmatpush1.msra.mxu0 %v2664_v39  ;;  %729 = vmatpush1.msra.mxu1 %v2730_v50  ;;  %v3861_v39 = vld [vmem:[#allocation8_spill] sm:$0xff] }
 0x139   :  { %659 = vmatprep.subr.mxu0 %v2676_v41  ;;  %730 = vmatprep.subr.mxu1 %v3841_v1  ;;  %v2198_v41 = vld [vmem:[%s3734_s0 + $0x8] sm:$0xff] }
 0x13a   :  { %660 = vmatpush1.msra.mxu0 %v3842_v2  ;;  %731 = vmatpush1.msra.mxu1 %v3843_v3  ;;  %v363_v45 = vrot.slane %v2198_v41, %v2902_v4  ;;  %v356_v58 = vcombine.high %v2198_v41, %v2198_v41 }
 0x13b   :  { %661 = vmatprep.subr.mxu0 %v3844_v5  ;;  %732 = vmatprep.subr.mxu1 %v3845_v6 }
 0x13c   :  { %662 = vmatpush1.msra.mxu0 %v3846_v7  ;;  %733 = vmatpush1.msra.mxu1 %v3847_v8  ;;  %v371_v52 = vcombine.high %v363_v45, %v363_v45  ;;  %v370_v51 = vrot.slane %v356_v58, %v2902_v4  ;;  %v3204_v58 = vld [vmem:[%s3735_s1] sm:$0xff] }
 0x13d   :  { %663 = vmatprep.subr.mxu0 %v3848_v10  ;;  %734 = vmatprep.subr.mxu1 %v3849_v12  ;;  %3872 = vst [vmem:[#allocation23_spill] sm:$0xff] %v3204_v58 }
 0x13e   :  { %664 = vmatpush1.msra.mxu0 %v3850_v15  ;;  %735 = vmatpush1.msra.mxu1 %v3851_v17  ;;  %v372_v62 = vcombine.high %v370_v51, %v370_v51  ;;  %v288_v15 = vld [vmem:[#allocation3] sm:$0x3] }
 0x13f   :  { %665 = vmatprep.subr.mxu0 %v3852_v20  ;;  %736 = vmatprep.subr.mxu1 %v3853_v22 }
 0x140   :  { %666 = vmatpush1.msra.mxu0 %v3854_v24  ;;  %737 = vmatpush1.msra.mxu1 %v3855_v26 }
 0x141   :  { %667 = vmatprep.subr.mxu0 %v3856_v28  ;;  %738 = vmatprep.subr.mxu1 %v3857_v30 }
 0x142   :  { %668 = vmatpush1.msra.mxu0 %v3858_v32  ;;  %701 = vmatprep.mubr.f32.mxu0 %v3859_v35 }
 0x143   :  { %739 = vmatpush1.msra.mxu1 %v3860_v37  ;;  %772 = vmatprep.mubr.f32.mxu1 %v3859_v35 }
 0x144   :  { %968 = vmatprep.subr.mxu1 %v3861_v39 }
 0x1e3   :  { %v443_v56 = vpop.f32.mrf.mxu0  ;;  %v514_v59 = vpop.f32.mrf.mxu1 }
 0x1e4   :  { %v444_v55 = vadd.f32 %v443_v56, %v363_v45  ;;  %v515_v47 = vadd.f32 %v514_v59, %v370_v51  ;;  %v3198_v56 = vld [vmem:[%s3735_s1 + $0x8] sm:$0xff] }
 0x1e5   :  { %v445_v63 = vpop.f32.mrf.mxu0  ;;  %v516_v0 = vpop.f32.mrf.mxu1  ;;  %3871 = vst [vmem:[#allocation13_spill] sm:$0xff] %v3198_v56 }
 0x1e6   :  { %v2199_v9 = vmul.f32 -1.442695, %v444_v55  ;;  %v446_v49 = vadd.f32 %v445_v63, %v371_v52  ;;  %v517_v57 = vadd.f32 %v516_v0, %v372_v62  ;;  %v3191_v52 = vld [vmem:[%s3735_s1 + $0x20] sm:$0xff]  ;;  %v2202_v55 = vld [vmem:[%s3734_s0 + $0x10] sm:$0xff] }
 0x1e7   :  { %3870 = vst [vmem:[#allocation22_spill] sm:$0xff] %v3191_v52  ;;  %v623_v63 = vrot.slane %v2202_v55, %v2902_v4  ;;  %v616_v51 = vcombine.high %v2202_v55, %v2202_v55 }
 0x1e8   :  { %2260 = vpow2.f32 %v2199_v9  ;;  %v2200_v60 = vmul.f32 -1.442695, %v446_v49  ;;  %v2201_v61 = vmul.f32 -1.442695, %v517_v57 }
 0x1e9   :  { %v631_v9 = vcombine.high %v623_v63, %v623_v63  ;;  %v630_v57 = vrot.slane %v616_v51, %v2902_v4 }
 0x1ea   :  { %2262 = vpow2.f32 %v2200_v60 }
 0x1eb   :  { %2264 = vpow2.f32 %v2201_v61 }
 0x1f5   :  { %v2261_v34 = vpop.eup %2260 }
 0x1f6   :  { %v522_v53 = vadd.f32 1.0, %v2261_v34 }
 0x1f7   :  { %v2263_v54 = vpop.eup %2262 }
 0x1f8   :  { %2266 = vrcp.f32 %v522_v53  ;;  %v528_v43 = vadd.f32 1.0, %v2263_v54  ;;  %v2265_v2 = vpop.eup %2264 }
 0x1f9   :  { %2268 = vtanh.f32 %v515_v47  ;;  %v535_v20 = vadd.f32 1.0, %v2265_v2  ;;  %v632_v47 = vcombine.high %v630_v57, %v630_v57 }
 0x1fa   :  { %2270 = vrcp.f32 %v528_v43 }
 0x1fb   :  { %2272 = vrcp.f32 %v535_v20 }
 0x205   :  { %v2267_v5 = vpop.eup %2266 }
 0x206   :  { %v2269_v7 = vpop.eup %2268 }
 0x207   :  { %v2271_v10 = vpop.eup %2270  ;;  %v539_v24 = vmul.f32 %v2269_v7, %v2267_v5 }
 0x208   :  { %v538_v28 = vmul.f32 %v2271_v10, %v288_v15  ;;  %v2273_v37 = vpop.eup %2272 }
 0x20a   :  { %v540_v32 = vadd.f32 %v539_v24, %v538_v28 }
 0x20c   :  { %2274 = vtanh.f32 %v540_v32  ;;  %544 = vst [vmem:[#allocation3] sm:$0x3] %v540_v32 }
 0x219   :  { %v2275_v39 = vpop.eup %2274 }
 0x21a   :  { %v542_v41 = vmul.f32 %v2275_v39, %v2273_v37  ;;  %v548_v37 = vld [vmem:[#allocation3] sm:$0x3] }
 0x21c   :  { %543 = vst [vmem:[#allocation2] sm:$0x3] %v542_v41  ;;  %546 = vst [vmem:[#allocation4 + $0x2] sm:$0x3] %v542_v41 }
 0x223   :  { %v547_v45 = vld [vmem:[#allocation2] sm:$0x3] }
 0x224   :  { %702 = vmatmul.mubr.f32.vlgmr.msra.gmra.mxu0 %v547_v45  ;;  %773 = vmatmul.mubr.f32.vlgmr.msra.gmra.mxu1 %v547_v45 }
 0x225   :  { %969 = vmatpush1.msra.mxu1 %v2501_v11  ;;  %961 = vmatprep.mubr.f32.mxu0 %v3859_v35  ;;  %v3014_v11 = vld [vmem:[%s3735_s1 + $0x1e8] sm:$0xff] }
 0x226   :  { %970 = vmatprep.subr.mxu1 %v2513_v13  ;;  %1032 = vmatprep.mubr.f32.mxu1 %v3859_v35  ;;  %3862 = vst [vmem:[#allocation14_spill] sm:$0xff] %v3014_v11  ;;  %v3020_v13 = vld [vmem:[%s3735_s1 + $0x1e0] sm:$0xff] }
 0x227   :  { %971 = vmatpush1.msra.mxu1 %v2518_v14  ;;  %897 = vmatprep.subr.mxu0 %v3014_v11  ;;  %v3026_v14 = vld [vmem:[%s3735_s1 + $0x1c8] sm:$0xff] }
 0x228   :  { %972 = vmatprep.subr.mxu1 %v2530_v16  ;;  %898 = vmatpush1.msra.mxu0 %v3020_v13  ;;  %v3032_v16 = vld [vmem:[%s3735_s1 + $0x1c0] sm:$0xff] }
 0x229   :  { %973 = vmatpush1.msra.mxu1 %v2542_v18  ;;  %899 = vmatprep.subr.mxu0 %v3026_v14  ;;  %v3038_v18 = vld [vmem:[%s3735_s1 + $0x1a8] sm:$0xff] }
 0x22a   :  { %974 = vmatprep.subr.mxu1 %v2547_v19  ;;  %900 = vmatpush1.msra.mxu0 %v3032_v16  ;;  %v3044_v19 = vld [vmem:[%s3735_s1 + $0x1a0] sm:$0xff] }
 0x22b   :  { %975 = vmatpush1.msra.mxu1 %v2559_v21  ;;  %901 = vmatprep.subr.mxu0 %v3038_v18  ;;  %v3050_v21 = vld [vmem:[%s3735_s1 + $0x188] sm:$0xff] }
 0x22c   :  { %976 = vmatprep.subr.mxu1 %v2571_v23  ;;  %902 = vmatpush1.msra.mxu0 %v3044_v19  ;;  %v3056_v23 = vld [vmem:[%s3735_s1 + $0x180] sm:$0xff] }
 0x22d   :  { %977 = vmatpush1.msra.mxu1 %v2583_v25  ;;  %903 = vmatprep.subr.mxu0 %v3050_v21  ;;  %v3062_v25 = vld [vmem:[%s3735_s1 + $0x168] sm:$0xff] }
 0x22e   :  { %978 = vmatprep.subr.mxu1 %v2595_v27  ;;  %904 = vmatpush1.msra.mxu0 %v3056_v23  ;;  %v3068_v27 = vld [vmem:[%s3735_s1 + $0x160] sm:$0xff] }
 0x22f   :  { %979 = vmatpush1.msra.mxu1 %v2607_v29  ;;  %905 = vmatprep.subr.mxu0 %v3062_v25  ;;  %v3074_v29 = vld [vmem:[%s3735_s1 + $0x148] sm:$0xff] }
 0x230   :  { %980 = vmatprep.subr.mxu1 %v2619_v31  ;;  %906 = vmatpush1.msra.mxu0 %v3068_v27  ;;  %v3080_v31 = vld [vmem:[%s3735_s1 + $0x140] sm:$0xff] }
 0x231   :  { %981 = vmatpush1.msra.mxu1 %v2631_v33  ;;  %907 = vmatprep.subr.mxu0 %v3074_v29  ;;  %v3086_v33 = vld [vmem:[%s3735_s1 + $0x128] sm:$0xff] }
 0x232   :  { %982 = vmatprep.subr.mxu1 %v2646_v36  ;;  %908 = vmatpush1.msra.mxu0 %v3080_v31  ;;  %v3092_v36 = vld [vmem:[%s3735_s1 + $0x120] sm:$0xff] }
 0x233   :  { %983 = vmatpush1.msra.mxu1 %v2658_v38  ;;  %909 = vmatprep.subr.mxu0 %v3086_v33  ;;  %v3098_v38 = vld [vmem:[%s3735_s1 + $0x108] sm:$0xff] }
 0x234   :  { %984 = vmatprep.subr.mxu1 %v2670_v40  ;;  %910 = vmatpush1.msra.mxu0 %v3092_v36  ;;  %v3104_v40 = vld [vmem:[%s3735_s1 + $0x100] sm:$0xff] }
 0x235   :  { %985 = vmatpush1.msra.mxu1 %v2682_v42  ;;  %911 = vmatprep.subr.mxu0 %v3098_v38  ;;  %v3110_v42 = vld [vmem:[%s3735_s1 + $0xe8] sm:$0xff] }
 0x236   :  { %986 = vmatprep.subr.mxu1 %v2694_v44  ;;  %912 = vmatpush1.msra.mxu0 %v3104_v40  ;;  %v3116_v44 = vld [vmem:[%s3735_s1 + $0xe0] sm:$0xff] }
 0x237   :  { %987 = vmatpush1.msra.mxu1 %v2706_v46  ;;  %913 = vmatprep.subr.mxu0 %v3110_v42  ;;  %v3122_v46 = vld [vmem:[%s3735_s1 + $0xc8] sm:$0xff] }
 0x238   :  { %988 = vmatprep.subr.mxu1 %v2718_v48  ;;  %914 = vmatpush1.msra.mxu0 %v3116_v44  ;;  %v3128_v48 = vld [vmem:[%s3735_s1 + $0xc0] sm:$0xff] }
 0x239   :  { %989 = vmatpush1.msra.mxu1 %v2730_v50  ;;  %915 = vmatprep.subr.mxu0 %v3122_v46  ;;  %v3134_v50 = vld [vmem:[%s3735_s1 + $0xa8] sm:$0xff] }
 0x23a   :  { %990 = vmatprep.subr.mxu1 %v3841_v1  ;;  %916 = vmatpush1.msra.mxu0 %v3128_v48  ;;  %v3140_v1 = vld [vmem:[%s3735_s1 + $0xa0] sm:$0xff] }
 0x23b   :  { %991 = vmatpush1.msra.mxu1 %v3843_v3  ;;  %917 = vmatprep.subr.mxu0 %v3134_v50  ;;  %v3146_v3 = vld [vmem:[%s3735_s1 + $0x88] sm:$0xff] }
 0x23c   :  { %992 = vmatprep.subr.mxu1 %v3845_v6  ;;  %918 = vmatpush1.msra.mxu0 %v3140_v1  ;;  %v3152_v6 = vld [vmem:[%s3735_s1 + $0x80] sm:$0xff] }
 0x23d   :  { %993 = vmatpush1.msra.mxu1 %v3847_v8  ;;  %919 = vmatprep.subr.mxu0 %v3146_v3  ;;  %3863 = vst [vmem:[#allocation9_spill] sm:$0xff] %v3152_v6  ;;  %v3158_v8 = vld [vmem:[%s3735_s1 + $0x68] sm:$0xff] }
 0x23e   :  { %994 = vmatprep.subr.mxu1 %v3849_v12  ;;  %920 = vmatpush1.msra.mxu0 %v3152_v6  ;;  %3864 = vst [vmem:[#allocation16_spill] sm:$0xff] %v3158_v8  ;;  %v3163_v12 = vld [vmem:[%s3735_s1 + $0x60] sm:$0xff] }
 0x23f   :  { %995 = vmatpush1.msra.mxu1 %v3851_v17  ;;  %3865 = vst [vmem:[#allocation10_spill] sm:$0xff] %v3163_v12  ;;  %v3168_v17 = vld [vmem:[%s3735_s1 + $0x48] sm:$0xff]  ;;  %921 = vmatprep.subr.mxu0 %v3158_v8 }
 0x240   :  { %996 = vmatprep.subr.mxu1 %v3853_v22  ;;  %3866 = vst [vmem:[#allocation18_spill] sm:$0xff] %v3168_v17  ;;  %v3174_v22 = vld [vmem:[%s3735_s1 + $0x40] sm:$0xff]  ;;  %922 = vmatpush1.msra.mxu0 %v3163_v12 }
 0x241   :  { %997 = vmatpush1.msra.mxu1 %v3855_v26  ;;  %3867 = vst [vmem:[#allocation11_spill] sm:$0xff] %v3174_v22  ;;  %v3180_v26 = vld [vmem:[%s3735_s1 + $0x28] sm:$0xff]  ;;  %923 = vmatprep.subr.mxu0 %v3168_v17 }
 0x242   :  { %998 = vmatprep.subr.mxu1 %v3857_v30  ;;  %3868 = vst [vmem:[#allocation20_spill] sm:$0xff] %v3180_v26  ;;  %v3185_v30 = vld [vmem:[%s3735_s1 + $0x10] sm:$0xff]  ;;  %924 = vmatpush1.msra.mxu0 %v3174_v22 }
 0x243   :  { %3869 = vst [vmem:[#allocation12_spill] sm:$0xff] %v3185_v30  ;;  %999 = vmatpush1.msra.mxu1 %v3185_v30  ;;  %925 = vmatprep.subr.mxu0 %v3180_v26 }
 0x244   :  { %926 = vmatpush1.msra.mxu0 %v3191_v52 }
 0x245   :  { %927 = vmatprep.subr.mxu0 %v3198_v56 }
 0x246   :  { %928 = vmatpush1.msra.mxu0 %v3204_v58 }
 0x247   :  { %1157 = vmatprep.subr.mxu0 %v3014_v11 }
 0x2e4   :  { %v703_v49 = vpop.f32.mrf.mxu0  ;;  %v774_v61 = vpop.f32.mrf.mxu1 }
 0x2e5   :  { %v704_v59 = vadd.f32 %v703_v49, %v623_v63  ;;  %v775_v5 = vadd.f32 %v774_v61, %v630_v57  ;;  %v3276_v57 = vld [vmem:[%s3735_s1 + $0x1b8] sm:$0xff]  ;;  %v3282_v61 = vld [vmem:[%s3735_s1 + $0x1b0] sm:$0xff] }
 0x2e6   :  { %v705_v60 = vpop.f32.mrf.mxu0  ;;  %v776_v53 = vpop.f32.mrf.mxu1 }
 0x2e7   :  { %v2203_v62 = vmul.f32 -1.442695, %v704_v59  ;;  %v706_v0 = vadd.f32 %v705_v60, %v631_v9  ;;  %v777_v54 = vadd.f32 %v776_v53, %v632_v47  ;;  %v3252_v59 = vld [vmem:[%s3735_s1 + $0x1f8] sm:$0xff]  ;;  %v3258_v60 = vld [vmem:[%s3735_s1 + $0x1f0] sm:$0xff] }
 0x2e8   :  { %3873 = vst [vmem:[#allocation15_spill] sm:$0xff] %v3252_v59  ;;  %1228 = vmatprep.subr.mxu1 %v3252_v59  ;;  %v3294_v47 = vld [vmem:[%s3735_s1 + $0x190] sm:$0xff]  ;;  %v3300_v53 = vld [vmem:[%s3735_s1 + $0x178] sm:$0xff] }
 0x2e9   :  { %2276 = vpow2.f32 %v2203_v62  ;;  %v2204_v34 = vmul.f32 -1.442695, %v706_v0  ;;  %v2205_v43 = vmul.f32 -1.442695, %v777_v54  ;;  %v3264_v62 = vld [vmem:[%s3735_s1 + $0x1d8] sm:$0xff]  ;;  %v3270_v0 = vld [vmem:[%s3735_s1 + $0x1d0] sm:$0xff] }
 0x2ea   :  { %v3306_v54 = vld [vmem:[%s3735_s1 + $0x170] sm:$0xff] }
 0x2eb   :  { %2278 = vpow2.f32 %v2204_v34  ;;  %v3288_v34 = vld [vmem:[%s3735_s1 + $0x198] sm:$0xff] }
 0x2ec   :  { %2280 = vpow2.f32 %v2205_v43  ;;  %v3312_v43 = vld [vmem:[%s3735_s1 + $0x158] sm:$0xff] }
 0x2f6   :  { %v2277_v2 = vpop.eup %2276 }
 0x2f7   :  { %v782_v7 = vadd.f32 1.0, %v2277_v2  ;;  %v3318_v2 = vld [vmem:[%s3735_s1 + $0x150] sm:$0xff] }
 0x2f8   :  { %v2279_v10 = vpop.eup %2278 }
 0x2f9   :  { %2282 = vrcp.f32 %v782_v7  ;;  %v788_v15 = vadd.f32 1.0, %v2279_v10  ;;  %v2281_v20 = vpop.eup %2280  ;;  %v3330_v7 = vld [vmem:[%s3735_s1 + $0x130] sm:$0xff]  ;;  %v3336_v10 = vld [vmem:[%s3735_s1 + $0x118] sm:$0xff] }
 0x2fa   :  { %2284 = vtanh.f32 %v775_v5  ;;  %v795_v39 = vadd.f32 1.0, %v2281_v20  ;;  %v3324_v5 = vld [vmem:[%s3735_s1 + $0x138] sm:$0xff] }
 0x2fb   :  { %2286 = vrcp.f32 %v788_v15  ;;  %v3342_v15 = vld [vmem:[%s3735_s1 + $0x110] sm:$0xff]  ;;  %v3348_v20 = vld [vmem:[%s3735_s1 + $0xf8] sm:$0xff] }
 0x2fc   :  { %2288 = vrcp.f32 %v795_v39  ;;  %v3378_v39 = vld [vmem:[%s3735_s1 + $0xb0] sm:$0xff] }
 0x306   :  { %v2283_v24 = vpop.eup %2282 }
 0x307   :  { %v2285_v28 = vpop.eup %2284 }
 0x308   :  { %v2287_v32 = vpop.eup %2286  ;;  %v799_v41 = vmul.f32 %v2285_v28, %v2283_v24  ;;  %v3354_v24 = vld [vmem:[%s3735_s1 + $0xf0] sm:$0xff]  ;;  %v3360_v28 = vld [vmem:[%s3735_s1 + $0xd8] sm:$0xff] }
 0x309   :  { %v798_v45 = vmul.f32 %v2287_v32, %v548_v37  ;;  %v2289_v63 = vpop.eup %2288  ;;  %v3366_v32 = vld [vmem:[%s3735_s1 + $0xd0] sm:$0xff]  ;;  %v3372_v37 = vld [vmem:[%s3735_s1 + $0xb8] sm:$0xff] }
 0x30b   :  { %v800_v55 = vadd.f32 %v799_v41, %v798_v45  ;;  %v3384_v41 = vld [vmem:[%s3735_s1 + $0x98] sm:$0xff]  ;;  %v3390_v45 = vld [vmem:[%s3735_s1 + $0x90] sm:$0xff] }
 0x30c   :  { %3874 = vst [vmem:[#allocation24_spill] sm:$0xff] %v3384_v41  ;;  %3875 = vst [vmem:[#allocation17_spill] sm:$0xff] %v3390_v45 }
 0x30d   :  { %2290 = vtanh.f32 %v800_v55  ;;  %804 = vst [vmem:[#allocation3] sm:$0x3] %v800_v55  ;;  %v3396_v55 = vld [vmem:[%s3735_s1 + $0x78] sm:$0xff] }
 0x30e   :  { %3876 = vst [vmem:[#allocation25_spill] sm:$0xff] %v3396_v55 }
 0x31a   :  { %v2291_v9 = vpop.eup %2290 }
 0x31b   :  { %v802_v49 = vmul.f32 %v2291_v9, %v2289_v63  ;;  %v3401_v63 = vld [vmem:[%s3735_s1 + $0x70] sm:$0xff]  ;;  %v3406_v9 = vld [vmem:[%s3735_s1 + $0x58] sm:$0xff] }
 0x31c   :  { %3877 = vst [vmem:[#allocation19_spill] sm:$0xff] %v3401_v63  ;;  %3878 = vst [vmem:[#allocation26_spill] sm:$0xff] %v3406_v9 }
 0x31d   :  { %803 = vst [vmem:[#allocation2] sm:$0x3] %v802_v49  ;;  %806 = vst [vmem:[#allocation4 + $0x4] sm:$0x3] %v802_v49  ;;  %v3412_v49 = vld [vmem:[%s3735_s1 + $0x50] sm:$0xff] }
 0x31e   :  { %3879 = vst [vmem:[#allocation21_spill] sm:$0xff] %v3412_v49 }
 0x324   :  { %v807_v51 = vld [vmem:[#allocation2] sm:$0x3] }
 0x325   :  { %962 = vmatmul.mubr.f32.vlgmr.msra.gmra.mxu0 %v807_v51  ;;  %1033 = vmatmul.mubr.f32.vlgmr.msra.gmra.mxu1 %v807_v51  ;;  %v3418_v51 = vld [vmem:[%s3735_s1 + $0x38] sm:$0xff] }
 0x326   :  { %1158 = vmatpush1.msra.mxu0 %v3020_v13  ;;  %1221 = vmatprep.mubr.f32.mxu0 %v3859_v35  ;;  %3880 = vst [vmem:[#allocation27_spill] sm:$0xff] %v3418_v51 }
 0x327   :  { %1159 = vmatprep.subr.mxu0 %v3026_v14  ;;  %1292 = vmatprep.mubr.f32.mxu1 %v3859_v35  ;;  %v3430_v35 = vld [vmem:[%s3735_s1 + $0x18] sm:$0xff] }
 0x328   :  { %1160 = vmatpush1.msra.mxu0 %v3032_v16  ;;  %1229 = vmatpush1.msra.mxu1 %v3258_v60  ;;  %3882 = vst [vmem:[#allocation29_spill] sm:$0xff] %v3430_v35 }
 0x329   :  { %1161 = vmatprep.subr.mxu0 %v3038_v18  ;;  %1230 = vmatprep.subr.mxu1 %v3264_v62 }
 0x32a   :  { %1162 = vmatpush1.msra.mxu0 %v3044_v19  ;;  %1231 = vmatpush1.msra.mxu1 %v3270_v0 }
 0x32b   :  { %1163 = vmatprep.subr.mxu0 %v3050_v21  ;;  %1232 = vmatprep.subr.mxu1 %v3276_v57 }
 0x32c   :  { %1164 = vmatpush1.msra.mxu0 %v3056_v23  ;;  %1233 = vmatpush1.msra.mxu1 %v3282_v61 }
 0x32d   :  { %1165 = vmatprep.subr.mxu0 %v3062_v25  ;;  %1234 = vmatprep.subr.mxu1 %v3288_v34 }
 0x32e   :  { %1166 = vmatpush1.msra.mxu0 %v3068_v27  ;;  %1235 = vmatpush1.msra.mxu1 %v3294_v47 }
 0x32f   :  { %1167 = vmatprep.subr.mxu0 %v3074_v29  ;;  %1236 = vmatprep.subr.mxu1 %v3300_v53 }
 0x330   :  { %1168 = vmatpush1.msra.mxu0 %v3080_v31  ;;  %1237 = vmatpush1.msra.mxu1 %v3306_v54 }
 0x331   :  { %1169 = vmatprep.subr.mxu0 %v3086_v33  ;;  %1238 = vmatprep.subr.mxu1 %v3312_v43 }
 0x332   :  { %1170 = vmatpush1.msra.mxu0 %v3092_v36  ;;  %1239 = vmatpush1.msra.mxu1 %v3318_v2 }
 0x333   :  { %1171 = vmatprep.subr.mxu0 %v3098_v38  ;;  %1240 = vmatprep.subr.mxu1 %v3324_v5 }
 0x334   :  { %1172 = vmatpush1.msra.mxu0 %v3104_v40  ;;  %1241 = vmatpush1.msra.mxu1 %v3330_v7 }
 0x335   :  { %1173 = vmatprep.subr.mxu0 %v3110_v42  ;;  %1242 = vmatprep.subr.mxu1 %v3336_v10 }
 0x336   :  { %1174 = vmatpush1.msra.mxu0 %v3116_v44  ;;  %1243 = vmatpush1.msra.mxu1 %v3342_v15 }
 0x337   :  { %1175 = vmatprep.subr.mxu0 %v3122_v46  ;;  %1244 = vmatprep.subr.mxu1 %v3348_v20 }
 0x338   :  { %1176 = vmatpush1.msra.mxu0 %v3128_v48  ;;  %1245 = vmatpush1.msra.mxu1 %v3354_v24 }
 0x339   :  { %1177 = vmatprep.subr.mxu0 %v3134_v50  ;;  %1246 = vmatprep.subr.mxu1 %v3360_v28 }
 0x33a   :  { %1178 = vmatpush1.msra.mxu0 %v3140_v1  ;;  %1247 = vmatpush1.msra.mxu1 %v3366_v32 }
 0x33b   :  { %1179 = vmatprep.subr.mxu0 %v3146_v3  ;;  %1248 = vmatprep.subr.mxu1 %v3372_v37 }
 0x33c   :  { %1180 = vmatpush1.msra.mxu0 %v3152_v6  ;;  %1249 = vmatpush1.msra.mxu1 %v3378_v39 }
 0x33d   :  { %1181 = vmatprep.subr.mxu0 %v3158_v8  ;;  %1250 = vmatprep.subr.mxu1 %v3384_v41 }
 0x33e   :  { %1182 = vmatpush1.msra.mxu0 %v3163_v12  ;;  %1251 = vmatpush1.msra.mxu1 %v3390_v45 }
 0x33f   :  { %1183 = vmatprep.subr.mxu0 %v3168_v17  ;;  %1252 = vmatprep.subr.mxu1 %v3396_v55 }
 0x340   :  { %1184 = vmatpush1.msra.mxu0 %v3174_v22  ;;  %1253 = vmatpush1.msra.mxu1 %v3401_v63 }
 0x341   :  { %1185 = vmatprep.subr.mxu0 %v3180_v26  ;;  %1254 = vmatprep.subr.mxu1 %v3406_v9 }
 0x342   :  { %1186 = vmatpush1.msra.mxu0 %v3191_v52  ;;  %1255 = vmatpush1.msra.mxu1 %v3412_v49 }
 0x343   :  { %1187 = vmatprep.subr.mxu0 %v3198_v56  ;;  %1256 = vmatprep.subr.mxu1 %v3418_v51 }
 0x344   :  { %1188 = vmatpush1.msra.mxu0 %v3204_v58  ;;  %v2206_v58 = vld [vmem:[%s3734_s0 + $0x18] sm:$0xff] }
 0x345   :  { %1417 = vmatprep.subr.mxu0 %v3014_v11  ;;  %v3424_v11 = vld [vmem:[%s3735_s1 + $0x30] sm:$0xff]  ;;  %v883_v56 = vrot.slane %v2206_v58, %v2902_v4  ;;  %v876_v49 = vcombine.high %v2206_v58, %v2206_v58 }
 0x346   :  { %3881 = vst [vmem:[#allocation8_spill] sm:$0xff] %v3424_v11  ;;  %1257 = vmatpush1.msra.mxu1 %v3424_v11 }
 0x347   :  { %1258 = vmatprep.subr.mxu1 %v3430_v35  ;;  %v891_v52 = vcombine.high %v883_v56, %v883_v56  ;;  %v890_v11 = vrot.slane %v876_v49, %v2902_v4 }
 0x348   :  { %1259 = vmatpush1.msra.mxu1 %v3185_v30 }
 0x349   :  { %1488 = vmatprep.subr.mxu1 %v3252_v59  ;;  %v892_v59 = vcombine.high %v890_v11, %v890_v11 }
 0x3e5   :  { %v963_v26 = vpop.f32.mrf.mxu0  ;;  %v1034_v35 = vpop.f32.mrf.mxu1 }
 0x3e6   :  { %v964_v22 = vadd.f32 %v963_v26, %v883_v56  ;;  %v1035_v45 = vadd.f32 %v1034_v35, %v890_v11 }
 0x3e7   :  { %v965_v9 = vpop.f32.mrf.mxu0  ;;  %v1036_v63 = vpop.f32.mrf.mxu1 }
 0x3e8   :  { %v2207_v51 = vmul.f32 -1.442695, %v964_v22  ;;  %v966_v17 = vadd.f32 %v965_v9, %v891_v52  ;;  %v1037_v12 = vadd.f32 %v1036_v63, %v892_v59  ;;  %v808_v9 = vld [vmem:[#allocation3] sm:$0x3]  ;;  %v3884_v59 = vld [vmem:[#allocation9_spill] sm:$0xff]  ;;  %v3888_v63 = vld [vmem:[#allocation10_spill] sm:$0xff] }
 0x3ea   :  { %2292 = vpow2.f32 %v2207_v51  ;;  %v2208_v30 = vmul.f32 -1.442695, %v966_v17  ;;  %v2209_v55 = vmul.f32 -1.442695, %v1037_v12  ;;  %v3883_v12 = vld [vmem:[#allocation24_spill] sm:$0xff] }
 0x3ec   :  { %2294 = vpow2.f32 %v2208_v30 }
 0x3ed   :  { %2296 = vpow2.f32 %v2209_v55  ;;  %v3887_v55 = vld [vmem:[#allocation25_spill] sm:$0xff] }
 0x3f7   :  { %v2293_v8 = vpop.eup %2292 }
 0x3f8   :  { %v1042_v6 = vadd.f32 1.0, %v2293_v8 }
 0x3f9   :  { %v2295_v41 = vpop.eup %2294 }
 0x3fa   :  { %2298 = vrcp.f32 %v1042_v6  ;;  %v1048_v26 = vadd.f32 1.0, %v2295_v41  ;;  %v2297_v22 = vpop.eup %2296  ;;  %v3885_v41 = vld [vmem:[#allocation17_spill] sm:$0xff] }
 0x3fb   :  { %2300 = vtanh.f32 %v1035_v45  ;;  %v1055_v17 = vadd.f32 1.0, %v2297_v22  ;;  %v3886_v45 = vld [vmem:[#allocation16_spill] sm:$0xff]  ;;  %v3890_v22 = vld [vmem:[#allocation18_spill] sm:$0xff] }
 0x3fc   :  { %2302 = vrcp.f32 %v1048_v26  ;;  %v3889_v26 = vld [vmem:[#allocation19_spill] sm:$0xff] }
 0x3fd   :  { %2304 = vrcp.f32 %v1055_v17  ;;  %v3895_v17 = vld [vmem:[#allocation27_spill] sm:$0xff] }
 0x407   :  { %v2299_v52 = vpop.eup %2298 }
 0x408   :  { %v2301_v56 = vpop.eup %2300 }
 0x409   :  { %v2303_v58 = vpop.eup %2302  ;;  %v1059_v30 = vmul.f32 %v2301_v56, %v2299_v52  ;;  %v3891_v52 = vld [vmem:[#allocation26_spill] sm:$0xff]  ;;  %v3892_v56 = vld [vmem:[#allocation11_spill] sm:$0xff] }
 0x40a   :  { %v1058_v49 = vmul.f32 %v2303_v58, %v808_v9  ;;  %v2305_v35 = vpop.eup %2304  ;;  %v3893_v58 = vld [vmem:[#allocation21_spill] sm:$0xff]  ;;  %v3894_v9 = vld [vmem:[#allocation20_spill] sm:$0xff] }
 0x40c   :  { %v1060_v51 = vadd.f32 %v1059_v30, %v1058_v49  ;;  %v3896_v30 = vld [vmem:[#allocation22_spill] sm:$0xff]  ;;  %v3897_v49 = vld [vmem:[#allocation8_spill] sm:$0xff] }
 0x40e   :  { %2306 = vtanh.f32 %v1060_v51  ;;  %1064 = vst [vmem:[#allocation3] sm:$0x3] %v1060_v51  ;;  %v3898_v51 = vld [vmem:[#allocation13_spill] sm:$0xff] }
 0x41b   :  { %v2307_v11 = vpop.eup %2306 }
 0x41c   :  { %v1062_v8 = vmul.f32 %v2307_v11, %v2305_v35  ;;  %v3899_v35 = vld [vmem:[#allocation29_spill] sm:$0xff]  ;;  %v3900_v11 = vld [vmem:[#allocation23_spill] sm:$0xff] }
 0x41e   :  { %1063 = vst [vmem:[#allocation2] sm:$0x3] %v1062_v8  ;;  %1066 = vst [vmem:[#allocation4 + $0x6] sm:$0x3] %v1062_v8  ;;  %v3901_v8 = vmov 0.0  }
 0x425   :  { %v1067_v6 = vld [vmem:[#allocation2] sm:$0x3] }
 0x426   :  { %1222 = vmatmul.mubr.f32.vlgmr.msra.gmra.mxu0 %v1067_v6  ;;  %1293 = vmatmul.mubr.f32.vlgmr.msra.gmra.mxu1 %v1067_v6  ;;  %v3902_v6 = vld [vmem:[#allocation12_spill] sm:$0xff] }
 0x427   :  { %1418 = vmatpush1.msra.mxu0 %v3020_v13  ;;  %1489 = vmatpush1.msra.mxu1 %v3258_v60 }
 0x428   :  { %1419 = vmatprep.subr.mxu0 %v3026_v14  ;;  %1490 = vmatprep.subr.mxu1 %v3264_v62 }
 0x429   :  { %1420 = vmatpush1.msra.mxu0 %v3032_v16  ;;  %1491 = vmatpush1.msra.mxu1 %v3270_v0 }
 0x42a   :  { %1421 = vmatprep.subr.mxu0 %v3038_v18  ;;  %1492 = vmatprep.subr.mxu1 %v3276_v57 }
 0x42b   :  { %1422 = vmatpush1.msra.mxu0 %v3044_v19  ;;  %1493 = vmatpush1.msra.mxu1 %v3282_v61 }
 0x42c   :  { %1423 = vmatprep.subr.mxu0 %v3050_v21  ;;  %1494 = vmatprep.subr.mxu1 %v3288_v34 }
 0x42d   :  { %1424 = vmatpush1.msra.mxu0 %v3056_v23  ;;  %1495 = vmatpush1.msra.mxu1 %v3294_v47 }
 0x42e   :  { %1425 = vmatprep.subr.mxu0 %v3062_v25  ;;  %1496 = vmatprep.subr.mxu1 %v3300_v53 }
 0x42f   :  { %1426 = vmatpush1.msra.mxu0 %v3068_v27  ;;  %1497 = vmatpush1.msra.mxu1 %v3306_v54 }
 0x430   :  { %1427 = vmatprep.subr.mxu0 %v3074_v29  ;;  %1498 = vmatprep.subr.mxu1 %v3312_v43 }
 0x431   :  { %1428 = vmatpush1.msra.mxu0 %v3080_v31  ;;  %1499 = vmatpush1.msra.mxu1 %v3318_v2 }
 0x432   :  { %1429 = vmatprep.subr.mxu0 %v3086_v33  ;;  %1500 = vmatprep.subr.mxu1 %v3324_v5 }
 0x433   :  { %1430 = vmatpush1.msra.mxu0 %v3092_v36  ;;  %1501 = vmatpush1.msra.mxu1 %v3330_v7 }
 0x434   :  { %1431 = vmatprep.subr.mxu0 %v3098_v38  ;;  %1502 = vmatprep.subr.mxu1 %v3336_v10 }
 0x435   :  { %1432 = vmatpush1.msra.mxu0 %v3104_v40  ;;  %1503 = vmatpush1.msra.mxu1 %v3342_v15 }
 0x436   :  { %1433 = vmatprep.subr.mxu0 %v3110_v42  ;;  %1504 = vmatprep.subr.mxu1 %v3348_v20 }
 0x437   :  { %1434 = vmatpush1.msra.mxu0 %v3116_v44  ;;  %1505 = vmatpush1.msra.mxu1 %v3354_v24 }
 0x438   :  { %1435 = vmatprep.subr.mxu0 %v3122_v46  ;;  %1506 = vmatprep.subr.mxu1 %v3360_v28 }
 0x439   :  { %1436 = vmatpush1.msra.mxu0 %v3128_v48  ;;  %1507 = vmatpush1.msra.mxu1 %v3366_v32 }
 0x43a   :  { %1437 = vmatprep.subr.mxu0 %v3134_v50  ;;  %1508 = vmatprep.subr.mxu1 %v3372_v37 }
 0x43b   :  { %1438 = vmatpush1.msra.mxu0 %v3140_v1  ;;  %1509 = vmatpush1.msra.mxu1 %v3378_v39 }
 0x43c   :  { %1439 = vmatprep.subr.mxu0 %v3146_v3  ;;  %1510 = vmatprep.subr.mxu1 %v3883_v12 }
 0x43d   :  { %1440 = vmatpush1.msra.mxu0 %v3884_v59  ;;  %1511 = vmatpush1.msra.mxu1 %v3885_v41 }
 0x43e   :  { %1441 = vmatprep.subr.mxu0 %v3886_v45  ;;  %1512 = vmatprep.subr.mxu1 %v3887_v55 }
 0x43f   :  { %1442 = vmatpush1.msra.mxu0 %v3888_v63  ;;  %1513 = vmatpush1.msra.mxu1 %v3889_v26 }
 0x440   :  { %1443 = vmatprep.subr.mxu0 %v3890_v22  ;;  %1514 = vmatprep.subr.mxu1 %v3891_v52 }
 0x441   :  { %1444 = vmatpush1.msra.mxu0 %v3892_v56  ;;  %1515 = vmatpush1.msra.mxu1 %v3893_v58  ;;  %v3903_v58 = vld [vmem:[#allocation14_spill] sm:$0xff] }
 0x442   :  { %1445 = vmatprep.subr.mxu0 %v3894_v9  ;;  %1516 = vmatprep.subr.mxu1 %v3895_v17  ;;  %v3904_v9 = vld [vmem:[#allocation15_spill] sm:$0xff] }
 0x443   :  { %1446 = vmatpush1.msra.mxu0 %v3896_v30  ;;  %1517 = vmatpush1.msra.mxu1 %v3897_v49  ;;  %v2210_v49 = vld [vmem:[%s3734_s0 + $0x20] sm:$0xff] }
 0x444   :  { %1447 = vmatprep.subr.mxu0 %v3898_v51  ;;  %1518 = vmatprep.subr.mxu1 %v3899_v35  ;;  %v1143_v51 = vrot.slane %v2210_v49, %v2902_v4  ;;  %v1136_v17 = vcombine.high %v2210_v49, %v2210_v49 }
 0x445   :  { %1448 = vmatpush1.msra.mxu0 %v3900_v11  ;;  %1481 = vmatprep.mubr.f32.mxu0 %v3901_v8 }
 0x446   :  { %1519 = vmatpush1.msra.mxu1 %v3902_v6  ;;  %1552 = vmatprep.mubr.f32.mxu1 %v3901_v8  ;;  %v1151_v30 = vcombine.high %v1143_v51, %v1143_v51  ;;  %v1150_v6 = vrot.slane %v1136_v17, %v2902_v4 }
 0x447   :  { %1677 = vmatprep.subr.mxu0 %v3903_v58  ;;  %1748 = vmatprep.subr.mxu1 %v3904_v9 }
 0x448   :  { %v1152_v9 = vcombine.high %v1150_v6, %v1150_v6 }
 0x4e6   :  { %v1223_v35 = vpop.f32.mrf.mxu0  ;;  %v1294_v8 = vpop.f32.mrf.mxu1 }
 0x4e7   :  { %v1224_v11 = vadd.f32 %v1223_v35, %v1143_v51  ;;  %v1295_v41 = vadd.f32 %v1294_v8, %v1150_v6  ;;  %v1068_v51 = vld [vmem:[#allocation3] sm:$0x3] }
 0x4e8   :  { %v1225_v56 = vpop.f32.mrf.mxu0  ;;  %v1296_v26 = vpop.f32.mrf.mxu1 }
 0x4e9   :  { %v2211_v52 = vmul.f32 -1.442695, %v1224_v11  ;;  %v1226_v22 = vadd.f32 %v1225_v56, %v1151_v30  ;;  %v1297_v63 = vadd.f32 %v1296_v26, %v1152_v9 }
 0x4eb   :  { %2308 = vpow2.f32 %v2211_v52  ;;  %v2212_v58 = vmul.f32 -1.442695, %v1226_v22  ;;  %v2213_v55 = vmul.f32 -1.442695, %v1297_v63 }
 0x4ed   :  { %2310 = vpow2.f32 %v2212_v58 }
 0x4ee   :  { %2312 = vpow2.f32 %v2213_v55 }
 0x4f8   :  { %v2309_v45 = vpop.eup %2308 }
 0x4f9   :  { %v1302_v59 = vadd.f32 1.0, %v2309_v45 }
 0x4fa   :  { %v2311_v12 = vpop.eup %2310 }
 0x4fb   :  { %2314 = vrcp.f32 %v1302_v59  ;;  %v1308_v49 = vadd.f32 1.0, %v2311_v12  ;;  %v2313_v56 = vpop.eup %2312 }
 0x4fc   :  { %2316 = vtanh.f32 %v1295_v41  ;;  %v1315_v22 = vadd.f32 1.0, %v2313_v56 }
 0x4fd   :  { %2318 = vrcp.f32 %v1308_v49 }
 0x4fe   :  { %2320 = vrcp.f32 %v1315_v22 }
 0x508   :  { %v2315_v30 = vpop.eup %2314 }
 0x509   :  { %v2317_v17 = vpop.eup %2316 }
 0x50a   :  { %v2319_v52 = vpop.eup %2318  ;;  %v1319_v35 = vmul.f32 %v2317_v17, %v2315_v30 }
 0x50b   :  { %v1318_v11 = vmul.f32 %v2319_v52, %v1068_v51  ;;  %v2321_v63 = vpop.eup %2320 }
 0x50d   :  { %v1320_v58 = vadd.f32 %v1319_v35, %v1318_v11 }
 0x50f   :  { %2322 = vtanh.f32 %v1320_v58  ;;  %1324 = vst [vmem:[#allocation3] sm:$0x3] %v1320_v58 }
 0x51c   :  { %v2323_v45 = vpop.eup %2322 }
 0x51d   :  { %v1322_v26 = vmul.f32 %v2323_v45, %v2321_v63 }
 0x51f   :  { %1326 = vst [vmem:[#allocation4 + $0x8] sm:$0x3] %v1322_v26  ;;  %1323 = vst [vmem:[#allocation2] sm:$0x3] %v1322_v26 }
 0x526   :  { %v1327_v12 = vld [vmem:[#allocation2] sm:$0x3] }
 0x527   :  { %1482 = vmatmul.mubr.f32.vlgmr.msra.gmra.mxu0 %v1327_v12  ;;  %1553 = vmatmul.mubr.f32.vlgmr.msra.gmra.mxu1 %v1327_v12 }
 0x528   :  { %1678 = vmatpush1.msra.mxu0 %v3020_v13  ;;  %1749 = vmatpush1.msra.mxu1 %v3258_v60  ;;  %v3905_v13 = vld [vmem:[#allocation24_spill] sm:$0xff] }
 0x529   :  { %1679 = vmatprep.subr.mxu0 %v3026_v14  ;;  %1750 = vmatprep.subr.mxu1 %v3264_v62  ;;  %v3906_v14 = vld [vmem:[#allocation9_spill] sm:$0xff] }
 0x52a   :  { %1680 = vmatpush1.msra.mxu0 %v3032_v16  ;;  %1751 = vmatpush1.msra.mxu1 %v3270_v0  ;;  %v3907_v16 = vld [vmem:[#allocation17_spill] sm:$0xff] }
 0x52b   :  { %1681 = vmatprep.subr.mxu0 %v3038_v18  ;;  %1752 = vmatprep.subr.mxu1 %v3276_v57  ;;  %v3908_v18 = vld [vmem:[#allocation16_spill] sm:$0xff] }
 0x52c   :  { %1682 = vmatpush1.msra.mxu0 %v3044_v19  ;;  %1753 = vmatpush1.msra.mxu1 %v3282_v61  ;;  %v3909_v19 = vld [vmem:[#allocation25_spill] sm:$0xff] }
 0x52d   :  { %1683 = vmatprep.subr.mxu0 %v3050_v21  ;;  %1754 = vmatprep.subr.mxu1 %v3288_v34  ;;  %v3910_v21 = vld [vmem:[#allocation10_spill] sm:$0xff] }
 0x52e   :  { %1684 = vmatpush1.msra.mxu0 %v3056_v23  ;;  %1755 = vmatpush1.msra.mxu1 %v3294_v47  ;;  %v3911_v23 = vld [vmem:[#allocation19_spill] sm:$0xff] }
 0x52f   :  { %1685 = vmatprep.subr.mxu0 %v3062_v25  ;;  %1756 = vmatprep.subr.mxu1 %v3300_v53  ;;  %v3912_v25 = vld [vmem:[#allocation18_spill] sm:$0xff] }
 0x530   :  { %1686 = vmatpush1.msra.mxu0 %v3068_v27  ;;  %1757 = vmatpush1.msra.mxu1 %v3306_v54  ;;  %v3913_v27 = vld [vmem:[#allocation26_spill] sm:$0xff] }
 0x531   :  { %1687 = vmatprep.subr.mxu0 %v3074_v29  ;;  %1758 = vmatprep.subr.mxu1 %v3312_v43  ;;  %v3914_v29 = vld [vmem:[#allocation11_spill] sm:$0xff] }
 0x532   :  { %1688 = vmatpush1.msra.mxu0 %v3080_v31  ;;  %1759 = vmatpush1.msra.mxu1 %v3318_v2  ;;  %v3915_v31 = vld [vmem:[#allocation21_spill] sm:$0xff] }
 0x533   :  { %1689 = vmatprep.subr.mxu0 %v3086_v33  ;;  %1760 = vmatprep.subr.mxu1 %v3324_v5  ;;  %v3916_v33 = vld [vmem:[#allocation20_spill] sm:$0xff] }
 0x534   :  { %1690 = vmatpush1.msra.mxu0 %v3092_v36  ;;  %1761 = vmatpush1.msra.mxu1 %v3330_v7  ;;  %v3917_v36 = vld [vmem:[#allocation27_spill] sm:$0xff] }
 0x535   :  { %1691 = vmatprep.subr.mxu0 %v3098_v38  ;;  %1762 = vmatprep.subr.mxu1 %v3336_v10  ;;  %v3918_v38 = vld [vmem:[#allocation22_spill] sm:$0xff] }
 0x536   :  { %1692 = vmatpush1.msra.mxu0 %v3104_v40  ;;  %1763 = vmatpush1.msra.mxu1 %v3342_v15  ;;  %v3919_v40 = vld [vmem:[#allocation8_spill] sm:$0xff] }
 0x537   :  { %1693 = vmatprep.subr.mxu0 %v3110_v42  ;;  %1764 = vmatprep.subr.mxu1 %v3348_v20  ;;  %v3920_v42 = vld [vmem:[#allocation13_spill] sm:$0xff] }
 0x538   :  { %1694 = vmatpush1.msra.mxu0 %v3116_v44  ;;  %1765 = vmatpush1.msra.mxu1 %v3354_v24  ;;  %v3921_v44 = vld [vmem:[#allocation29_spill] sm:$0xff] }
 0x539   :  { %1695 = vmatprep.subr.mxu0 %v3122_v46  ;;  %1766 = vmatprep.subr.mxu1 %v3360_v28  ;;  %v3922_v46 = vld [vmem:[#allocation23_spill] sm:$0xff] }
 0x53a   :  { %1696 = vmatpush1.msra.mxu0 %v3128_v48  ;;  %1767 = vmatpush1.msra.mxu1 %v3366_v32  ;;  %v3923_v48 = vmov 0.0  }
 0x53b   :  { %1697 = vmatprep.subr.mxu0 %v3134_v50  ;;  %1768 = vmatprep.subr.mxu1 %v3372_v37  ;;  %v3924_v50 = vld [vmem:[#allocation12_spill] sm:$0xff] }
 0x53c   :  { %1698 = vmatpush1.msra.mxu0 %v3140_v1  ;;  %1769 = vmatpush1.msra.mxu1 %v3378_v39  ;;  %v3925_v1 = vld [vmem:[#allocation15_spill] sm:$0xff] }
 0x53d   :  { %1699 = vmatprep.subr.mxu0 %v3146_v3  ;;  %1770 = vmatprep.subr.mxu1 %v3905_v13  ;;  %v2214_v3 = vld [vmem:[%s3734_s0 + $0x28] sm:$0xff] }
 0x53e   :  { %1700 = vmatpush1.msra.mxu0 %v3906_v14  ;;  %1771 = vmatpush1.msra.mxu1 %v3907_v16  ;;  %v1403_v59 = vrot.slane %v2214_v3, %v2902_v4  ;;  %v1396_v9 = vcombine.high %v2214_v3, %v2214_v3 }
 0x53f   :  { %1701 = vmatprep.subr.mxu0 %v3908_v18  ;;  %1772 = vmatprep.subr.mxu1 %v3909_v19 }
 0x540   :  { %1702 = vmatpush1.msra.mxu0 %v3910_v21  ;;  %1773 = vmatpush1.msra.mxu1 %v3911_v23  ;;  %v1411_v41 = vcombine.high %v1403_v59, %v1403_v59  ;;  %v1410_v30 = vrot.slane %v1396_v9, %v2902_v4  ;;  %v2218_v9 = vld [vmem:[%s3734_s0 + $0x30] sm:$0xff] }
 0x541   :  { %1703 = vmatprep.subr.mxu0 %v3912_v25  ;;  %1774 = vmatprep.subr.mxu1 %v3913_v27 }
 0x542   :  { %1704 = vmatpush1.msra.mxu0 %v3914_v29  ;;  %1775 = vmatpush1.msra.mxu1 %v3915_v31  ;;  %v1412_v51 = vcombine.high %v1410_v30, %v1410_v30  ;;  %v1328_v29 = vld [vmem:[#allocation3] sm:$0x3] }
 0x543   :  { %1705 = vmatprep.subr.mxu0 %v3916_v33  ;;  %1776 = vmatprep.subr.mxu1 %v3917_v36 }
 0x544   :  { %1706 = vmatpush1.msra.mxu0 %v3918_v38  ;;  %1777 = vmatpush1.msra.mxu1 %v3919_v40 }
 0x545   :  { %1707 = vmatprep.subr.mxu0 %v3920_v42  ;;  %1778 = vmatprep.subr.mxu1 %v3921_v44 }
 0x546   :  { %1708 = vmatpush1.msra.mxu0 %v3922_v46  ;;  %1741 = vmatprep.mubr.f32.mxu0 %v3923_v48 }
 0x547   :  { %1779 = vmatpush1.msra.mxu1 %v3924_v50  ;;  %1812 = vmatprep.mubr.f32.mxu1 %v3923_v48 }
 0x548   :  { %2008 = vmatprep.subr.mxu1 %v3925_v1 }
 0x5e7   :  { %v1483_v55 = vpop.f32.mrf.mxu0  ;;  %v1554_v17 = vpop.f32.mrf.mxu1 }
 0x5e8   :  { %v1484_v8 = vadd.f32 %v1483_v55, %v1403_v59  ;;  %v1555_v63 = vadd.f32 %v1554_v17, %v1410_v30  ;;  %v1849_v55 = vld [vmem:[%s3735_s1] sm:$0xff] }
 0x5e9   :  { %v1485_v6 = vpop.f32.mrf.mxu0  ;;  %v1556_v22 = vpop.f32.mrf.mxu1 }
 0x5ea   :  { %v2215_v49 = vmul.f32 -1.442695, %v1484_v8  ;;  %v1486_v56 = vadd.f32 %v1485_v6, %v1411_v41  ;;  %v1557_v35 = vadd.f32 %v1556_v22, %v1412_v51  ;;  %v1850_v41 = vld [vmem:[%s3735_s1 + $0x8] sm:$0xff]  ;;  %v1663_v8 = vrot.slane %v2218_v9, %v2902_v4 }
 0x5ec   :  { %2324 = vpow2.f32 %v2215_v49  ;;  %v2216_v52 = vmul.f32 -1.442695, %v1486_v56  ;;  %v2217_v11 = vmul.f32 -1.442695, %v1557_v35  ;;  %v1671_v6 = vcombine.high %v1663_v8, %v1663_v8 }
 0x5ed   :  { %v1656_v56 = vcombine.high %v2218_v9, %v2218_v9 }
 0x5ee   :  { %2326 = vpow2.f32 %v2216_v52 }
 0x5ef   :  { %2328 = vpow2.f32 %v2217_v11  ;;  %v1670_v22 = vrot.slane %v1656_v56, %v2902_v4  ;;  %v2372_v56 = vld.sshfl [vmem:[#allocation4 + $0x2] sm:$0xf pattern:$0x76325410] }
 0x5f9   :  { %v2325_v58 = vpop.eup %2324 }
 0x5fa   :  { %v1562_v45 = vadd.f32 1.0, %v2325_v58  ;;  %v1672_v58 = vcombine.high %v1670_v22, %v1670_v22 }
 0x5fb   :  { %v2327_v26 = vpop.eup %2326 }
 0x5fc   :  { %2330 = vrcp.f32 %v1562_v45  ;;  %v1568_v12 = vadd.f32 1.0, %v2327_v26  ;;  %v2329_v14 = vpop.eup %2328 }
 0x5fd   :  { %2332 = vtanh.f32 %v1555_v63  ;;  %v1575_v33 = vadd.f32 1.0, %v2329_v14 }
 0x5fe   :  { %2334 = vrcp.f32 %v1568_v12 }
 0x5ff   :  { %2336 = vrcp.f32 %v1575_v33 }
 0x609   :  { %v2331_v18 = vpop.eup %2330 }
 0x60a   :  { %v2333_v21 = vpop.eup %2332 }
 0x60b   :  { %v2335_v25 = vpop.eup %2334  ;;  %v1579_v38 = vmul.f32 %v2333_v21, %v2331_v18 }
 0x60c   :  { %v1578_v42 = vmul.f32 %v2335_v25, %v1328_v29  ;;  %v2337_v50 = vpop.eup %2336 }
 0x60e   :  { %v1580_v46 = vadd.f32 %v1579_v38, %v1578_v42 }
 0x610   :  { %2338 = vtanh.f32 %v1580_v46  ;;  %1584 = vst [vmem:[#allocation3] sm:$0x3] %v1580_v46 }
 0x617   :  { %v1588_v46 = vld [vmem:[#allocation3] sm:$0x3] }
 0x61d   :  { %v2339_v1 = vpop.eup %2338 }
 0x61e   :  { %v1582_v3 = vmul.f32 %v2339_v1, %v2337_v50 }
 0x620   :  { %1586 = vst [vmem:[#allocation4 + $0xa] sm:$0x3] %v1582_v3  ;;  %1583 = vst [vmem:[#allocation2] sm:$0x3] %v1582_v3 }
 0x627   :  { %v1587_v59 = vld [vmem:[#allocation2] sm:$0x3] }
 0x628   :  { %1742 = vmatmul.mubr.f32.vlgmr.msra.gmra.mxu0 %v1587_v59  ;;  %1813 = vmatmul.mubr.f32.vlgmr.msra.gmra.mxu1 %v1587_v59 }
 0x629   :  { %2009 = vmatpush1.msra.mxu1 %v3258_v60  ;;  %2001 = vmatprep.mubr.f32.mxu0 %v3923_v48  ;;  %v1910_v60 = vld [vmem:[%s3735_s1 + $0x1e8] sm:$0xff] }
 0x62a   :  { %2010 = vmatprep.subr.mxu1 %v3264_v62  ;;  %2072 = vmatprep.mubr.f32.mxu1 %v3923_v48  ;;  %v1909_v62 = vld [vmem:[%s3735_s1 + $0x1e0] sm:$0xff] }
 0x62b   :  { %2011 = vmatpush1.msra.mxu1 %v3270_v0  ;;  %1937 = vmatprep.subr.mxu0 %v1910_v60  ;;  %v1906_v0 = vld [vmem:[%s3735_s1 + $0x1c8] sm:$0xff]  ;;  %v1853_v48 = vld [vmem:[%s3735_s1 + $0x20] sm:$0xff] }
 0x62c   :  { %2012 = vmatprep.subr.mxu1 %v3276_v57  ;;  %1938 = vmatpush1.msra.mxu0 %v1909_v62  ;;  %v1905_v57 = vld [vmem:[%s3735_s1 + $0x1c0] sm:$0xff] }
 0x62d   :  { %2013 = vmatpush1.msra.mxu1 %v3282_v61  ;;  %1939 = vmatprep.subr.mxu0 %v1906_v0  ;;  %v1902_v61 = vld [vmem:[%s3735_s1 + $0x1a8] sm:$0xff] }
 0x62e   :  { %2014 = vmatprep.subr.mxu1 %v3288_v34  ;;  %1940 = vmatpush1.msra.mxu0 %v1905_v57  ;;  %v1901_v34 = vld [vmem:[%s3735_s1 + $0x1a0] sm:$0xff] }
 0x62f   :  { %2015 = vmatpush1.msra.mxu1 %v3294_v47  ;;  %1941 = vmatprep.subr.mxu0 %v1902_v61  ;;  %v1898_v47 = vld [vmem:[%s3735_s1 + $0x188] sm:$0xff]  ;;  %v2222_v61 = vld [vmem:[%s3734_s0 + $0x38] sm:$0xff] }
 0x630   :  { %2016 = vmatprep.subr.mxu1 %v3300_v53  ;;  %1942 = vmatpush1.msra.mxu0 %v1901_v34  ;;  %v1897_v53 = vld [vmem:[%s3735_s1 + $0x180] sm:$0xff]  ;;  %v1923_v34 = vrot.slane %v2222_v61, %v2902_v4 }
 0x631   :  { %2017 = vmatpush1.msra.mxu1 %v3306_v54  ;;  %1943 = vmatprep.subr.mxu0 %v1898_v47  ;;  %v1894_v54 = vld [vmem:[%s3735_s1 + $0x168] sm:$0xff] }
 0x632   :  { %2018 = vmatprep.subr.mxu1 %v3312_v43  ;;  %1944 = vmatpush1.msra.mxu0 %v1897_v53  ;;  %v1893_v43 = vld [vmem:[%s3735_s1 + $0x160] sm:$0xff]  ;;  %v1931_v47 = vcombine.high %v1923_v34, %v1923_v34 }
 0x633   :  { %2019 = vmatpush1.msra.mxu1 %v3318_v2  ;;  %1945 = vmatprep.subr.mxu0 %v1894_v54  ;;  %v1890_v2 = vld [vmem:[%s3735_s1 + $0x148] sm:$0xff]  ;;  %v1916_v54 = vcombine.high %v2222_v61, %v2222_v61 }
 0x634   :  { %2020 = vmatprep.subr.mxu1 %v3324_v5  ;;  %1946 = vmatpush1.msra.mxu0 %v1893_v43  ;;  %v1889_v5 = vld [vmem:[%s3735_s1 + $0x140] sm:$0xff] }
 0x635   :  { %2021 = vmatpush1.msra.mxu1 %v3330_v7  ;;  %1947 = vmatprep.subr.mxu0 %v1890_v2  ;;  %v1886_v7 = vld [vmem:[%s3735_s1 + $0x128] sm:$0xff] }
 0x636   :  { %2022 = vmatprep.subr.mxu1 %v3336_v10  ;;  %1948 = vmatpush1.msra.mxu0 %v1889_v5  ;;  %v1885_v10 = vld [vmem:[%s3735_s1 + $0x120] sm:$0xff] }
 0x637   :  { %2023 = vmatpush1.msra.mxu1 %v3342_v15  ;;  %1949 = vmatprep.subr.mxu0 %v1886_v7  ;;  %v1882_v15 = vld [vmem:[%s3735_s1 + $0x108] sm:$0xff] }
 0x638   :  { %2024 = vmatprep.subr.mxu1 %v3348_v20  ;;  %1950 = vmatpush1.msra.mxu0 %v1885_v10  ;;  %v1881_v20 = vld [vmem:[%s3735_s1 + $0x100] sm:$0xff]  ;;  %v1930_v10 = vrot.slane %v1916_v54, %v2902_v4 }
 0x639   :  { %2025 = vmatpush1.msra.mxu1 %v3354_v24  ;;  %1951 = vmatprep.subr.mxu0 %v1882_v15  ;;  %v1878_v24 = vld [vmem:[%s3735_s1 + $0xe8] sm:$0xff] }
 0x63a   :  { %2026 = vmatprep.subr.mxu1 %v3360_v28  ;;  %1952 = vmatpush1.msra.mxu0 %v1881_v20  ;;  %v1877_v28 = vld [vmem:[%s3735_s1 + $0xe0] sm:$0xff] }
 0x63b   :  { %2027 = vmatpush1.msra.mxu1 %v3366_v32  ;;  %1953 = vmatprep.subr.mxu0 %v1878_v24  ;;  %v1874_v32 = vld [vmem:[%s3735_s1 + $0xc8] sm:$0xff]  ;;  %v1932_v24 = vcombine.high %v1930_v10, %v1930_v10 }
 0x63c   :  { %2028 = vmatprep.subr.mxu1 %v3372_v37  ;;  %1954 = vmatpush1.msra.mxu0 %v1877_v28  ;;  %v1873_v37 = vld [vmem:[%s3735_s1 + $0xc0] sm:$0xff] }
 0x63d   :  { %2029 = vmatpush1.msra.mxu1 %v3378_v39  ;;  %1955 = vmatprep.subr.mxu0 %v1874_v32  ;;  %v1870_v39 = vld [vmem:[%s3735_s1 + $0xa8] sm:$0xff] }
 0x63e   :  { %2030 = vmatprep.subr.mxu1 %v3905_v13  ;;  %1956 = vmatpush1.msra.mxu0 %v1873_v37  ;;  %v1869_v13 = vld [vmem:[%s3735_s1 + $0xa0] sm:$0xff] }
 0x63f   :  { %2031 = vmatpush1.msra.mxu1 %v3907_v16  ;;  %1957 = vmatprep.subr.mxu0 %v1870_v39  ;;  %v1866_v16 = vld [vmem:[%s3735_s1 + $0x88] sm:$0xff] }
 0x640   :  { %2032 = vmatprep.subr.mxu1 %v3909_v19  ;;  %1958 = vmatpush1.msra.mxu0 %v1869_v13  ;;  %v1865_v19 = vld [vmem:[%s3735_s1 + $0x80] sm:$0xff] }
 0x641   :  { %2033 = vmatpush1.msra.mxu1 %v3911_v23  ;;  %1959 = vmatprep.subr.mxu0 %v1866_v16  ;;  %v1862_v23 = vld [vmem:[%s3735_s1 + $0x68] sm:$0xff] }
 0x642   :  { %2034 = vmatprep.subr.mxu1 %v3913_v27  ;;  %1960 = vmatpush1.msra.mxu0 %v1865_v19  ;;  %v1861_v27 = vld [vmem:[%s3735_s1 + $0x60] sm:$0xff] }
 0x643   :  { %2035 = vmatpush1.msra.mxu1 %v3915_v31  ;;  %v1858_v31 = vld [vmem:[%s3735_s1 + $0x48] sm:$0xff]  ;;  %1961 = vmatprep.subr.mxu0 %v1862_v23 }
 0x644   :  { %2036 = vmatprep.subr.mxu1 %v3917_v36  ;;  %v1857_v36 = vld [vmem:[%s3735_s1 + $0x40] sm:$0xff]  ;;  %1962 = vmatpush1.msra.mxu0 %v1861_v27 }
 0x645   :  { %2037 = vmatpush1.msra.mxu1 %v3919_v40  ;;  %v1854_v40 = vld [vmem:[%s3735_s1 + $0x28] sm:$0xff]  ;;  %1963 = vmatprep.subr.mxu0 %v1858_v31 }
 0x646   :  { %2038 = vmatprep.subr.mxu1 %v3921_v44  ;;  %v1851_v44 = vld [vmem:[%s3735_s1 + $0x10] sm:$0xff]  ;;  %1964 = vmatpush1.msra.mxu0 %v1857_v36 }
 0x647   :  { %2039 = vmatpush1.msra.mxu1 %v1851_v44  ;;  %1965 = vmatprep.subr.mxu0 %v1854_v40 }
 0x648   :  { %1966 = vmatpush1.msra.mxu0 %v1853_v48 }
 0x649   :  { %1967 = vmatprep.subr.mxu0 %v1850_v41 }
 0x64a   :  { %1968 = vmatpush1.msra.mxu0 %v1849_v55 }
 0x6e8   :  { %v1743_v49 = vpop.f32.mrf.mxu0  ;;  %v1814_v35 = vpop.f32.mrf.mxu1 }
 0x6e9   :  { %v1744_v30 = vadd.f32 %v1743_v49, %v1663_v8  ;;  %v1815_v14 = vadd.f32 %v1814_v35, %v1670_v22 }
 0x6ea   :  { %v1745_v17 = vpop.f32.mrf.mxu0  ;;  %v1816_v63 = vpop.f32.mrf.mxu1 }
 0x6eb   :  { %v2219_v52 = vmul.f32 -1.442695, %v1744_v30  ;;  %v1746_v51 = vadd.f32 %v1745_v17, %v1671_v6  ;;  %v1817_v45 = vadd.f32 %v1816_v63, %v1672_v58  ;;  %v2400_v30 = vmov 1934713408   ;;  %v3926_v63 = vld [vmem:[#allocation28_spill] sm:$0xff] }
 0x6ec   :  { %v2153_v17 = vunpack.c.l.s4 %v2400_v30 }
 0x6ed   :  { %2340 = vpow2.f32 %v2219_v52  ;;  %v2220_v11 = vmul.f32 -1.442695, %v1746_v51  ;;  %v2221_v26 = vmul.f32 -1.442695, %v1817_v45 }
 0x6ee   :  { %v2373_v52 = vld.sshfl [vmem:[#allocation4] sm:$0xf pattern:$0x76325410]  ;;  %v2154_v22 = vunpack.c.0.s8 %v2153_v17 }
 0x6ef   :  { %2342 = vpow2.f32 %v2220_v11  ;;  %v2151_v58 = vcombine.low %v2373_v52, %v2372_v56 }
 0x6f0   :  { %2344 = vpow2.f32 %v2221_v26  ;;  %v2157_v45 = vsub.s32 %v2154_v22, %v3926_v63 }
 0x6fa   :  { %v2341_v12 = vpop.eup %2340 }
 0x6fb   :  { %v1822_v18 = vadd.f32 1.0, %v2341_v12  ;;  %v2158_v12 = vrot.slane %v2151_v58, %v2157_v45 }
 0x6fc   :  { %v2343_v21 = vpop.eup %2342 }
 0x6fd   :  { %2346 = vrcp.f32 %v1822_v18  ;;  %v1828_v25 = vadd.f32 1.0, %v2343_v21  ;;  %v2345_v29 = vpop.eup %2344 }
 0x6fe   :  { %2348 = vtanh.f32 %v1815_v14  ;;  %v1835_v50 = vadd.f32 1.0, %v2345_v29 }
 0x6ff   :  { %2350 = vrcp.f32 %v1828_v25 }
 0x700   :  { %2352 = vrcp.f32 %v1835_v50 }
 0x70a   :  { %v2347_v33 = vpop.eup %2346 }
 0x70b   :  { %v2349_v38 = vpop.eup %2348 }
 0x70c   :  { %v2351_v42 = vpop.eup %2350  ;;  %v1839_v1 = vmul.f32 %v2349_v38, %v2347_v33 }
 0x70d   :  { %v1838_v3 = vmul.f32 %v2351_v42, %v1588_v46  ;;  %v2353_v60 = vpop.eup %2352 }
 0x70f   :  { %v1840_v59 = vadd.f32 %v1839_v1, %v1838_v3 }
 0x711   :  { %2354 = vtanh.f32 %v1840_v59  ;;  %1844 = vst [vmem:[#allocation3] sm:$0x3] %v1840_v59 }
 0x718   :  { %v1848_v40 = vld [vmem:[#allocation3] sm:$0x3] }
 0x71e   :  { %v2355_v62 = vpop.eup %2354 }
 0x71f   :  { %v1842_v0 = vmul.f32 %v2355_v62, %v2353_v60 }
 0x721   :  { %1846 = vst [vmem:[#allocation4 + $0xc] sm:$0x3] %v1842_v0  ;;  %1843 = vst [vmem:[#allocation2] sm:$0x3] %v1842_v0 }
 0x728   :  { %v1847_v57 = vld [vmem:[#allocation2] sm:$0x3]  ;;  %v2374_v51 = vld.sshfl [vmem:[#allocation4 + $0x8] sm:$0xf pattern:$0x76325410] }
 0x729   :  { %2002 = vmatmul.mubr.f32.vlgmr.msra.gmra.mxu0 %v1847_v57  ;;  %2073 = vmatmul.mubr.f32.vlgmr.msra.gmra.mxu1 %v1847_v57 }
 0x7e9   :  { %v2003_v53 = vpop.f32.mrf.mxu0  ;;  %v2074_v15 = vpop.f32.mrf.mxu1 }
 0x7ea   :  { %v2004_v43 = vadd.f32 %v2003_v53, %v1923_v34  ;;  %v2075_v13 = vadd.f32 %v2074_v15, %v1930_v10 }
 0x7eb   :  { %v2005_v2 = vpop.f32.mrf.mxu0  ;;  %v2076_v28 = vpop.f32.mrf.mxu1 }
 0x7ec   :  { %v2223_v5 = vmul.f32 -1.442695, %v2004_v43  ;;  %v2006_v7 = vadd.f32 %v2005_v2, %v1931_v47  ;;  %v2077_v32 = vadd.f32 %v2076_v28, %v1932_v24 }
 0x7ee   :  { %2356 = vpow2.f32 %v2223_v5  ;;  %v2224_v20 = vmul.f32 -1.442695, %v2006_v7  ;;  %v2225_v37 = vmul.f32 -1.442695, %v2077_v32 }
 0x7f0   :  { %2358 = vpow2.f32 %v2224_v20 }
 0x7f1   :  { %2360 = vpow2.f32 %v2225_v37 }
 0x7fb   :  { %v2357_v39 = vpop.eup %2356 }
 0x7fc   :  { %v2082_v16 = vadd.f32 1.0, %v2357_v39 }
 0x7fd   :  { %v2359_v19 = vpop.eup %2358 }
 0x7fe   :  { %2362 = vrcp.f32 %v2082_v16  ;;  %v2088_v23 = vadd.f32 1.0, %v2359_v19  ;;  %v2361_v27 = vpop.eup %2360 }
 0x7ff   :  { %2364 = vtanh.f32 %v2075_v13  ;;  %v2095_v44 = vadd.f32 1.0, %v2361_v27 }
 0x800   :  { %2366 = vrcp.f32 %v2088_v23 }
 0x801   :  { %2368 = vrcp.f32 %v2095_v44 }
 0x80b   :  { %v2363_v31 = vpop.eup %2362 }
 0x80c   :  { %v2365_v4 = vpop.eup %2364 }
 0x80d   :  { %v2367_v36 = vpop.eup %2366  ;;  %v2099_v48 = vmul.f32 %v2365_v4, %v2363_v31 }
 0x80e   :  { %v2098_v41 = vmul.f32 %v2367_v36, %v1848_v40  ;;  %v2369_v8 = vpop.eup %2368 }
 0x810   :  { %v2100_v55 = vadd.f32 %v2099_v48, %v2098_v41 }
 0x812   :  { %2370 = vtanh.f32 %v2100_v55  ;;  %2104 = vst [vmem:[#allocation3] sm:$0x3] %v2100_v55 }
 0x819   :  { %v2109_v9 = vld [vmem:[#allocation3] sm:$0x3] }
 0x81a   :  { %2110 = vst [vmem:[%s3740_s6] sm:$0x3] %v2109_v9  ;;  %s2401_s6 = smov [#allocation5]  }
 0x81b   :  { %s2176_s9 = sshll.u32 %s2401_s6, 4  ;;  %s2177_s9 = int_to_ptr.vmem [resolvable:$true] %s2176_s9 }
 0x81c   :  { %s2376_s10 = scalar_lea.vmem %s2177_s9, 256  ;;  %p2381_p1 = scmp.lt.s32.totalorder %s2177_s9, %s2177_s9 }
 0x81d   :  { %p2377_p0 = scmp.ne.s32.totalorder %s2177_s9, %s2376_s10  ;;  %p2382_p2 = scmp.lt.s32.totalorder %s2376_s10, %s2376_s10 }
 0x81f   :  { %v2371_v6 = vpop.eup %2370  ;;  %p2383_p3 = por %p2382_p2, %p2381_p1 }
 0x820   :  { %v2102_v49 = vmul.f32 %v2371_v6, %v2369_v8 }
 0x821   :  { %p2384_p4 = pnand %p2383_p3, %p2377_p0 }
 0x822   :  { %2103 = vst [vmem:[#allocation2] sm:$0x3] %v2102_v49  ;;  %2106 = vst [vmem:[#allocation4 + $0xe] sm:$0x3] %v2102_v49 }
 0x829   :  { %v2107_v35 = vld [vmem:[#allocation2] sm:$0x3]  ;;  %v2375_v11 = vld.sshfl [vmem:[#allocation4 + $0xa] sm:$0xf pattern:$0x76325410] }
 0x82a   :  { %2108 = vst [vmem:[%s3739_s5] sm:$0x3] %v2107_v35  ;;  %v2159_v26 = vcombine.low %v2374_v51, %v2375_v11 }
 0x82c   :  { %v2166_v14 = vrot.slane %v2159_v26, %v2157_v45 }
 0x82e   :  { %v2167_v18 = vcombine.low %v2158_v12, %v2166_v14  ;;  %v2168_v21 = vcombine.high %v2158_v12, %v2166_v14 }
 0x830   :  { %2169 = vst [vmem:[#allocation5] sm:$0xff] %v2167_v18  ;;  %2170 = vst [vmem:[#allocation5 + $0x8] sm:$0xff] %v2168_v21 }
 0x831   :  { %2387 = shalt.err (!%p2384_p4)
}
 0x832   :  { %s2402_s5 = smov 128   ;;  %s2403_s11 = smov 8  }
 0x833   :  { %2182 = dma.vmem_to_hbm [thread:$0]  %s2177_s9, 256, %s3738_s4, [#allocation6], %s2402_s5, %s2402_s5, %s2403_s11  }
 0x834   :  { %2396 = dma.done.wait [#allocation6], 256  }
 0x835   :  { %2397 = vsyncadd [#allocation6], 4294967040 }
 0x836   :  { %2194 = vsyncpa [#allocation6], 1 }

</bundles_post_ra>
